<compile_context>
chip_gen: v5e
topology: v5e:2x2
jax: 0.10.0
libtpu: 0.0.40
codegen_flags: <defaults>
</compile_context>

<pallas_src>
import math
import functools

import jax
import jax.numpy as jnp
from jax.experimental import pallas as pl
from jax.experimental.pallas import tpu as pltpu


# ----------------------------- small helpers -------------------------------- #

def _round_up(n, m):
    return ((n + m - 1) // m) * m


def _compute_vmem_limit():
    """Scoped-VMEM limit to request, derived from the physical capacity when known."""
    try:
        cap = int(pltpu.get_tpu_info().vmem_capacity_bytes)
    except Exception:
        cap = 64 * 1024 * 1024            # conservative fallback (v7x physical)
    return int(min(cap * 3 // 4, 100 * 1024 * 1024))


_VMEM_LIMIT = _compute_vmem_limit()


def _probe_buffered_one():
    """Check whether pipeline_mode=pl.Buffered(1) is accepted by this JAX build."""
    try:
        def k(x_ref, o_ref):
            o_ref[...] = x_ref[...]

        spec = pl.BlockSpec((8, 128), lambda i: (0, 0), pipeline_mode=pl.Buffered(1))
        f = pl.pallas_call(
            k,
            out_shape=jax.ShapeDtypeStruct((8, 128), jnp.float32),
            grid=(2,),
            in_specs=[spec],
            out_specs=pl.BlockSpec((8, 128), lambda i: (0, 0)),
        )
        x = jnp.ones((8, 128), jnp.float32)
        y = jax.block_until_ready(f(x))
        return bool(jnp.array_equal(x, y))
    except Exception:
        return False


_BUFFERED_ONE_OK = _probe_buffered_one()


def _const_spec(shape):
    """BlockSpec for a VMEM-resident constant (weight / bias / LN param).

    Constant index_map keeps it resident across the row grid; single-buffered when the
    running JAX supports Buffered(1) (double-buffering a never-changing block is waste).
    """
    nd = len(shape)
    idx = lambda *args, _nd=nd: (0,) * _nd
    if _BUFFERED_ONE_OK:
        return pl.BlockSpec(shape, idx, pipeline_mode=pl.Buffered(1))
    return pl.BlockSpec(shape, idx)


def _choose_row_block(rows, bytes_per_row, resident_bytes, cap=1024):
    """Largest multiple-of-8 divisor of `rows` that fits the VMEM budget (and <= cap).

    Keeping the block a divisor of `rows` means no padding / partial blocks anywhere.
    The cap is also limited to rows//2 so the grid keeps >=2 steps when possible
    (both v7x TensorCores get work).
    """
    budget = _VMEM_LIMIT - resident_bytes - (2 << 20)
    budget = max(budget, bytes_per_row * 8)
    cap = min(cap, max(budget // max(bytes_per_row, 1), 8))
    cap = min(cap, max(rows // 2, 8))
    cap = max(8, (int(cap) // 8) * 8)
    r8 = rows // 8
    for c in range(min(cap // 8, r8), 0, -1):
        if r8 % c == 0:
            return 8 * c
    return 8


def _ln(x, g, b, eps):
    # Annotated-Transformer LayerNorm: unbiased std (ddof=1), eps added to std.
    # Exact reciprocal (off the MXU critical path; avoids EUP approximation error).
    xf = x.astype(jnp.float32)
    d = xf.shape[-1]
    mean = jnp.mean(xf, axis=-1, keepdims=True)
    var = jnp.sum((xf - mean) ** 2, axis=-1, keepdims=True) * (1.0 / (d - 1))
    inv = 1.0 / (jnp.sqrt(var) + eps)
    return g.astype(jnp.float32) * (xf - mean) * inv + b.astype(jnp.float32)


# ----------------------------- dense Pallas kernels -------------------------- #

def _ln_matmul_kernel(x_ref, g_ref, bn_ref, w_ref, b_ref, o_ref, *, eps):
    # o = LayerNorm(x) @ w + b        (bf16 operands into the MXU, f32 accumulate)
    xn = _ln(x_ref[...], g_ref[...], bn_ref[...], eps).astype(w_ref.dtype)
    o_ref[...] = (jnp.dot(xn, w_ref[...], preferred_element_type=jnp.float32)
                  + b_ref[...].astype(jnp.float32)).astype(o_ref.dtype)


def _matmul_kernel(x_ref, w_ref, b_ref, o_ref):
    # o = x @ w + b
    o_ref[...] = (jnp.dot(x_ref[...], w_ref[...], preferred_element_type=jnp.float32)
                  + b_ref[...].astype(jnp.float32)).astype(o_ref.dtype)


def _matmul_residual_kernel(x_ref, res_ref, w_ref, b_ref, o_ref):
    # o = res + x @ w + b    (residual add fused into the output projection)
    y = (jnp.dot(x_ref[...], w_ref[...], preferred_element_type=jnp.float32)
         + b_ref[...].astype(jnp.float32))
    o_ref[...] = (res_ref[...].astype(jnp.float32) + y).astype(o_ref.dtype)


def _ln_ffn_residual_kernel(x_ref, g_ref, bn_ref, w1_ref, b1_ref, w2_ref, b2_ref,
                            o_ref, *, eps):
    # o = x + W2 @ relu(W1 @ LayerNorm(x) + b1) + b2   (dropout = identity, eval)
    xn = _ln(x_ref[...], g_ref[...], bn_ref[...], eps).astype(w1_ref.dtype)
    hpre = (jnp.dot(xn, w1_ref[...], preferred_element_type=jnp.float32)
            + b1_ref[...].astype(jnp.float32))
    hact = jnp.maximum(hpre, 0.0).astype(w2_ref.dtype)
    y = (jnp.dot(hact, w2_ref[...], preferred_element_type=jnp.float32)
         + b2_ref[...].astype(jnp.float32))
    o_ref[...] = (x_ref[...].astype(jnp.float32) + y).astype(o_ref.dtype)


def _layernorm_kernel(x_ref, g_ref, bn_ref, o_ref, *, eps):
    o_ref[...] = _ln(x_ref[...], g_ref[...], bn_ref[...], eps).astype(o_ref.dtype)


# --------------------------- row-tiled call helper --------------------------- #

def _row_tiled_call(kernel, row_inputs, const_inputs, out_cols, out_dtype, *,
                    f32_cols=0, cap=1024):
    """Grid over row blocks of the leading axis; const_inputs stay VMEM-resident.

    The row block is a divisor of the (already 8-aligned) row count, sized from the
    VMEM budget, so there is never any pad/slice of the slab.
    """
    rows = row_inputs[0].shape[0]
    nbuf = 1 if _BUFFERED_ONE_OK else 2
    resident = nbuf * sum(int(c.size) * c.dtype.itemsize for c in const_inputs)
    # double-buffered bf16 row inputs/outputs (4 B/col) + in-kernel f32 temporaries
    bytes_per_row = (4 * sum(a.shape[1] for a in row_inputs)
                     + 4 * out_cols + 4 * f32_cols)
    blk = _choose_row_block(rows, bytes_per_row, resident, cap)

    in_specs = (
        [pl.BlockSpec((blk, a.shape[1]), lambda i: (i, 0)) for a in row_inputs]
        + [_const_spec(c.shape) for c in const_inputs]
    )
    return pl.pallas_call(
        kernel,
        out_shape=jax.ShapeDtypeStruct((rows, out_cols), out_dtype),
        grid=(rows // blk,),
        in_specs=in_specs,
        out_specs=pl.BlockSpec((blk, out_cols), lambda i: (i, 0)),
        compiler_params=pltpu.CompilerParams(
            dimension_semantics=("parallel",),
            vmem_limit_bytes=_VMEM_LIMIT),
    )(*row_inputs, *const_inputs)


# ------------------------------ kernel wrappers ------------------------------ #

def ln_matmul(x2d, ln, w, b, eps=1e-6):
    D, out_cols = x2d.shape[1], w.shape[1]
    return _row_tiled_call(functools.partial(_ln_matmul_kernel, eps=eps),
                           [x2d], [ln["g"], ln["b"], w, b], out_cols, x2d.dtype,
                           f32_cols=D + out_cols)


def matmul(x2d, w, b):
    out_cols = w.shape[1]
    return _row_tiled_call(_matmul_kernel, [x2d], [w, b], out_cols, x2d.dtype,
                           f32_cols=out_cols)


def matmul_residual(x2d, res2d, w, b):
    out_cols = w.shape[1]
    return _row_tiled_call(_matmul_residual_kernel, [x2d, res2d], [w, b],
                           out_cols, x2d.dtype, f32_cols=out_cols)


def ln_ffn_residual(x2d, ln, p, eps=1e-6):
    D = x2d.shape[1]
    d_ff = p["w1"].shape[1]
    return _row_tiled_call(functools.partial(_ln_ffn_residual_kernel, eps=eps),
                           [x2d],
                           [ln["g"], ln["b"], p["w1"], p["b1"], p["w2"], p["b2"]],
                           D, x2d.dtype, f32_cols=2 * D + 2 * d_ff)


def layernorm2d(x2d, ln, eps=1e-6):
    D = x2d.shape[1]
    return _row_tiled_call(functools.partial(_layernorm_kernel, eps=eps),
                           [x2d], [ln["g"], ln["b"]], D, x2d.dtype, f32_cols=D)


# ------------------------------ attention ------------------------------------ #

def _mha_heads(qs, ks, vs, mask, out_dtype):
    """Per-head attention on VMEM values; q pre-scaled; mask is (1|Tq, Tk) keep-mask."""
    bias = jnp.where(mask > 0, 0.0, -1e9).astype(jnp.float32)   # additive bias, in-kernel
    ctxs = []
    for q, k, v in zip(qs, ks, vs):
        s = jnp.einsum("qd,kd->qk", q, k,
                       preferred_element_type=jnp.float32) + bias
        m = jnp.max(s, axis=-1, keepdims=True)
        p = jnp.exp(s - m)
        p = p * pl.reciprocal(jnp.sum(p, axis=-1, keepdims=True), approx=True)
        ctxs.append(jnp.dot(p.astype(v.dtype), v,
                            preferred_element_type=jnp.float32))
    # Lane-dense (Tq, h*dk = D) context block.
    return jnp.concatenate(ctxs, axis=-1).astype(out_dtype)


def _self_attn_kernel(qkv_ref, mask_ref, o_ref, *, h, scale):
    # One batch element: reads the fused (T, 3D) QKV block, writes a (T, D) context.
    T, D3 = qkv_ref.shape
    D = D3 // 3
    dk = D // h
    x = qkv_ref[...]
    sc = jnp.asarray(scale, x.dtype)                 # fold 1/sqrt(dk) into q (Tq x dk mul)
    qs = [x[:, i * dk:(i + 1) * dk] * sc for i in range(h)]
    ks = [x[:, D + i * dk:D + (i + 1) * dk] for i in range(h)]
    vs = [x[:, 2 * D + i * dk:2 * D + (i + 1) * dk] for i in range(h)]
    o_ref[...] = _mha_heads(qs, ks, vs, mask_ref[0], o_ref.dtype)


def _cross_attn_kernel(q_ref, kv_ref, mask_ref, o_ref, *, h, scale):
    Tq, D = q_ref.shape
    dk = D // h
    q = q_ref[...]
    kv = kv_ref[...]
    sc = jnp.asarray(scale, q.dtype)
    qs = [q[:, i * dk:(i + 1) * dk] * sc for i in range(h)]
    ks = [kv[:, i * dk:(i + 1) * dk] for i in range(h)]
    vs = [kv[:, D + i * dk:D + (i + 1) * dk] for i in range(h)]
    o_ref[...] = _mha_heads(qs, ks, vs, mask_ref[0], o_ref.dtype)


def self_attention(qkv2d, mask, B, T, h):
    # qkv2d: (B*T, 3D) bf16 slab straight from the fused projection -- no HBM
    # reshape/transpose round-trips; mask: (B, 1|T, T) keep-mask broadcast per batch.
    # TODO(synk): flash-style Tk tiling (online softmax over key chunks) for long
    # sequences; at these block sizes the full (T, T) f32 score tile fits VMEM easily.
    D3 = qkv2d.shape[1]
    D = D3 // 3
    Mq, Tk = mask.shape[1], mask.shape[2]
    return pl.pallas_call(
        functools.partial(_self_attn_kernel, h=h, scale=1.0 / math.sqrt(D // h)),
        out_shape=jax.ShapeDtypeStruct((B * T, D), qkv2d.dtype),
        grid=(B,),
        in_specs=[pl.BlockSpec((T, D3), lambda b: (b, 0)),
                  pl.BlockSpec((1, Mq, Tk), lambda b: (b, 0, 0))],
        out_specs=pl.BlockSpec((T, D), lambda b: (b, 0)),
        compiler_params=pltpu.CompilerParams(
            dimension_semantics=("parallel",),
            vmem_limit_bytes=_VMEM_LIMIT),
    )(qkv2d, mask)


def cross_attention(q2d, kv2d, mask, B, Tq, S, h):
    D = q2d.shape[1]
    Mq, Tk = mask.shape[1], mask.shape[2]
    return pl.pallas_call(
        functools.partial(_cross_attn_kernel, h=h, scale=1.0 / math.sqrt(D // h)),
        out_shape=jax.ShapeDtypeStruct((B * Tq, D), q2d.dtype),
        grid=(B,),
        in_specs=[pl.BlockSpec((Tq, D), lambda b: (b, 0)),
                  pl.BlockSpec((S, 2 * D), lambda b: (b, 0)),
                  pl.BlockSpec((1, Mq, Tk), lambda b: (b, 0, 0))],
        out_specs=pl.BlockSpec((Tq, D), lambda b: (b, 0)),
        compiler_params=pltpu.CompilerParams(
            dimension_semantics=("parallel",),
            vmem_limit_bytes=_VMEM_LIMIT),
    )(q2d, kv2d, mask)


# ------------------------------ generator ------------------------------------ #

def _lse_kernel(x_ref, w_ref, b_ref, o_ref, m_sc, l_sc):
    # Online logsumexp over vocab tiles (running max / sum in VMEM scratch).
    j = pl.program_id(1)

    @pl.when(j == 0)
    def _():
        m_sc[...] = jnp.full(m_sc.shape, -jnp.inf, m_sc.dtype)
        l_sc[...] = jnp.zeros(l_sc.shape, l_sc.dtype)

    logits = (jnp.dot(x_ref[...], w_ref[...], preferred_element_type=jnp.float32)
              + b_ref[...].astype(jnp.float32))
    m_new = jnp.maximum(m_sc[...], jnp.max(logits, axis=-1, keepdims=True))
    l_sc[...] = (l_sc[...] * jnp.exp(m_sc[...] - m_new)
                 + jnp.sum(jnp.exp(logits - m_new), axis=-1, keepdims=True))
    m_sc[...] = m_new

    @pl.when(j == pl.num_programs(1) - 1)
    def _():
        o_ref[...] = m_sc[...] + jnp.log(l_sc[...])


def _logsoftmax_kernel(x_ref, lse_ref, w_ref, b_ref, o_ref):
    logits = (jnp.dot(x_ref[...], w_ref[...], preferred_element_type=jnp.float32)
              + b_ref[...].astype(jnp.float32))
    o_ref[...] = (logits - lse_ref[...]).astype(o_ref.dtype)


def generator2d(x2d, p):
    """Linear(d_model, vocab) + log_softmax, vocab-tiled (required on v7x VMEM).

    Two passes that each recompute the (blk, Vt) logits tile on the fly (cheaper in
    HBM traffic than writing raw logits out and re-reading them):
      1) online logsumexp over vocab tiles -> per-row lse,
      2) logits tile - lse, written lane-dense.
    """
    rows, D = x2d.shape
    w, b = p["w"], p["b"]
    V = w.shape[1]
    Vt = V
    if V > 256:
        for cand in (1024, 512, 256, 128):
            if V % cand == 0:
                Vt = cand
                break
    nv = V // Vt

    # Vocab-tiled weight/bias are streamed (double-buffered along the vocab axis).
    resident = 2 * (D * Vt * w.dtype.itemsize + Vt * 4)
    bytes_per_row = 4 * D + 12 * Vt + 16     # bf16 x (dbl), f32 out (dbl), f32 logits tmp
    blk = _choose_row_block(rows, bytes_per_row, resident, cap=512)

    grid = (rows // blk, nv)
    cp = pltpu.CompilerParams(dimension_semantics=("parallel", "arbitrary"),
                              vmem_limit_bytes=_VMEM_LIMIT)
    x_spec = pl.BlockSpec((blk, D), lambda i, j: (i, 0))
    w_spec = pl.BlockSpec((D, Vt), lambda i, j: (0, j))
    b_spec = pl.BlockSpec((1, Vt), lambda i, j: (0, j))
    lse_spec = pl.BlockSpec((blk, 1), lambda i, j: (i, 0))

    lse = pl.pallas_call(
        _lse_kernel,
        out_shape=jax.ShapeDtypeStruct((rows, 1), jnp.float32),
        grid=grid,
        in_specs=[x_spec, w_spec, b_spec],
        out_specs=lse_spec,
        scratch_shapes=[pltpu.VMEM((blk, 1), jnp.float32),
                        pltpu.VMEM((blk, 1), jnp.float32)],
        compiler_params=cp,
    )(x2d, w, b)

    return pl.pallas_call(
        _logsoftmax_kernel,
        out_shape=jax.ShapeDtypeStruct((rows, V), jnp.float32),
        grid=grid,
        in_specs=[x_spec, lse_spec, w_spec, b_spec],
        out_specs=pl.BlockSpec((blk, Vt), lambda i, j: (i, j)),
        compiler_params=cp,
    )(x2d, lse, w, b)


# ------------------------------ model glue ---------------------------------- #

def positional_encoding(max_len, d_model):
    pos = jnp.arange(max_len, dtype=jnp.float32)[:, None]
    div = jnp.exp(jnp.arange(0, d_model, 2, dtype=jnp.float32)
                  * (-math.log(10000.0) / d_model))
    pe = jnp.zeros((max_len, d_model), dtype=jnp.float32)
    pe = pe.at[:, 0::2].set(jnp.sin(pos * div))
    pe = pe.at[:, 1::2].set(jnp.cos(pos * div))
    return pe


def embed(ids, table, pe, d_model):
    # TODO(synk): embedding gather + positional-encoding add kept in plain JAX (glue).
    x = jnp.take(table, ids, axis=0).astype(jnp.float32) * math.sqrt(d_model)
    x = x + pe[None, : ids.shape[1], :]
    return x.astype(table.dtype)


def self_attention_block(x2d, ln, p, mask, B, T, h):
    qkv2d = ln_matmul(x2d, ln, p["wqkv"], p["bqkv"])          # (B*T, 3D)
    ctx2d = self_attention(qkv2d, mask, B, T, h)              # (B*T, D) lane-dense
    return matmul_residual(ctx2d, x2d, p["wo"], p["bo"])


def cross_attention_block(x2d, ln, p, mem2d, mask, B, Tq, S, h):
    q2d = ln_matmul(x2d, ln, p["wq"], p["bq"])                # (B*Tq, D)
    kv2d = matmul(mem2d, p["wkv"], p["bkv"])                  # (B*S, 2D)
    ctx2d = cross_attention(q2d, kv2d, mask, B, Tq, S, h)     # (B*Tq, D)
    return matmul_residual(ctx2d, x2d, p["wo"], p["bo"])


def encode(params, src, src_mask, pe, h, d_model):
    B, S = src.shape
    x2d = embed(src, params["src_emb"], pe, d_model).reshape(B * S, d_model)
    for layer in params["encoder"]["layers"]:      # pre-norm SublayerConnection
        x2d = self_attention_block(x2d, layer["ln1"], layer["attn"], src_mask, B, S, h)
        x2d = ln_ffn_residual(x2d, layer["ln2"], layer["ffn"])
    return layernorm2d(x2d, params["encoder"]["norm"])        # (B*S, D)


def decode(params, mem2d, src_mask, tgt, tgt_mask, pe, h, d_model, S):
    B, T = tgt.shape
    x2d = embed(tgt, params["tgt_emb"], pe, d_model).reshape(B * T, d_model)
    for layer in params["decoder"]["layers"]:
        x2d = self_attention_block(x2d, layer["ln1"], layer["self_attn"],
                                   tgt_mask, B, T, h)
        x2d = cross_attention_block(x2d, layer["ln2"], layer["cross_attn"],
                                    mem2d, src_mask, B, T, S, h)
        x2d = ln_ffn_residual(x2d, layer["ln3"], layer["ffn"])
    return layernorm2d(x2d, params["decoder"]["norm"])        # (B*T, D)


def _prep_mask(mask, q_old, q_new, k_old, k_new):
    """Cast to f32 and extend with zeros (=masked) for sequence padding."""
    m = jnp.asarray(mask, jnp.float32)
    if m.shape[1] != 1 and q_new != q_old:
        m = jnp.pad(m, ((0, 0), (0, q_new - q_old), (0, 0)))
    if k_new != k_old:
        m = jnp.pad(m, ((0, 0), (0, 0), (0, k_new - k_old)))
    return m


def encoder_decoder_forward(params, src, tgt, src_mask, tgt_mask, *, h, d_model, pe):
    B, S0 = src.shape
    T0 = tgt.shape[1]
    # Pad sequence lengths once to a multiple of 8 (sublane); padded keys are masked
    # out, padded query rows are sliced off at the very end.
    S, T = _round_up(S0, 8), _round_up(T0, 8)
    if S != S0:
        src = jnp.pad(src, ((0, 0), (0, S - S0)))
    if T != T0:
        tgt = jnp.pad(tgt, ((0, 0), (0, T - T0)))
    src_mask_p = _prep_mask(src_mask, S0, S, S0, S)   # (B, 1|S, S)
    tgt_mask_p = _prep_mask(tgt_mask, T0, T, T0, T)   # (B, 1|T, T)

    mem2d = encode(params, src, src_mask_p, pe, h, d_model)           # (B*S, D)
    out2d = decode(params, mem2d, src_mask_p, tgt, tgt_mask_p, pe, h, d_model, S)
    logp = generator2d(out2d, params["generator"])                    # (B*T, V) f32
    logp = logp.reshape(B, T, -1)
    return logp[:, :T0]

# TODO(synk): get_predictions() greedy argmax decode loop is host-side control flow
# (python loop over max_len + EOS scan); not expressed as a kernel.


# ------------------------------ parameters ---------------------------------- #

def init_params(key, *, d_model, d_ff, h, n_layers, src_vocab, tgt_vocab,
                dtype=jnp.bfloat16):
    keys = iter(jax.random.split(key, 256))

    def w(shape, scale=0.02):
        # bf16 weights: MXU-native, half the HBM/VMEM footprint of f32.
        return (jax.random.normal(next(keys), shape, jnp.float32) * scale).astype(dtype)

    def zeros(shape):
        return jnp.zeros(shape, jnp.float32)     # biases / LN params stay f32 (tiny)

    def self_attn_p():   # fused QKV projection
        return dict(wqkv=w((d_model, 3 * d_model)), bqkv=zeros((1, 3 * d_model)),
                    wo=w((d_model, d_model)), bo=zeros((1, d_model)))

    def cross_attn_p():  # Q from decoder stream, fused KV from encoder memory
        return dict(wq=w((d_model, d_model)), bq=zeros((1, d_model)),
                    wkv=w((d_model, 2 * d_model)), bkv=zeros((1, 2 * d_model)),
                    wo=w((d_model, d_model)), bo=zeros((1, d_model)))

    def ffn_p():
        return dict(w1=w((d_model, d_ff)), b1=zeros((1, d_ff)),
                    w2=w((d_ff, d_model)), b2=zeros((1, d_model)))

    def ln_p():
        return dict(g=jnp.ones((1, d_model), jnp.float32), b=zeros((1, d_model)))

    enc_layers = [dict(attn=self_attn_p(), ffn=ffn_p(), ln1=ln_p(), ln2=ln_p())
                  for _ in range(n_layers)]
    dec_layers = [dict(self_attn=self_attn_p(), cross_attn=cross_attn_p(),
                       ffn=ffn_p(), ln1=ln_p(), ln2=ln_p(), ln3=ln_p())
                  for _ in range(n_layers)]
    return dict(
        src_emb=w((src_vocab, d_model), 1.0),
        tgt_emb=w((tgt_vocab, d_model), 1.0),
        encoder=dict(layers=enc_layers, norm=ln_p()),
        decoder=dict(layers=dec_layers, norm=ln_p()),
        generator=dict(w=w((d_model, tgt_vocab)), b=zeros((1, tgt_vocab))),
    )


# --------------------------------- main -------------------------------------- #

if __name__ == "__main__":
    key = jax.random.PRNGKey(0)
    B, S, T = 2, 8, 8
    d_model, d_ff, h, n_layers = 32, 64, 4, 2
    src_vocab = tgt_vocab = 16

    kp, ks, kt = jax.random.split(key, 3)
    params = init_params(kp, d_model=d_model, d_ff=d_ff, h=h, n_layers=n_layers,
                         src_vocab=src_vocab, tgt_vocab=tgt_vocab)
    pe = positional_encoding(64, d_model)

    src = jax.random.randint(ks, (B, S), 0, src_vocab, dtype=jnp.int32)
    tgt = jax.random.randint(kt, (B, T), 0, tgt_vocab, dtype=jnp.int32)
    src_mask = jnp.ones((B, 1, S), dtype=jnp.float32)
    tgt_mask = jnp.broadcast_to(
        jnp.tril(jnp.ones((T, T), dtype=jnp.float32))[None], (B, T, T))

    fwd = jax.jit(functools.partial(encoder_decoder_forward,
                                    h=h, d_model=d_model, pe=pe))
    logprobs = fwd(params, src, tgt, src_mask, tgt_mask)
    jax.block_until_ready(logprobs)
    assert logprobs.shape == (B, T, tgt_vocab)
    assert bool(jnp.all(jnp.isfinite(logprobs)))
    print("KERNEL_OK")
</pallas_src>

<mosaic_0001>
module attributes {stable_mosaic.version = 11 : i64} {
  func.func @k(%arg0: i32, %arg1: memref<8x128xf32, #tpu.memory_space<vmem>>, %arg2: memref<8x128xf32, #tpu.memory_space<vmem>>) attributes {dimension_semantics = [#tpu.dimension_semantics<arbitrary>], iteration_bounds = array<i64: 2>, scalar_prefetch = 0 : i64, scratch_operands = 0 : i64, tpu.core_type = #tpu.core_type<tc>, window_params = [{pipeline_mode = #tpu.pipeline_mode<synchronous>, transform_indices = @transform_0, window_bounds = array<i64: 8, 128>}, {pipeline_mode = #tpu.pipeline_mode<synchronous>, transform_indices = @transform_1, window_bounds = array<i64: 8, 128>}]} {
    %c0 = arith.constant 0 : index
    %c0_0 = arith.constant 0 : index
    %0 = vector.load %arg1[%c0, %c0_0] : memref<8x128xf32, #tpu.memory_space<vmem>>, vector<8x128xf32>
    %c0_1 = arith.constant 0 : index
    %c0_2 = arith.constant 0 : index
    %1 = vector.load %arg2[%c0_1, %c0_2] : memref<8x128xf32, #tpu.memory_space<vmem>>, vector<8x128xf32>
    tpu.vector_store %arg2[%c0_1, %c0_2], %0 {strides = array<i32>} : memref<8x128xf32, #tpu.memory_space<vmem>>, vector<8x128xf32>,
    return
  }
  func.func @transform_0(%arg0: i32) -> (i32, i32) {
    %c0_i32 = arith.constant 0 : i32
    %c0_i32_0 = arith.constant 0 : i32
    %c0_i32_1 = arith.constant 0 : i32
    return %c0_i32, %c0_i32_0 : i32, i32
  }
  func.func @transform_1(%arg0: i32) -> (i32, i32) {
    %c0_i32 = arith.constant 0 : i32
    %c0_i32_0 = arith.constant 0 : i32
    %c0_i32_1 = arith.constant 0 : i32
    return %c0_i32, %c0_i32_0 : i32, i32
  }
}

module attributes {stable_mosaic.version = 11 : i64} {
  func.func @_self_attn_kernel(%arg0: i32, %arg1: memref<8x96xbf16, #tpu.memory_space<vmem>>, %arg2: memref<1x1x8xf32, #tpu.memory_space<vmem>>, %arg3: memref<8x32xbf16, #tpu.memory_space<vmem>>) attributes {dimension_semantics = [#tpu.dimension_semantics<parallel>], iteration_bounds = array<i64: 2>, scalar_prefetch = 0 : i64, scratch_operands = 0 : i64, tpu.core_type = #tpu.core_type<tc>, window_params = [{transform_indices = @transform_0, window_bounds = array<i64: 8, 96>}, {transform_indices = @transform_1, window_bounds = array<i64: 1, 1, 8>}, {transform_indices = @transform_2, window_bounds = array<i64: 8, 32>}]} {
    %c0 = arith.constant 0 : index
    %c0_0 = arith.constant 0 : index
    %0 = vector.load %arg1[%c0, %c0_0] : memref<8x96xbf16, #tpu.memory_space<vmem>>, vector<8x96xbf16>
    %1 = vector.extract_strided_slice %0 {offsets = [0, 0], sizes = [8, 8], strides = [1, 1]} : vector<8x96xbf16> to vector<8x8xbf16>
    %cst = arith.constant 3.535160e-01 : bf16
    %2 = vector.broadcast %cst : bf16 to vector<8x8xbf16>
    %3 = arith.mulf %1, %2 : vector<8x8xbf16>
    %4 = vector.extract_strided_slice %0 {offsets = [0, 8], sizes = [8, 8], strides = [1, 1]} : vector<8x96xbf16> to vector<8x8xbf16>
    %cst_1 = arith.constant 3.535160e-01 : bf16
    %5 = vector.broadcast %cst_1 : bf16 to vector<8x8xbf16>
    %6 = arith.mulf %4, %5 : vector<8x8xbf16>
    %7 = vector.extract_strided_slice %0 {offsets = [0, 16], sizes = [8, 8], strides = [1, 1]} : vector<8x96xbf16> to vector<8x8xbf16>
    %cst_2 = arith.constant 3.535160e-01 : bf16
    %8 = vector.broadcast %cst_2 : bf16 to vector<8x8xbf16>
    %9 = arith.mulf %7, %8 : vector<8x8xbf16>
    %10 = vector.extract_strided_slice %0 {offsets = [0, 24], sizes = [8, 8], strides = [1, 1]} : vector<8x96xbf16> to vector<8x8xbf16>
    %cst_3 = arith.constant 3.535160e-01 : bf16
    %11 = vector.broadcast %cst_3 : bf16 to vector<8x8xbf16>
    %12 = arith.mulf %10, %11 : vector<8x8xbf16>
    %13 = vector.extract_strided_slice %0 {offsets = [0, 32], sizes = [8, 8], strides = [1, 1]} : vector<8x96xbf16> to vector<8x8xbf16>
    %14 = vector.extract_strided_slice %0 {offsets = [0, 40], sizes = [8, 8], strides = [1, 1]} : vector<8x96xbf16> to vector<8x8xbf16>
    %15 = vector.extract_strided_slice %0 {offsets = [0, 48], sizes = [8, 8], strides = [1, 1]} : vector<8x96xbf16> to vector<8x8xbf16>
    %16 = vector.extract_strided_slice %0 {offsets = [0, 56], sizes = [8, 8], strides = [1, 1]} : vector<8x96xbf16> to vector<8x8xbf16>
    %17 = vector.extract_strided_slice %0 {offsets = [0, 64], sizes = [8, 8], strides = [1, 1]} : vector<8x96xbf16> to vector<8x8xbf16>
    %18 = vector.extract_strided_slice %0 {offsets = [0, 72], sizes = [8, 8], strides = [1, 1]} : vector<8x96xbf16> to vector<8x8xbf16>
    %19 = vector.extract_strided_slice %0 {offsets = [0, 80], sizes = [8, 8], strides = [1, 1]} : vector<8x96xbf16> to vector<8x8xbf16>
    %20 = vector.extract_strided_slice %0 {offsets = [0, 88], sizes = [8, 8], strides = [1, 1]} : vector<8x96xbf16> to vector<8x8xbf16>
    %c0_4 = arith.constant 0 : index
    %c0_5 = arith.constant 0 : index
    %c0_6 = arith.constant 0 : index
    %21 = vector.load %arg2[%c0_4, %c0_5, %c0_6] : memref<1x1x8xf32, #tpu.memory_space<vmem>>, vector<1x1x8xf32>
    %22 = vector.shape_cast %21 : vector<1x1x8xf32> to vector<1x8xf32>
    %cst_7 = arith.constant 0.000000e+00 : f32
    %23 = vector.broadcast %cst_7 : f32 to vector<1x8xf32>
    %24 = arith.cmpf ogt, %22, %23 : vector<1x8xf32>
    %cst_8 = arith.constant 0.000000e+00 : f32
    %cst_9 = arith.constant -1.000000e+09 : f32
    %25 = vector.broadcast %cst_8 : f32 to vector<1x8xf32>
    %26 = vector.broadcast %cst_9 : f32 to vector<1x8xf32>
    %27 = arith.select %24, %25, %26 : vector<1x8xi1>, vector<1x8xf32>
    "tpu.trace_start"() <{level = 10 : i32, message = "qd,kd->qk"}> : () -> ()
    %cst_10 = arith.constant dense<0.000000e+00> : vector<8x8xf32>
    %28 = tpu.matmul %3, %13, %cst_10 {dimension_numbers = #tpu.dot_dimension_numbers<[1], [1], [0], [0], [0, 0, 1, 0], [], []>} : vector<8x8xbf16>, vector<8x8xbf16>, vector<8x8xf32> -> vector<8x8xf32>
    "tpu.trace_stop"() : () -> ()
    %29 = vector.broadcast %27 : vector<1x8xf32> to vector<8x8xf32>
    %30 = arith.addf %28, %29 : vector<8x8xf32>
    %cst_11 = arith.constant dense<0xFF800000> : vector<8xf32>
    %31 = vector.multi_reduction <maximumf>, %30, %cst_11 [1] : vector<8x8xf32> to vector<8xf32>
    %32 = vector.shape_cast %31 : vector<8xf32> to vector<8x1xf32>
    %33 = vector.broadcast %32 : vector<8x1xf32> to vector<8x8xf32>
    %34 = arith.subf %30, %33 : vector<8x8xf32>
    %35 = math.exp %34 : vector<8x8xf32>
    %cst_12 = arith.constant dense<0.000000e+00> : vector<8xf32>
    %36 = vector.multi_reduction <add>, %35, %cst_12 [1] : vector<8x8xf32> to vector<8xf32>
    %37 = vector.shape_cast %36 : vector<8xf32> to vector<8x1xf32>
    %38 = tpu.reciprocal %37 {approx = true} : vector<8x1xf32> -> vector<8x1xf32>
    %39 = vector.broadcast %38 : vector<8x1xf32> to vector<8x8xf32>
    %40 = arith.mulf %35, %39 : vector<8x8xf32>
    %41 = arith.truncf %40 : vector<8x8xf32> to vector<8x8xbf16>
    %cst_13 = arith.constant dense<0.000000e+00> : vector<8x8xf32>
    %42 = tpu.matmul %41, %17, %cst_13 {dimension_numbers = #tpu.dot_dimension_numbers<[1], [0], [0], [1], [0, 0, 1, 1], [], []>} : vector<8x8xbf16>, vector<8x8xbf16>, vector<8x8xf32> -> vector<8x8xf32>
    "tpu.trace_start"() <{level = 10 : i32, message = "qd,kd->qk"}> : () -> ()
    %cst_14 = arith.constant dense<0.000000e+00> : vector<8x8xf32>
    %43 = tpu.matmul %6, %14, %cst_14 {dimension_numbers = #tpu.dot_dimension_numbers<[1], [1], [0], [0], [0, 0, 1, 0], [], []>} : vector<8x8xbf16>, vector<8x8xbf16>, vector<8x8xf32> -> vector<8x8xf32>
    "tpu.trace_stop"() : () -> ()
    %44 = vector.broadcast %27 : vector<1x8xf32> to vector<8x8xf32>
    %45 = arith.addf %43, %44 : vector<8x8xf32>
    %cst_15 = arith.constant dense<0xFF800000> : vector<8xf32>
    %46 = vector.multi_reduction <maximumf>, %45, %cst_15 [1] : vector<8x8xf32> to vector<8xf32>
    %47 = vector.shape_cast %46 : vector<8xf32> to vector<8x1xf32>
    %48 = vector.broadcast %47 : vector<8x1xf32> to vector<8x8xf32>
    %49 = arith.subf %45, %48 : vector<8x8xf32>
    %50 = math.exp %49 : vector<8x8xf32>
    %cst_16 = arith.constant dense<0.000000e+00> : vector<8xf32>
    %51 = vector.multi_reduction <add>, %50, %cst_16 [1] : vector<8x8xf32> to vector<8xf32>
    %52 = vector.shape_cast %51 : vector<8xf32> to vector<8x1xf32>
    %53 = tpu.reciprocal %52 {approx = true} : vector<8x1xf32> -> vector<8x1xf32>
    %54 = vector.broadcast %53 : vector<8x1xf32> to vector<8x8xf32>
    %55 = arith.mulf %50, %54 : vector<8x8xf32>
    %56 = arith.truncf %55 : vector<8x8xf32> to vector<8x8xbf16>
    %cst_17 = arith.constant dense<0.000000e+00> : vector<8x8xf32>
    %57 = tpu.matmul %56, %18, %cst_17 {dimension_numbers = #tpu.dot_dimension_numbers<[1], [0], [0], [1], [0, 0, 1, 1], [], []>} : vector<8x8xbf16>, vector<8x8xbf16>, vector<8x8xf32> -> vector<8x8xf32>
    "tpu.trace_start"() <{level = 10 : i32, message = "qd,kd->qk"}> : () -> ()
    %cst_18 = arith.constant dense<0.000000e+00> : vector<8x8xf32>
    %58 = tpu.matmul %9, %15, %cst_18 {dimension_numbers = #tpu.dot_dimension_numbers<[1], [1], [0], [0], [0, 0, 1, 0], [], []>} : vector<8x8xbf16>, vector<8x8xbf16>, vector<8x8xf32> -> vector<8x8xf32>
    "tpu.trace_stop"() : () -> ()
    %59 = vector.broadcast %27 : vector<1x8xf32> to vector<8x8xf32>
    %60 = arith.addf %58, %59 : vector<8x8xf32>
    %cst_19 = arith.constant dense<0xFF800000> : vector<8xf32>
    %61 = vector.multi_reduction <maximumf>, %60, %cst_19 [1] : vector<8x8xf32> to vector<8xf32>
    %62 = vector.shape_cast %61 : vector<8xf32> to vector<8x1xf32>
    %63 = vector.broadcast %62 : vector<8x1xf32> to vector<8x8xf32>
    %64 = arith.subf %60, %63 : vector<8x8xf32>
    %65 = math.exp %64 : vector<8x8xf32>
    %cst_20 = arith.constant dense<0.000000e+00> : vector<8xf32>
    %66 = vector.multi_reduction <add>, %65, %cst_20 [1] : vector<8x8xf32> to vector<8xf32>
    %67 = vector.shape_cast %66 : vector<8xf32> to vector<8x1xf32>
    %68 = tpu.reciprocal %67 {approx = true} : vector<8x1xf32> -> vector<8x1xf32>
    %69 = vector.broadcast %68 : vector<8x1xf32> to vector<8x8xf32>
    %70 = arith.mulf %65, %69 : vector<8x8xf32>
    %71 = arith.truncf %70 : vector<8x8xf32> to vector<8x8xbf16>
    %cst_21 = arith.constant dense<0.000000e+00> : vector<8x8xf32>
    %72 = tpu.matmul %71, %19, %cst_21 {dimension_numbers = #tpu.dot_dimension_numbers<[1], [0], [0], [1], [0, 0, 1, 1], [], []>} : vector<8x8xbf16>, vector<8x8xbf16>, vector<8x8xf32> -> vector<8x8xf32>
    "tpu.trace_start"() <{level = 10 : i32, message = "qd,kd->qk"}> : () -> ()
    %cst_22 = arith.constant dense<0.000000e+00> : vector<8x8xf32>
    %73 = tpu.matmul %12, %16, %cst_22 {dimension_numbers = #tpu.dot_dimension_numbers<[1], [1], [0], [0], [0, 0, 1, 0], [], []>} : vector<8x8xbf16>, vector<8x8xbf16>, vector<8x8xf32> -> vector<8x8xf32>
    "tpu.trace_stop"() : () -> ()
    %74 = vector.broadcast %27 : vector<1x8xf32> to vector<8x8xf32>
    %75 = arith.addf %73, %74 : vector<8x8xf32>
    %cst_23 = arith.constant dense<0xFF800000> : vector<8xf32>
    %76 = vector.multi_reduction <maximumf>, %75, %cst_23 [1] : vector<8x8xf32> to vector<8xf32>
    %77 = vector.shape_cast %76 : vector<8xf32> to vector<8x1xf32>
    %78 = vector.broadcast %77 : vector<8x1xf32> to vector<8x8xf32>
    %79 = arith.subf %75, %78 : vector<8x8xf32>
    %80 = math.exp %79 : vector<8x8xf32>
    %cst_24 = arith.constant dense<0.000000e+00> : vector<8xf32>
    %81 = vector.multi_reduction <add>, %80, %cst_24 [1] : vector<8x8xf32> to vector<8xf32>
    %82 = vector.shape_cast %81 : vector<8xf32> to vector<8x1xf32>
    %83 = tpu.reciprocal %82 {approx = true} : vector<8x1xf32> -> vector<8x1xf32>
    %84 = vector.broadcast %83 : vector<8x1xf32> to vector<8x8xf32>
    %85 = arith.mulf %80, %84 : vector<8x8xf32>
    %86 = arith.truncf %85 : vector<8x8xf32> to vector<8x8xbf16>
    %cst_25 = arith.constant dense<0.000000e+00> : vector<8x8xf32>
    %87 = tpu.matmul %86, %20, %cst_25 {dimension_numbers = #tpu.dot_dimension_numbers<[1], [0], [0], [1], [0, 0, 1, 1], [], []>} : vector<8x8xbf16>, vector<8x8xbf16>, vector<8x8xf32> -> vector<8x8xf32>
    %88 = tpu.concatenate %42, %57, %72, %87 in 1 : vector<8x8xf32>, vector<8x8xf32>, vector<8x8xf32>, vector<8x8xf32> -> vector<8x32xf32>
    %89 = arith.truncf %88 : vector<8x32xf32> to vector<8x32xbf16>
    %c0_26 = arith.constant 0 : index
    %c0_27 = arith.constant 0 : index
    %90 = vector.load %arg3[%c0_26, %c0_27] : memref<8x32xbf16, #tpu.memory_space<vmem>>, vector<8x32xbf16>
    tpu.vector_store %arg3[%c0_26, %c0_27], %89 {strides = array<i32>} : memref<8x32xbf16, #tpu.memory_space<vmem>>, vector<8x32xbf16>,
    return
  }
  func.func @transform_0(%arg0: i32) -> (i32, i32) {
    %c0_i32 = arith.constant 0 : i32
    %c0_i32_0 = arith.constant 0 : i32
    return %arg0, %c0_i32 : i32, i32
  }
  func.func @transform_1(%arg0: i32) -> (i32, i32, i32) {
    %c0_i32 = arith.constant 0 : i32
    %c0_i32_0 = arith.constant 0 : i32
    %c0_i32_1 = arith.constant 0 : i32
    return %arg0, %c0_i32, %c0_i32_0 : i32, i32, i32
  }
  func.func @transform_2(%arg0: i32) -> (i32, i32) {
    %c0_i32 = arith.constant 0 : i32
    %c0_i32_0 = arith.constant 0 : i32
    return %arg0, %c0_i32 : i32, i32
  }
}

module attributes {stable_mosaic.version = 11 : i64} {
  func.func @_ln_matmul_kernel(%arg0: i32, %arg1: memref<8x32xbf16, #tpu.memory_space<vmem>>, %arg2: memref<1x32xf32, #tpu.memory_space<vmem>>, %arg3: memref<1x32xf32, #tpu.memory_space<vmem>>, %arg4: memref<32x96xbf16, #tpu.memory_space<vmem>>, %arg5: memref<1x96xf32, #tpu.memory_space<vmem>>, %arg6: memref<8x96xbf16, #tpu.memory_space<vmem>>) attributes {dimension_semantics = [#tpu.dimension_semantics<parallel>], iteration_bounds = array<i64: 2>, scalar_prefetch = 0 : i64, scratch_operands = 0 : i64, tpu.core_type = #tpu.core_type<tc>, window_params = [{transform_indices = @transform_0, window_bounds = array<i64: 8, 32>}, {pipeline_mode = #tpu.pipeline_mode<synchronous>, transform_indices = @transform_1, window_bounds = array<i64: 1, 32>}, {pipeline_mode = #tpu.pipeline_mode<synchronous>, transform_indices = @transform_2, window_bounds = array<i64: 1, 32>}, {pipeline_mode = #tpu.pipeline_mode<synchronous>, transform_indices = @transform_3, window_bounds = array<i64: 32, 96>}, {pipeline_mode = #tpu.pipeline_mode<synchronous>, transform_indices = @transform_4, window_bounds = array<i64: 1, 96>}, {transform_indices = @transform_5, window_bounds = array<i64: 8, 96>}]} {
    %c0 = arith.constant 0 : index
    %c0_0 = arith.constant 0 : index
    %0 = vector.load %arg1[%c0, %c0_0] : memref<8x32xbf16, #tpu.memory_space<vmem>>, vector<8x32xbf16>
    %c0_1 = arith.constant 0 : index
    %c0_2 = arith.constant 0 : index
    %1 = vector.load %arg2[%c0_1, %c0_2] : memref<1x32xf32, #tpu.memory_space<vmem>>, vector<1x32xf32>
    %c0_3 = arith.constant 0 : index
    %c0_4 = arith.constant 0 : index
    %2 = vector.load %arg3[%c0_3, %c0_4] : memref<1x32xf32, #tpu.memory_space<vmem>>, vector<1x32xf32>
    %3 = arith.extf %0 : vector<8x32xbf16> to vector<8x32xf32>
    %cst = arith.constant dense<0.000000e+00> : vector<8xf32>
    %4 = vector.multi_reduction <add>, %3, %cst [1] : vector<8x32xf32> to vector<8xf32>
    %5 = vector.shape_cast %4 : vector<8xf32> to vector<8x1xf32>
    %cst_5 = arith.constant 3.200000e+01 : f32
    %6 = vector.broadcast %cst_5 : f32 to vector<8x1xf32>
    %7 = arith.divf %5, %6 : vector<8x1xf32>
    %8 = vector.broadcast %7 : vector<8x1xf32> to vector<8x32xf32>
    %9 = arith.subf %3, %8 : vector<8x32xf32>
    %10 = arith.mulf %9, %9 : vector<8x32xf32>
    %cst_6 = arith.constant dense<0.000000e+00> : vector<8xf32>
    %11 = vector.multi_reduction <add>, %10, %cst_6 [1] : vector<8x32xf32> to vector<8xf32>
    %12 = vector.shape_cast %11 : vector<8xf32> to vector<8x1xf32>
    %cst_7 = arith.constant 0.0322580636 : f32
    %13 = vector.broadcast %cst_7 : f32 to vector<8x1xf32>
    %14 = arith.mulf %12, %13 : vector<8x1xf32>
    %15 = math.sqrt %14 : vector<8x1xf32>
    %cst_8 = arith.constant 9.99999997E-7 : f32
    %16 = vector.broadcast %cst_8 : f32 to vector<8x1xf32>
    %17 = arith.addf %15, %16 : vector<8x1xf32>
    %cst_9 = arith.constant 1.000000e+00 : f32
    %18 = vector.broadcast %cst_9 : f32 to vector<8x1xf32>
    %19 = arith.divf %18, %17 : vector<8x1xf32>
    %20 = vector.broadcast %7 : vector<8x1xf32> to vector<8x32xf32>
    %21 = arith.subf %3, %20 : vector<8x32xf32>
    %22 = vector.broadcast %1 : vector<1x32xf32> to vector<8x32xf32>
    %23 = arith.mulf %22, %21 : vector<8x32xf32>
    %24 = vector.broadcast %19 : vector<8x1xf32> to vector<8x32xf32>
    %25 = arith.mulf %23, %24 : vector<8x32xf32>
    %26 = vector.broadcast %2 : vector<1x32xf32> to vector<8x32xf32>
    %27 = arith.addf %25, %26 : vector<8x32xf32>
    %28 = arith.truncf %27 : vector<8x32xf32> to vector<8x32xbf16>
    %c0_10 = arith.constant 0 : index
    %c0_11 = arith.constant 0 : index
    %29 = vector.load %arg4[%c0_10, %c0_11] : memref<32x96xbf16, #tpu.memory_space<vmem>>, vector<32x96xbf16>
    %cst_12 = arith.constant dense<0.000000e+00> : vector<8x96xf32>
    %30 = tpu.matmul %28, %29, %cst_12 {dimension_numbers = #tpu.dot_dimension_numbers<[1], [0], [0], [1], [0, 0, 1, 1], [], []>} : vector<8x32xbf16>, vector<32x96xbf16>, vector<8x96xf32> -> vector<8x96xf32>
    %c0_13 = arith.constant 0 : index
    %c0_14 = arith.constant 0 : index
    %31 = vector.load %arg5[%c0_13, %c0_14] : memref<1x96xf32, #tpu.memory_space<vmem>>, vector<1x96xf32>
    %32 = vector.broadcast %31 : vector<1x96xf32> to vector<8x96xf32>
    %33 = arith.addf %30, %32 : vector<8x96xf32>
    %34 = arith.truncf %33 : vector<8x96xf32> to vector<8x96xbf16>
    %c0_15 = arith.constant 0 : index
    %c0_16 = arith.constant 0 : index
    %35 = vector.load %arg6[%c0_15, %c0_16] : memref<8x96xbf16, #tpu.memory_space<vmem>>, vector<8x96xbf16>
    tpu.vector_store %arg6[%c0_15, %c0_16], %34 {strides = array<i32>} : memref<8x96xbf16, #tpu.memory_space<vmem>>, vector<8x96xbf16>,
    return
  }
  func.func @transform_0(%arg0: i32) -> (i32, i32) {
    %c0_i32 = arith.constant 0 : i32
    %c0_i32_0 = arith.constant 0 : i32
    return %arg0, %c0_i32 : i32, i32
  }
  func.func @transform_1(%arg0: i32) -> (i32, i32) {
    %c0_i32 = arith.constant 0 : i32
    %c0_i32_0 = arith.constant 0 : i32
    %c0_i32_1 = arith.constant 0 : i32
    return %c0_i32, %c0_i32_0 : i32, i32
  }
  func.func @transform_2(%arg0: i32) -> (i32, i32) {
    %c0_i32 = arith.constant 0 : i32
    %c0_i32_0 = arith.constant 0 : i32
    %c0_i32_1 = arith.constant 0 : i32
    return %c0_i32, %c0_i32_0 : i32, i32
  }
  func.func @transform_3(%arg0: i32) -> (i32, i32) {
    %c0_i32 = arith.constant 0 : i32
    %c0_i32_0 = arith.constant 0 : i32
    %c0_i32_1 = arith.constant 0 : i32
    return %c0_i32, %c0_i32_0 : i32, i32
  }
  func.func @transform_4(%arg0: i32) -> (i32, i32) {
    %c0_i32 = arith.constant 0 : i32
    %c0_i32_0 = arith.constant 0 : i32
    %c0_i32_1 = arith.constant 0 : i32
    return %c0_i32, %c0_i32_0 : i32, i32
  }
  func.func @transform_5(%arg0: i32) -> (i32, i32) {
    %c0_i32 = arith.constant 0 : i32
    %c0_i32_0 = arith.constant 0 : i32
    return %arg0, %c0_i32 : i32, i32
  }
}

module attributes {stable_mosaic.version = 11 : i64} {
  func.func @_matmul_residual_kernel(%arg0: i32, %arg1: memref<8x32xbf16, #tpu.memory_space<vmem>>, %arg2: memref<8x32xbf16, #tpu.memory_space<vmem>>, %arg3: memref<32x32xbf16, #tpu.memory_space<vmem>>, %arg4: memref<1x32xf32, #tpu.memory_space<vmem>>, %arg5: memref<8x32xbf16, #tpu.memory_space<vmem>>) attributes {dimension_semantics = [#tpu.dimension_semantics<parallel>], iteration_bounds = array<i64: 2>, scalar_prefetch = 0 : i64, scratch_operands = 0 : i64, tpu.core_type = #tpu.core_type<tc>, window_params = [{transform_indices = @transform_0, window_bounds = array<i64: 8, 32>}, {transform_indices = @transform_1, window_bounds = array<i64: 8, 32>}, {pipeline_mode = #tpu.pipeline_mode<synchronous>, transform_indices = @transform_2, window_bounds = array<i64: 32, 32>}, {pipeline_mode = #tpu.pipeline_mode<synchronous>, transform_indices = @transform_3, window_bounds = array<i64: 1, 32>}, {transform_indices = @transform_4, window_bounds = array<i64: 8, 32>}]} {
    %c0 = arith.constant 0 : index
    %c0_0 = arith.constant 0 : index
    %0 = vector.load %arg1[%c0, %c0_0] : memref<8x32xbf16, #tpu.memory_space<vmem>>, vector<8x32xbf16>
    %c0_1 = arith.constant 0 : index
    %c0_2 = arith.constant 0 : index
    %1 = vector.load %arg3[%c0_1, %c0_2] : memref<32x32xbf16, #tpu.memory_space<vmem>>, vector<32x32xbf16>
    %cst = arith.constant dense<0.000000e+00> : vector<8x32xf32>
    %2 = tpu.matmul %0, %1, %cst {dimension_numbers = #tpu.dot_dimension_numbers<[1], [0], [0], [1], [0, 0, 1, 1], [], []>} : vector<8x32xbf16>, vector<32x32xbf16>, vector<8x32xf32> -> vector<8x32xf32>
    %c0_3 = arith.constant 0 : index
    %c0_4 = arith.constant 0 : index
    %3 = vector.load %arg4[%c0_3, %c0_4] : memref<1x32xf32, #tpu.memory_space<vmem>>, vector<1x32xf32>
    %4 = vector.broadcast %3 : vector<1x32xf32> to vector<8x32xf32>
    %5 = arith.addf %2, %4 : vector<8x32xf32>
    %c0_5 = arith.constant 0 : index
    %c0_6 = arith.constant 0 : index
    %6 = vector.load %arg2[%c0_5, %c0_6] : memref<8x32xbf16, #tpu.memory_space<vmem>>, vector<8x32xbf16>
    %7 = arith.extf %6 : vector<8x32xbf16> to vector<8x32xf32>
    %8 = arith.addf %7, %5 : vector<8x32xf32>
    %9 = arith.truncf %8 : vector<8x32xf32> to vector<8x32xbf16>
    %c0_7 = arith.constant 0 : index
    %c0_8 = arith.constant 0 : index
    %10 = vector.load %arg5[%c0_7, %c0_8] : memref<8x32xbf16, #tpu.memory_space<vmem>>, vector<8x32xbf16>
    tpu.vector_store %arg5[%c0_7, %c0_8], %9 {strides = array<i32>} : memref<8x32xbf16, #tpu.memory_space<vmem>>, vector<8x32xbf16>,
    return
  }
  func.func @transform_0(%arg0: i32) -> (i32, i32) {
    %c0_i32 = arith.constant 0 : i32
    %c0_i32_0 = arith.constant 0 : i32
    return %arg0, %c0_i32 : i32, i32
  }
  func.func @transform_1(%arg0: i32) -> (i32, i32) {
    %c0_i32 = arith.constant 0 : i32
    %c0_i32_0 = arith.constant 0 : i32
    return %arg0, %c0_i32 : i32, i32
  }
  func.func @transform_2(%arg0: i32) -> (i32, i32) {
    %c0_i32 = arith.constant 0 : i32
    %c0_i32_0 = arith.constant 0 : i32
    %c0_i32_1 = arith.constant 0 : i32
    return %c0_i32, %c0_i32_0 : i32, i32
  }
  func.func @transform_3(%arg0: i32) -> (i32, i32) {
    %c0_i32 = arith.constant 0 : i32
    %c0_i32_0 = arith.constant 0 : i32
    %c0_i32_1 = arith.constant 0 : i32
    return %c0_i32, %c0_i32_0 : i32, i32
  }
  func.func @transform_4(%arg0: i32) -> (i32, i32) {
    %c0_i32 = arith.constant 0 : i32
    %c0_i32_0 = arith.constant 0 : i32
    return %arg0, %c0_i32 : i32, i32
  }
}

module attributes {stable_mosaic.version = 11 : i64} {
  func.func @_ln_ffn_residual_kernel(%arg0: i32, %arg1: memref<8x32xbf16, #tpu.memory_space<vmem>>, %arg2: memref<1x32xf32, #tpu.memory_space<vmem>>, %arg3: memref<1x32xf32, #tpu.memory_space<vmem>>, %arg4: memref<32x64xbf16, #tpu.memory_space<vmem>>, %arg5: memref<1x64xf32, #tpu.memory_space<vmem>>, %arg6: memref<64x32xbf16, #tpu.memory_space<vmem>>, %arg7: memref<1x32xf32, #tpu.memory_space<vmem>>, %arg8: memref<8x32xbf16, #tpu.memory_space<vmem>>) attributes {dimension_semantics = [#tpu.dimension_semantics<parallel>], iteration_bounds = array<i64: 2>, scalar_prefetch = 0 : i64, scratch_operands = 0 : i64, tpu.core_type = #tpu.core_type<tc>, window_params = [{transform_indices = @transform_0, window_bounds = array<i64: 8, 32>}, {pipeline_mode = #tpu.pipeline_mode<synchronous>, transform_indices = @transform_1, window_bounds = array<i64: 1, 32>}, {pipeline_mode = #tpu.pipeline_mode<synchronous>, transform_indices = @transform_2, window_bounds = array<i64: 1, 32>}, {pipeline_mode = #tpu.pipeline_mode<synchronous>, transform_indices = @transform_3, window_bounds = array<i64: 32, 64>}, {pipeline_mode = #tpu.pipeline_mode<synchronous>, transform_indices = @transform_4, window_bounds = array<i64: 1, 64>}, {pipeline_mode = #tpu.pipeline_mode<synchronous>, transform_indices = @transform_5, window_bounds = array<i64: 64, 32>}, {pipeline_mode = #tpu.pipeline_mode<synchronous>, transform_indices = @transform_6, window_bounds = array<i64: 1, 32>}, {transform_indices = @transform_7, window_bounds = array<i64: 8, 32>}]} {
    %c0 = arith.constant 0 : index
    %c0_0 = arith.constant 0 : index
    %0 = vector.load %arg1[%c0, %c0_0] : memref<8x32xbf16, #tpu.memory_space<vmem>>, vector<8x32xbf16>
    %c0_1 = arith.constant 0 : index
    %c0_2 = arith.constant 0 : index
    %1 = vector.load %arg2[%c0_1, %c0_2] : memref<1x32xf32, #tpu.memory_space<vmem>>, vector<1x32xf32>
    %c0_3 = arith.constant 0 : index
    %c0_4 = arith.constant 0 : index
    %2 = vector.load %arg3[%c0_3, %c0_4] : memref<1x32xf32, #tpu.memory_space<vmem>>, vector<1x32xf32>
    %3 = arith.extf %0 : vector<8x32xbf16> to vector<8x32xf32>
    %cst = arith.constant dense<0.000000e+00> : vector<8xf32>
    %4 = vector.multi_reduction <add>, %3, %cst [1] : vector<8x32xf32> to vector<8xf32>
    %5 = vector.shape_cast %4 : vector<8xf32> to vector<8x1xf32>
    %cst_5 = arith.constant 3.200000e+01 : f32
    %6 = vector.broadcast %cst_5 : f32 to vector<8x1xf32>
    %7 = arith.divf %5, %6 : vector<8x1xf32>
    %8 = vector.broadcast %7 : vector<8x1xf32> to vector<8x32xf32>
    %9 = arith.subf %3, %8 : vector<8x32xf32>
    %10 = arith.mulf %9, %9 : vector<8x32xf32>
    %cst_6 = arith.constant dense<0.000000e+00> : vector<8xf32>
    %11 = vector.multi_reduction <add>, %10, %cst_6 [1] : vector<8x32xf32> to vector<8xf32>
    %12 = vector.shape_cast %11 : vector<8xf32> to vector<8x1xf32>
    %cst_7 = arith.constant 0.0322580636 : f32
    %13 = vector.broadcast %cst_7 : f32 to vector<8x1xf32>
    %14 = arith.mulf %12, %13 : vector<8x1xf32>
    %15 = math.sqrt %14 : vector<8x1xf32>
    %cst_8 = arith.constant 9.99999997E-7 : f32
    %16 = vector.broadcast %cst_8 : f32 to vector<8x1xf32>
    %17 = arith.addf %15, %16 : vector<8x1xf32>
    %cst_9 = arith.constant 1.000000e+00 : f32
    %18 = vector.broadcast %cst_9 : f32 to vector<8x1xf32>
    %19 = arith.divf %18, %17 : vector<8x1xf32>
    %20 = vector.broadcast %7 : vector<8x1xf32> to vector<8x32xf32>
    %21 = arith.subf %3, %20 : vector<8x32xf32>
    %22 = vector.broadcast %1 : vector<1x32xf32> to vector<8x32xf32>
    %23 = arith.mulf %22, %21 : vector<8x32xf32>
    %24 = vector.broadcast %19 : vector<8x1xf32> to vector<8x32xf32>
    %25 = arith.mulf %23, %24 : vector<8x32xf32>
    %26 = vector.broadcast %2 : vector<1x32xf32> to vector<8x32xf32>
    %27 = arith.addf %25, %26 : vector<8x32xf32>
    %28 = arith.truncf %27 : vector<8x32xf32> to vector<8x32xbf16>
    %c0_10 = arith.constant 0 : index
    %c0_11 = arith.constant 0 : index
    %29 = vector.load %arg4[%c0_10, %c0_11] : memref<32x64xbf16, #tpu.memory_space<vmem>>, vector<32x64xbf16>
    %cst_12 = arith.constant dense<0.000000e+00> : vector<8x64xf32>
    %30 = tpu.matmul %28, %29, %cst_12 {dimension_numbers = #tpu.dot_dimension_numbers<[1], [0], [0], [1], [0, 0, 1, 1], [], []>} : vector<8x32xbf16>, vector<32x64xbf16>, vector<8x64xf32> -> vector<8x64xf32>
    %c0_13 = arith.constant 0 : index
    %c0_14 = arith.constant 0 : index
    %31 = vector.load %arg5[%c0_13, %c0_14] : memref<1x64xf32, #tpu.memory_space<vmem>>, vector<1x64xf32>
    %32 = vector.broadcast %31 : vector<1x64xf32> to vector<8x64xf32>
    %33 = arith.addf %30, %32 : vector<8x64xf32>
    %cst_15 = arith.constant 0.000000e+00 : f32
    %34 = vector.broadcast %cst_15 : f32 to vector<8x64xf32>
    %35 = arith.maximumf %33, %34 : vector<8x64xf32>
    %36 = arith.truncf %35 : vector<8x64xf32> to vector<8x64xbf16>
    %c0_16 = arith.constant 0 : index
    %c0_17 = arith.constant 0 : index
    %37 = vector.load %arg6[%c0_16, %c0_17] : memref<64x32xbf16, #tpu.memory_space<vmem>>, vector<64x32xbf16>
    %cst_18 = arith.constant dense<0.000000e+00> : vector<8x32xf32>
    %38 = tpu.matmul %36, %37, %cst_18 {dimension_numbers = #tpu.dot_dimension_numbers<[1], [0], [0], [1], [0, 0, 1, 1], [], []>} : vector<8x64xbf16>, vector<64x32xbf16>, vector<8x32xf32> -> vector<8x32xf32>
    %c0_19 = arith.constant 0 : index
    %c0_20 = arith.constant 0 : index
    %39 = vector.load %arg7[%c0_19, %c0_20] : memref<1x32xf32, #tpu.memory_space<vmem>>, vector<1x32xf32>
    %40 = vector.broadcast %39 : vector<1x32xf32> to vector<8x32xf32>
    %41 = arith.addf %38, %40 : vector<8x32xf32>
    %c0_21 = arith.constant 0 : index
    %c0_22 = arith.constant 0 : index
    %42 = vector.load %arg1[%c0_21, %c0_22] : memref<8x32xbf16, #tpu.memory_space<vmem>>, vector<8x32xbf16>
    %43 = arith.extf %42 : vector<8x32xbf16> to vector<8x32xf32>
    %44 = arith.addf %43, %41 : vector<8x32xf32>
    %45 = arith.truncf %44 : vector<8x32xf32> to vector<8x32xbf16>
    %c0_23 = arith.constant 0 : index
    %c0_24 = arith.constant 0 : index
    %46 = vector.load %arg8[%c0_23, %c0_24] : memref<8x32xbf16, #tpu.memory_space<vmem>>, vector<8x32xbf16>
    tpu.vector_store %arg8[%c0_23, %c0_24], %45 {strides = array<i32>} : memref<8x32xbf16, #tpu.memory_space<vmem>>, vector<8x32xbf16>,
    return
  }
  func.func @transform_0(%arg0: i32) -> (i32, i32) {
    %c0_i32 = arith.constant 0 : i32
    %c0_i32_0 = arith.constant 0 : i32
    return %arg0, %c0_i32 : i32, i32
  }
  func.func @transform_1(%arg0: i32) -> (i32, i32) {
    %c0_i32 = arith.constant 0 : i32
    %c0_i32_0 = arith.constant 0 : i32
    %c0_i32_1 = arith.constant 0 : i32
    return %c0_i32, %c0_i32_0 : i32, i32
  }
  func.func @transform_2(%arg0: i32) -> (i32, i32) {
    %c0_i32 = arith.constant 0 : i32
    %c0_i32_0 = arith.constant 0 : i32
    %c0_i32_1 = arith.constant 0 : i32
    return %c0_i32, %c0_i32_0 : i32, i32
  }
  func.func @transform_3(%arg0: i32) -> (i32, i32) {
    %c0_i32 = arith.constant 0 : i32
    %c0_i32_0 = arith.constant 0 : i32
    %c0_i32_1 = arith.constant 0 : i32
    return %c0_i32, %c0_i32_0 : i32, i32
  }
  func.func @transform_4(%arg0: i32) -> (i32, i32) {
    %c0_i32 = arith.constant 0 : i32
    %c0_i32_0 = arith.constant 0 : i32
    %c0_i32_1 = arith.constant 0 : i32
    return %c0_i32, %c0_i32_0 : i32, i32
  }
  func.func @transform_5(%arg0: i32) -> (i32, i32) {
    %c0_i32 = arith.constant 0 : i32
    %c0_i32_0 = arith.constant 0 : i32
    %c0_i32_1 = arith.constant 0 : i32
    return %c0_i32, %c0_i32_0 : i32, i32
  }
  func.func @transform_6(%arg0: i32) -> (i32, i32) {
    %c0_i32 = arith.constant 0 : i32
    %c0_i32_0 = arith.constant 0 : i32
    %c0_i32_1 = arith.constant 0 : i32
    return %c0_i32, %c0_i32_0 : i32, i32
  }
  func.func @transform_7(%arg0: i32) -> (i32, i32) {
    %c0_i32 = arith.constant 0 : i32
    %c0_i32_0 = arith.constant 0 : i32
    return %arg0, %c0_i32 : i32, i32
  }
}

module attributes {stable_mosaic.version = 11 : i64} {
  func.func @_ln_ffn_residual_kernel(%arg0: i32, %arg1: memref<8x32xbf16, #tpu.memory_space<vmem>>, %arg2: memref<1x32xf32, #tpu.memory_space<vmem>>, %arg3: memref<1x32xf32, #tpu.memory_space<vmem>>, %arg4: memref<32x64xbf16, #tpu.memory_space<vmem>>, %arg5: memref<1x64xf32, #tpu.memory_space<vmem>>, %arg6: memref<64x32xbf16, #tpu.memory_space<vmem>>, %arg7: memref<1x32xf32, #tpu.memory_space<vmem>>, %arg8: memref<8x32xbf16, #tpu.memory_space<vmem>>) attributes {dimension_semantics = [#tpu.dimension_semantics<parallel>], iteration_bounds = array<i64: 2>, scalar_prefetch = 0 : i64, scratch_operands = 0 : i64, tpu.core_type = #tpu.core_type<tc>, window_params = [{transform_indices = @transform_0, window_bounds = array<i64: 8, 32>}, {pipeline_mode = #tpu.pipeline_mode<synchronous>, transform_indices = @transform_1, window_bounds = array<i64: 1, 32>}, {pipeline_mode = #tpu.pipeline_mode<synchronous>, transform_indices = @transform_2, window_bounds = array<i64: 1, 32>}, {pipeline_mode = #tpu.pipeline_mode<synchronous>, transform_indices = @transform_3, window_bounds = array<i64: 32, 64>}, {pipeline_mode = #tpu.pipeline_mode<synchronous>, transform_indices = @transform_4, window_bounds = array<i64: 1, 64>}, {pipeline_mode = #tpu.pipeline_mode<synchronous>, transform_indices = @transform_5, window_bounds = array<i64: 64, 32>}, {pipeline_mode = #tpu.pipeline_mode<synchronous>, transform_indices = @transform_6, window_bounds = array<i64: 1, 32>}, {transform_indices = @transform_7, window_bounds = array<i64: 8, 32>}]} {
    %c0 = arith.constant 0 : index
    %c0_0 = arith.constant 0 : index
    %0 = vector.load %arg1[%c0, %c0_0] : memref<8x32xbf16, #tpu.memory_space<vmem>>, vector<8x32xbf16>
    %c0_1 = arith.constant 0 : index
    %c0_2 = arith.constant 0 : index
    %1 = vector.load %arg2[%c0_1, %c0_2] : memref<1x32xf32, #tpu.memory_space<vmem>>, vector<1x32xf32>
    %c0_3 = arith.constant 0 : index
    %c0_4 = arith.constant 0 : index
    %2 = vector.load %arg3[%c0_3, %c0_4] : memref<1x32xf32, #tpu.memory_space<vmem>>, vector<1x32xf32>
    %3 = arith.extf %0 : vector<8x32xbf16> to vector<8x32xf32>
    %cst = arith.constant dense<0.000000e+00> : vector<8xf32>
    %4 = vector.multi_reduction <add>, %3, %cst [1] : vector<8x32xf32> to vector<8xf32>
    %5 = vector.shape_cast %4 : vector<8xf32> to vector<8x1xf32>
    %cst_5 = arith.constant 3.200000e+01 : f32
    %6 = vector.broadcast %cst_5 : f32 to vector<8x1xf32>
    %7 = arith.divf %5, %6 : vector<8x1xf32>
    %8 = vector.broadcast %7 : vector<8x1xf32> to vector<8x32xf32>
    %9 = arith.subf %3, %8 : vector<8x32xf32>
    %10 = arith.mulf %9, %9 : vector<8x32xf32>
    %cst_6 = arith.constant dense<0.000000e+00> : vector<8xf32>
    %11 = vector.multi_reduction <add>, %10, %cst_6 [1] : vector<8x32xf32> to vector<8xf32>
    %12 = vector.shape_cast %11 : vector<8xf32> to vector<8x1xf32>
    %cst_7 = arith.constant 0.0322580636 : f32
    %13 = vector.broadcast %cst_7 : f32 to vector<8x1xf32>
    %14 = arith.mulf %12, %13 : vector<8x1xf32>
    %15 = math.sqrt %14 : vector<8x1xf32>
    %cst_8 = arith.constant 9.99999997E-7 : f32
    %16 = vector.broadcast %cst_8 : f32 to vector<8x1xf32>
    %17 = arith.addf %15, %16 : vector<8x1xf32>
    %cst_9 = arith.constant 1.000000e+00 : f32
    %18 = vector.broadcast %cst_9 : f32 to vector<8x1xf32>
    %19 = arith.divf %18, %17 : vector<8x1xf32>
    %20 = vector.broadcast %7 : vector<8x1xf32> to vector<8x32xf32>
    %21 = arith.subf %3, %20 : vector<8x32xf32>
    %22 = vector.broadcast %1 : vector<1x32xf32> to vector<8x32xf32>
    %23 = arith.mulf %22, %21 : vector<8x32xf32>
    %24 = vector.broadcast %19 : vector<8x1xf32> to vector<8x32xf32>
    %25 = arith.mulf %23, %24 : vector<8x32xf32>
    %26 = vector.broadcast %2 : vector<1x32xf32> to vector<8x32xf32>
    %27 = arith.addf %25, %26 : vector<8x32xf32>
    %28 = arith.truncf %27 : vector<8x32xf32> to vector<8x32xbf16>
    %c0_10 = arith.constant 0 : index
    %c0_11 = arith.constant 0 : index
    %29 = vector.load %arg4[%c0_10, %c0_11] : memref<32x64xbf16, #tpu.memory_space<vmem>>, vector<32x64xbf16>
    %cst_12 = arith.constant dense<0.000000e+00> : vector<8x64xf32>
    %30 = tpu.matmul %28, %29, %cst_12 {dimension_numbers = #tpu.dot_dimension_numbers<[1], [0], [0], [1], [0, 0, 1, 1], [], []>} : vector<8x32xbf16>, vector<32x64xbf16>, vector<8x64xf32> -> vector<8x64xf32>
    %c0_13 = arith.constant 0 : index
    %c0_14 = arith.constant 0 : index
    %31 = vector.load %arg5[%c0_13, %c0_14] : memref<1x64xf32, #tpu.memory_space<vmem>>, vector<1x64xf32>
    %32 = vector.broadcast %31 : vector<1x64xf32> to vector<8x64xf32>
    %33 = arith.addf %30, %32 : vector<8x64xf32>
    %cst_15 = arith.constant 0.000000e+00 : f32
    %34 = vector.broadcast %cst_15 : f32 to vector<8x64xf32>
    %35 = arith.maximumf %33, %34 : vector<8x64xf32>
    %36 = arith.truncf %35 : vector<8x64xf32> to vector<8x64xbf16>
    %c0_16 = arith.constant 0 : index
    %c0_17 = arith.constant 0 : index
    %37 = vector.load %arg6[%c0_16, %c0_17] : memref<64x32xbf16, #tpu.memory_space<vmem>>, vector<64x32xbf16>
    %cst_18 = arith.constant dense<0.000000e+00> : vector<8x32xf32>
    %38 = tpu.matmul %36, %37, %cst_18 {dimension_numbers = #tpu.dot_dimension_numbers<[1], [0], [0], [1], [0, 0, 1, 1], [], []>} : vector<8x64xbf16>, vector<64x32xbf16>, vector<8x32xf32> -> vector<8x32xf32>
    %c0_19 = arith.constant 0 : index
    %c0_20 = arith.constant 0 : index
    %39 = vector.load %arg7[%c0_19, %c0_20] : memref<1x32xf32, #tpu.memory_space<vmem>>, vector<1x32xf32>
    %40 = vector.broadcast %39 : vector<1x32xf32> to vector<8x32xf32>
    %41 = arith.addf %38, %40 : vector<8x32xf32>
    %c0_21 = arith.constant 0 : index
    %c0_22 = arith.constant 0 : index
    %42 = vector.load %arg1[%c0_21, %c0_22] : memref<8x32xbf16, #tpu.memory_space<vmem>>, vector<8x32xbf16>
    %43 = arith.extf %42 : vector<8x32xbf16> to vector<8x32xf32>
    %44 = arith.addf %43, %41 : vector<8x32xf32>
    %45 = arith.truncf %44 : vector<8x32xf32> to vector<8x32xbf16>
    %c0_23 = arith.constant 0 : index
    %c0_24 = arith.constant 0 : index
    %46 = vector.load %arg8[%c0_23, %c0_24] : memref<8x32xbf16, #tpu.memory_space<vmem>>, vector<8x32xbf16>
    tpu.vector_store %arg8[%c0_23, %c0_24], %45 {strides = array<i32>} : memref<8x32xbf16, #tpu.memory_space<vmem>>, vector<8x32xbf16>,
    return
  }
  func.func @transform_0(%arg0: i32) -> (i32, i32) {
    %c0_i32 = arith.constant 0 : i32
    %c0_i32_0 = arith.constant 0 : i32
    return %arg0, %c0_i32 : i32, i32
  }
  func.func @transform_1(%arg0: i32) -> (i32, i32) {
    %c0_i32 = arith.constant 0 : i32
    %c0_i32_0 = arith.constant 0 : i32
    %c0_i32_1 = arith.constant 0 : i32
    return %c0_i32, %c0_i32_0 : i32, i32
  }
  func.func @transform_2(%arg0: i32) -> (i32, i32) {
    %c0_i32 = arith.constant 0 : i32
    %c0_i32_0 = arith.constant 0 : i32
    %c0_i32_1 = arith.constant 0 : i32
    return %c0_i32, %c0_i32_0 : i32, i32
  }
  func.func @transform_3(%arg0: i32) -> (i32, i32) {
    %c0_i32 = arith.constant 0 : i32
    %c0_i32_0 = arith.constant 0 : i32
    %c0_i32_1 = arith.constant 0 : i32
    return %c0_i32, %c0_i32_0 : i32, i32
  }
  func.func @transform_4(%arg0: i32) -> (i32, i32) {
    %c0_i32 = arith.constant 0 : i32
    %c0_i32_0 = arith.constant 0 : i32
    %c0_i32_1 = arith.constant 0 : i32
    return %c0_i32, %c0_i32_0 : i32, i32
  }
  func.func @transform_5(%arg0: i32) -> (i32, i32) {
    %c0_i32 = arith.constant 0 : i32
    %c0_i32_0 = arith.constant 0 : i32
    %c0_i32_1 = arith.constant 0 : i32
    return %c0_i32, %c0_i32_0 : i32, i32
  }
  func.func @transform_6(%arg0: i32) -> (i32, i32) {
    %c0_i32 = arith.constant 0 : i32
    %c0_i32_0 = arith.constant 0 : i32
    %c0_i32_1 = arith.constant 0 : i32
    return %c0_i32, %c0_i32_0 : i32, i32
  }
  func.func @transform_7(%arg0: i32) -> (i32, i32) {
    %c0_i32 = arith.constant 0 : i32
    %c0_i32_0 = arith.constant 0 : i32
    return %arg0, %c0_i32 : i32, i32
  }
}

module attributes {stable_mosaic.version = 11 : i64} {
  func.func @_matmul_kernel(%arg0: i32, %arg1: memref<8x32xbf16, #tpu.memory_space<vmem>>, %arg2: memref<32x64xbf16, #tpu.memory_space<vmem>>, %arg3: memref<1x64xf32, #tpu.memory_space<vmem>>, %arg4: memref<8x64xbf16, #tpu.memory_space<vmem>>) attributes {dimension_semantics = [#tpu.dimension_semantics<parallel>], iteration_bounds = array<i64: 2>, scalar_prefetch = 0 : i64, scratch_operands = 0 : i64, tpu.core_type = #tpu.core_type<tc>, window_params = [{transform_indices = @transform_0, window_bounds = array<i64: 8, 32>}, {pipeline_mode = #tpu.pipeline_mode<synchronous>, transform_indices = @transform_1, window_bounds = array<i64: 32, 64>}, {pipeline_mode = #tpu.pipeline_mode<synchronous>, transform_indices = @transform_2, window_bounds = array<i64: 1, 64>}, {transform_indices = @transform_3, window_bounds = array<i64: 8, 64>}]} {
    %c0 = arith.constant 0 : index
    %c0_0 = arith.constant 0 : index
    %0 = vector.load %arg1[%c0, %c0_0] : memref<8x32xbf16, #tpu.memory_space<vmem>>, vector<8x32xbf16>
    %c0_1 = arith.constant 0 : index
    %c0_2 = arith.constant 0 : index
    %1 = vector.load %arg2[%c0_1, %c0_2] : memref<32x64xbf16, #tpu.memory_space<vmem>>, vector<32x64xbf16>
    %cst = arith.constant dense<0.000000e+00> : vector<8x64xf32>
    %2 = tpu.matmul %0, %1, %cst {dimension_numbers = #tpu.dot_dimension_numbers<[1], [0], [0], [1], [0, 0, 1, 1], [], []>} : vector<8x32xbf16>, vector<32x64xbf16>, vector<8x64xf32> -> vector<8x64xf32>
    %c0_3 = arith.constant 0 : index
    %c0_4 = arith.constant 0 : index
    %3 = vector.load %arg3[%c0_3, %c0_4] : memref<1x64xf32, #tpu.memory_space<vmem>>, vector<1x64xf32>
    %4 = vector.broadcast %3 : vector<1x64xf32> to vector<8x64xf32>
    %5 = arith.addf %2, %4 : vector<8x64xf32>
    %6 = arith.truncf %5 : vector<8x64xf32> to vector<8x64xbf16>
    %c0_5 = arith.constant 0 : index
    %c0_6 = arith.constant 0 : index
    %7 = vector.load %arg4[%c0_5, %c0_6] : memref<8x64xbf16, #tpu.memory_space<vmem>>, vector<8x64xbf16>
    tpu.vector_store %arg4[%c0_5, %c0_6], %6 {strides = array<i32>} : memref<8x64xbf16, #tpu.memory_space<vmem>>, vector<8x64xbf16>,
    return
  }
  func.func @transform_0(%arg0: i32) -> (i32, i32) {
    %c0_i32 = arith.constant 0 : i32
    %c0_i32_0 = arith.constant 0 : i32
    return %arg0, %c0_i32 : i32, i32
  }
  func.func @transform_1(%arg0: i32) -> (i32, i32) {
    %c0_i32 = arith.constant 0 : i32
    %c0_i32_0 = arith.constant 0 : i32
    %c0_i32_1 = arith.constant 0 : i32
    return %c0_i32, %c0_i32_0 : i32, i32
  }
  func.func @transform_2(%arg0: i32) -> (i32, i32) {
    %c0_i32 = arith.constant 0 : i32
    %c0_i32_0 = arith.constant 0 : i32
    %c0_i32_1 = arith.constant 0 : i32
    return %c0_i32, %c0_i32_0 : i32, i32
  }
  func.func @transform_3(%arg0: i32) -> (i32, i32) {
    %c0_i32 = arith.constant 0 : i32
    %c0_i32_0 = arith.constant 0 : i32
    return %arg0, %c0_i32 : i32, i32
  }
}

module attributes {stable_mosaic.version = 11 : i64} {
  func.func @_layernorm_kernel(%arg0: i32, %arg1: memref<8x32xbf16, #tpu.memory_space<vmem>>, %arg2: memref<1x32xf32, #tpu.memory_space<vmem>>, %arg3: memref<1x32xf32, #tpu.memory_space<vmem>>, %arg4: memref<8x32xbf16, #tpu.memory_space<vmem>>) attributes {dimension_semantics = [#tpu.dimension_semantics<parallel>], iteration_bounds = array<i64: 2>, scalar_prefetch = 0 : i64, scratch_operands = 0 : i64, tpu.core_type = #tpu.core_type<tc>, window_params = [{transform_indices = @transform_0, window_bounds = array<i64: 8, 32>}, {pipeline_mode = #tpu.pipeline_mode<synchronous>, transform_indices = @transform_1, window_bounds = array<i64: 1, 32>}, {pipeline_mode = #tpu.pipeline_mode<synchronous>, transform_indices = @transform_2, window_bounds = array<i64: 1, 32>}, {transform_indices = @transform_3, window_bounds = array<i64: 8, 32>}]} {
    %c0 = arith.constant 0 : index
    %c0_0 = arith.constant 0 : index
    %0 = vector.load %arg1[%c0, %c0_0] : memref<8x32xbf16, #tpu.memory_space<vmem>>, vector<8x32xbf16>
    %c0_1 = arith.constant 0 : index
    %c0_2 = arith.constant 0 : index
    %1 = vector.load %arg2[%c0_1, %c0_2] : memref<1x32xf32, #tpu.memory_space<vmem>>, vector<1x32xf32>
    %c0_3 = arith.constant 0 : index
    %c0_4 = arith.constant 0 : index
    %2 = vector.load %arg3[%c0_3, %c0_4] : memref<1x32xf32, #tpu.memory_space<vmem>>, vector<1x32xf32>
    %3 = arith.extf %0 : vector<8x32xbf16> to vector<8x32xf32>
    %cst = arith.constant dense<0.000000e+00> : vector<8xf32>
    %4 = vector.multi_reduction <add>, %3, %cst [1] : vector<8x32xf32> to vector<8xf32>
    %5 = vector.shape_cast %4 : vector<8xf32> to vector<8x1xf32>
    %cst_5 = arith.constant 3.200000e+01 : f32
    %6 = vector.broadcast %cst_5 : f32 to vector<8x1xf32>
    %7 = arith.divf %5, %6 : vector<8x1xf32>
    %8 = vector.broadcast %7 : vector<8x1xf32> to vector<8x32xf32>
    %9 = arith.subf %3, %8 : vector<8x32xf32>
    %10 = arith.mulf %9, %9 : vector<8x32xf32>
    %cst_6 = arith.constant dense<0.000000e+00> : vector<8xf32>
    %11 = vector.multi_reduction <add>, %10, %cst_6 [1] : vector<8x32xf32> to vector<8xf32>
    %12 = vector.shape_cast %11 : vector<8xf32> to vector<8x1xf32>
    %cst_7 = arith.constant 0.0322580636 : f32
    %13 = vector.broadcast %cst_7 : f32 to vector<8x1xf32>
    %14 = arith.mulf %12, %13 : vector<8x1xf32>
    %15 = math.sqrt %14 : vector<8x1xf32>
    %cst_8 = arith.constant 9.99999997E-7 : f32
    %16 = vector.broadcast %cst_8 : f32 to vector<8x1xf32>
    %17 = arith.addf %15, %16 : vector<8x1xf32>
    %cst_9 = arith.constant 1.000000e+00 : f32
    %18 = vector.broadcast %cst_9 : f32 to vector<8x1xf32>
    %19 = arith.divf %18, %17 : vector<8x1xf32>
    %20 = vector.broadcast %7 : vector<8x1xf32> to vector<8x32xf32>
    %21 = arith.subf %3, %20 : vector<8x32xf32>
    %22 = vector.broadcast %1 : vector<1x32xf32> to vector<8x32xf32>
    %23 = arith.mulf %22, %21 : vector<8x32xf32>
    %24 = vector.broadcast %19 : vector<8x1xf32> to vector<8x32xf32>
    %25 = arith.mulf %23, %24 : vector<8x32xf32>
    %26 = vector.broadcast %2 : vector<1x32xf32> to vector<8x32xf32>
    %27 = arith.addf %25, %26 : vector<8x32xf32>
    %28 = arith.truncf %27 : vector<8x32xf32> to vector<8x32xbf16>
    %c0_10 = arith.constant 0 : index
    %c0_11 = arith.constant 0 : index
    %29 = vector.load %arg4[%c0_10, %c0_11] : memref<8x32xbf16, #tpu.memory_space<vmem>>, vector<8x32xbf16>
    tpu.vector_store %arg4[%c0_10, %c0_11], %28 {strides = array<i32>} : memref<8x32xbf16, #tpu.memory_space<vmem>>, vector<8x32xbf16>,
    return
  }
  func.func @transform_0(%arg0: i32) -> (i32, i32) {
    %c0_i32 = arith.constant 0 : i32
    %c0_i32_0 = arith.constant 0 : i32
    return %arg0, %c0_i32 : i32, i32
  }
  func.func @transform_1(%arg0: i32) -> (i32, i32) {
    %c0_i32 = arith.constant 0 : i32
    %c0_i32_0 = arith.constant 0 : i32
    %c0_i32_1 = arith.constant 0 : i32
    return %c0_i32, %c0_i32_0 : i32, i32
  }
  func.func @transform_2(%arg0: i32) -> (i32, i32) {
    %c0_i32 = arith.constant 0 : i32
    %c0_i32_0 = arith.constant 0 : i32
    %c0_i32_1 = arith.constant 0 : i32
    return %c0_i32, %c0_i32_0 : i32, i32
  }
  func.func @transform_3(%arg0: i32) -> (i32, i32) {
    %c0_i32 = arith.constant 0 : i32
    %c0_i32_0 = arith.constant 0 : i32
    return %arg0, %c0_i32 : i32, i32
  }
}

module attributes {stable_mosaic.version = 11 : i64} {
  func.func @_ln_matmul_kernel(%arg0: i32, %arg1: memref<8x32xbf16, #tpu.memory_space<vmem>>, %arg2: memref<1x32xf32, #tpu.memory_space<vmem>>, %arg3: memref<1x32xf32, #tpu.memory_space<vmem>>, %arg4: memref<32x96xbf16, #tpu.memory_space<vmem>>, %arg5: memref<1x96xf32, #tpu.memory_space<vmem>>, %arg6: memref<8x96xbf16, #tpu.memory_space<vmem>>) attributes {dimension_semantics = [#tpu.dimension_semantics<parallel>], iteration_bounds = array<i64: 2>, scalar_prefetch = 0 : i64, scratch_operands = 0 : i64, tpu.core_type = #tpu.core_type<tc>, window_params = [{transform_indices = @transform_0, window_bounds = array<i64: 8, 32>}, {pipeline_mode = #tpu.pipeline_mode<synchronous>, transform_indices = @transform_1, window_bounds = array<i64: 1, 32>}, {pipeline_mode = #tpu.pipeline_mode<synchronous>, transform_indices = @transform_2, window_bounds = array<i64: 1, 32>}, {pipeline_mode = #tpu.pipeline_mode<synchronous>, transform_indices = @transform_3, window_bounds = array<i64: 32, 96>}, {pipeline_mode = #tpu.pipeline_mode<synchronous>, transform_indices = @transform_4, window_bounds = array<i64: 1, 96>}, {transform_indices = @transform_5, window_bounds = array<i64: 8, 96>}]} {
    %c0 = arith.constant 0 : index
    %c0_0 = arith.constant 0 : index
    %0 = vector.load %arg1[%c0, %c0_0] : memref<8x32xbf16, #tpu.memory_space<vmem>>, vector<8x32xbf16>
    %c0_1 = arith.constant 0 : index
    %c0_2 = arith.constant 0 : index
    %1 = vector.load %arg2[%c0_1, %c0_2] : memref<1x32xf32, #tpu.memory_space<vmem>>, vector<1x32xf32>
    %c0_3 = arith.constant 0 : index
    %c0_4 = arith.constant 0 : index
    %2 = vector.load %arg3[%c0_3, %c0_4] : memref<1x32xf32, #tpu.memory_space<vmem>>, vector<1x32xf32>
    %3 = arith.extf %0 : vector<8x32xbf16> to vector<8x32xf32>
    %cst = arith.constant dense<0.000000e+00> : vector<8xf32>
    %4 = vector.multi_reduction <add>, %3, %cst [1] : vector<8x32xf32> to vector<8xf32>
    %5 = vector.shape_cast %4 : vector<8xf32> to vector<8x1xf32>
    %cst_5 = arith.constant 3.200000e+01 : f32
    %6 = vector.broadcast %cst_5 : f32 to vector<8x1xf32>
    %7 = arith.divf %5, %6 : vector<8x1xf32>
    %8 = vector.broadcast %7 : vector<8x1xf32> to vector<8x32xf32>
    %9 = arith.subf %3, %8 : vector<8x32xf32>
    %10 = arith.mulf %9, %9 : vector<8x32xf32>
    %cst_6 = arith.constant dense<0.000000e+00> : vector<8xf32>
    %11 = vector.multi_reduction <add>, %10, %cst_6 [1] : vector<8x32xf32> to vector<8xf32>
    %12 = vector.shape_cast %11 : vector<8xf32> to vector<8x1xf32>
    %cst_7 = arith.constant 0.0322580636 : f32
    %13 = vector.broadcast %cst_7 : f32 to vector<8x1xf32>
    %14 = arith.mulf %12, %13 : vector<8x1xf32>
    %15 = math.sqrt %14 : vector<8x1xf32>
    %cst_8 = arith.constant 9.99999997E-7 : f32
    %16 = vector.broadcast %cst_8 : f32 to vector<8x1xf32>
    %17 = arith.addf %15, %16 : vector<8x1xf32>
    %cst_9 = arith.constant 1.000000e+00 : f32
    %18 = vector.broadcast %cst_9 : f32 to vector<8x1xf32>
    %19 = arith.divf %18, %17 : vector<8x1xf32>
    %20 = vector.broadcast %7 : vector<8x1xf32> to vector<8x32xf32>
    %21 = arith.subf %3, %20 : vector<8x32xf32>
    %22 = vector.broadcast %1 : vector<1x32xf32> to vector<8x32xf32>
    %23 = arith.mulf %22, %21 : vector<8x32xf32>
    %24 = vector.broadcast %19 : vector<8x1xf32> to vector<8x32xf32>
    %25 = arith.mulf %23, %24 : vector<8x32xf32>
    %26 = vector.broadcast %2 : vector<1x32xf32> to vector<8x32xf32>
    %27 = arith.addf %25, %26 : vector<8x32xf32>
    %28 = arith.truncf %27 : vector<8x32xf32> to vector<8x32xbf16>
    %c0_10 = arith.constant 0 : index
    %c0_11 = arith.constant 0 : index
    %29 = vector.load %arg4[%c0_10, %c0_11] : memref<32x96xbf16, #tpu.memory_space<vmem>>, vector<32x96xbf16>
    %cst_12 = arith.constant dense<0.000000e+00> : vector<8x96xf32>
    %30 = tpu.matmul %28, %29, %cst_12 {dimension_numbers = #tpu.dot_dimension_numbers<[1], [0], [0], [1], [0, 0, 1, 1], [], []>} : vector<8x32xbf16>, vector<32x96xbf16>, vector<8x96xf32> -> vector<8x96xf32>
    %c0_13 = arith.constant 0 : index
    %c0_14 = arith.constant 0 : index
    %31 = vector.load %arg5[%c0_13, %c0_14] : memref<1x96xf32, #tpu.memory_space<vmem>>, vector<1x96xf32>
    %32 = vector.broadcast %31 : vector<1x96xf32> to vector<8x96xf32>
    %33 = arith.addf %30, %32 : vector<8x96xf32>
    %34 = arith.truncf %33 : vector<8x96xf32> to vector<8x96xbf16>
    %c0_15 = arith.constant 0 : index
    %c0_16 = arith.constant 0 : index
    %35 = vector.load %arg6[%c0_15, %c0_16] : memref<8x96xbf16, #tpu.memory_space<vmem>>, vector<8x96xbf16>
    tpu.vector_store %arg6[%c0_15, %c0_16], %34 {strides = array<i32>} : memref<8x96xbf16, #tpu.memory_space<vmem>>, vector<8x96xbf16>,
    return
  }
  func.func @transform_0(%arg0: i32) -> (i32, i32) {
    %c0_i32 = arith.constant 0 : i32
    %c0_i32_0 = arith.constant 0 : i32
    return %arg0, %c0_i32 : i32, i32
  }
  func.func @transform_1(%arg0: i32) -> (i32, i32) {
    %c0_i32 = arith.constant 0 : i32
    %c0_i32_0 = arith.constant 0 : i32
    %c0_i32_1 = arith.constant 0 : i32
    return %c0_i32, %c0_i32_0 : i32, i32
  }
  func.func @transform_2(%arg0: i32) -> (i32, i32) {
    %c0_i32 = arith.constant 0 : i32
    %c0_i32_0 = arith.constant 0 : i32
    %c0_i32_1 = arith.constant 0 : i32
    return %c0_i32, %c0_i32_0 : i32, i32
  }
  func.func @transform_3(%arg0: i32) -> (i32, i32) {
    %c0_i32 = arith.constant 0 : i32
    %c0_i32_0 = arith.constant 0 : i32
    %c0_i32_1 = arith.constant 0 : i32
    return %c0_i32, %c0_i32_0 : i32, i32
  }
  func.func @transform_4(%arg0: i32) -> (i32, i32) {
    %c0_i32 = arith.constant 0 : i32
    %c0_i32_0 = arith.constant 0 : i32
    %c0_i32_1 = arith.constant 0 : i32
    return %c0_i32, %c0_i32_0 : i32, i32
  }
  func.func @transform_5(%arg0: i32) -> (i32, i32) {
    %c0_i32 = arith.constant 0 : i32
    %c0_i32_0 = arith.constant 0 : i32
    return %arg0, %c0_i32 : i32, i32
  }
}

module attributes {stable_mosaic.version = 11 : i64} {
  func.func @_self_attn_kernel(%arg0: i32, %arg1: memref<8x96xbf16, #tpu.memory_space<vmem>>, %arg2: memref<1x8x8xf32, #tpu.memory_space<vmem>>, %arg3: memref<8x32xbf16, #tpu.memory_space<vmem>>) attributes {dimension_semantics = [#tpu.dimension_semantics<parallel>], iteration_bounds = array<i64: 2>, scalar_prefetch = 0 : i64, scratch_operands = 0 : i64, tpu.core_type = #tpu.core_type<tc>, window_params = [{transform_indices = @transform_0, window_bounds = array<i64: 8, 96>}, {transform_indices = @transform_1, window_bounds = array<i64: 1, 8, 8>}, {transform_indices = @transform_2, window_bounds = array<i64: 8, 32>}]} {
    %c0 = arith.constant 0 : index
    %c0_0 = arith.constant 0 : index
    %0 = vector.load %arg1[%c0, %c0_0] : memref<8x96xbf16, #tpu.memory_space<vmem>>, vector<8x96xbf16>
    %1 = vector.extract_strided_slice %0 {offsets = [0, 0], sizes = [8, 8], strides = [1, 1]} : vector<8x96xbf16> to vector<8x8xbf16>
    %cst = arith.constant 3.535160e-01 : bf16
    %2 = vector.broadcast %cst : bf16 to vector<8x8xbf16>
    %3 = arith.mulf %1, %2 : vector<8x8xbf16>
    %4 = vector.extract_strided_slice %0 {offsets = [0, 8], sizes = [8, 8], strides = [1, 1]} : vector<8x96xbf16> to vector<8x8xbf16>
    %cst_1 = arith.constant 3.535160e-01 : bf16
    %5 = vector.broadcast %cst_1 : bf16 to vector<8x8xbf16>
    %6 = arith.mulf %4, %5 : vector<8x8xbf16>
    %7 = vector.extract_strided_slice %0 {offsets = [0, 16], sizes = [8, 8], strides = [1, 1]} : vector<8x96xbf16> to vector<8x8xbf16>
    %cst_2 = arith.constant 3.535160e-01 : bf16
    %8 = vector.broadcast %cst_2 : bf16 to vector<8x8xbf16>
    %9 = arith.mulf %7, %8 : vector<8x8xbf16>
    %10 = vector.extract_strided_slice %0 {offsets = [0, 24], sizes = [8, 8], strides = [1, 1]} : vector<8x96xbf16> to vector<8x8xbf16>
    %cst_3 = arith.constant 3.535160e-01 : bf16
    %11 = vector.broadcast %cst_3 : bf16 to vector<8x8xbf16>
    %12 = arith.mulf %10, %11 : vector<8x8xbf16>
    %13 = vector.extract_strided_slice %0 {offsets = [0, 32], sizes = [8, 8], strides = [1, 1]} : vector<8x96xbf16> to vector<8x8xbf16>
    %14 = vector.extract_strided_slice %0 {offsets = [0, 40], sizes = [8, 8], strides = [1, 1]} : vector<8x96xbf16> to vector<8x8xbf16>
    %15 = vector.extract_strided_slice %0 {offsets = [0, 48], sizes = [8, 8], strides = [1, 1]} : vector<8x96xbf16> to vector<8x8xbf16>
    %16 = vector.extract_strided_slice %0 {offsets = [0, 56], sizes = [8, 8], strides = [1, 1]} : vector<8x96xbf16> to vector<8x8xbf16>
    %17 = vector.extract_strided_slice %0 {offsets = [0, 64], sizes = [8, 8], strides = [1, 1]} : vector<8x96xbf16> to vector<8x8xbf16>
    %18 = vector.extract_strided_slice %0 {offsets = [0, 72], sizes = [8, 8], strides = [1, 1]} : vector<8x96xbf16> to vector<8x8xbf16>
    %19 = vector.extract_strided_slice %0 {offsets = [0, 80], sizes = [8, 8], strides = [1, 1]} : vector<8x96xbf16> to vector<8x8xbf16>
    %20 = vector.extract_strided_slice %0 {offsets = [0, 88], sizes = [8, 8], strides = [1, 1]} : vector<8x96xbf16> to vector<8x8xbf16>
    %c0_4 = arith.constant 0 : index
    %c0_5 = arith.constant 0 : index
    %c0_6 = arith.constant 0 : index
    %21 = vector.load %arg2[%c0_4, %c0_5, %c0_6] : memref<1x8x8xf32, #tpu.memory_space<vmem>>, vector<1x8x8xf32>
    %22 = vector.shape_cast %21 : vector<1x8x8xf32> to vector<8x8xf32>
    %cst_7 = arith.constant 0.000000e+00 : f32
    %23 = vector.broadcast %cst_7 : f32 to vector<8x8xf32>
    %24 = arith.cmpf ogt, %22, %23 : vector<8x8xf32>
    %cst_8 = arith.constant 0.000000e+00 : f32
    %cst_9 = arith.constant -1.000000e+09 : f32
    %25 = vector.broadcast %cst_8 : f32 to vector<8x8xf32>
    %26 = vector.broadcast %cst_9 : f32 to vector<8x8xf32>
    %27 = arith.select %24, %25, %26 : vector<8x8xi1>, vector<8x8xf32>
    "tpu.trace_start"() <{level = 10 : i32, message = "qd,kd->qk"}> : () -> ()
    %cst_10 = arith.constant dense<0.000000e+00> : vector<8x8xf32>
    %28 = tpu.matmul %3, %13, %cst_10 {dimension_numbers = #tpu.dot_dimension_numbers<[1], [1], [0], [0], [0, 0, 1, 0], [], []>} : vector<8x8xbf16>, vector<8x8xbf16>, vector<8x8xf32> -> vector<8x8xf32>
    "tpu.trace_stop"() : () -> ()
    %29 = arith.addf %28, %27 : vector<8x8xf32>
    %cst_11 = arith.constant dense<0xFF800000> : vector<8xf32>
    %30 = vector.multi_reduction <maximumf>, %29, %cst_11 [1] : vector<8x8xf32> to vector<8xf32>
    %31 = vector.shape_cast %30 : vector<8xf32> to vector<8x1xf32>
    %32 = vector.broadcast %31 : vector<8x1xf32> to vector<8x8xf32>
    %33 = arith.subf %29, %32 : vector<8x8xf32>
    %34 = math.exp %33 : vector<8x8xf32>
    %cst_12 = arith.constant dense<0.000000e+00> : vector<8xf32>
    %35 = vector.multi_reduction <add>, %34, %cst_12 [1] : vector<8x8xf32> to vector<8xf32>
    %36 = vector.shape_cast %35 : vector<8xf32> to vector<8x1xf32>
    %37 = tpu.reciprocal %36 {approx = true} : vector<8x1xf32> -> vector<8x1xf32>
    %38 = vector.broadcast %37 : vector<8x1xf32> to vector<8x8xf32>
    %39 = arith.mulf %34, %38 : vector<8x8xf32>
    %40 = arith.truncf %39 : vector<8x8xf32> to vector<8x8xbf16>
    %cst_13 = arith.constant dense<0.000000e+00> : vector<8x8xf32>
    %41 = tpu.matmul %40, %17, %cst_13 {dimension_numbers = #tpu.dot_dimension_numbers<[1], [0], [0], [1], [0, 0, 1, 1], [], []>} : vector<8x8xbf16>, vector<8x8xbf16>, vector<8x8xf32> -> vector<8x8xf32>
    "tpu.trace_start"() <{level = 10 : i32, message = "qd,kd->qk"}> : () -> ()
    %cst_14 = arith.constant dense<0.000000e+00> : vector<8x8xf32>
    %42 = tpu.matmul %6, %14, %cst_14 {dimension_numbers = #tpu.dot_dimension_numbers<[1], [1], [0], [0], [0, 0, 1, 0], [], []>} : vector<8x8xbf16>, vector<8x8xbf16>, vector<8x8xf32> -> vector<8x8xf32>
    "tpu.trace_stop"() : () -> ()
    %43 = arith.addf %42, %27 : vector<8x8xf32>
    %cst_15 = arith.constant dense<0xFF800000> : vector<8xf32>
    %44 = vector.multi_reduction <maximumf>, %43, %cst_15 [1] : vector<8x8xf32> to vector<8xf32>
    %45 = vector.shape_cast %44 : vector<8xf32> to vector<8x1xf32>
    %46 = vector.broadcast %45 : vector<8x1xf32> to vector<8x8xf32>
    %47 = arith.subf %43, %46 : vector<8x8xf32>
    %48 = math.exp %47 : vector<8x8xf32>
    %cst_16 = arith.constant dense<0.000000e+00> : vector<8xf32>
    %49 = vector.multi_reduction <add>, %48, %cst_16 [1] : vector<8x8xf32> to vector<8xf32>
    %50 = vector.shape_cast %49 : vector<8xf32> to vector<8x1xf32>
    %51 = tpu.reciprocal %50 {approx = true} : vector<8x1xf32> -> vector<8x1xf32>
    %52 = vector.broadcast %51 : vector<8x1xf32> to vector<8x8xf32>
    %53 = arith.mulf %48, %52 : vector<8x8xf32>
    %54 = arith.truncf %53 : vector<8x8xf32> to vector<8x8xbf16>
    %cst_17 = arith.constant dense<0.000000e+00> : vector<8x8xf32>
    %55 = tpu.matmul %54, %18, %cst_17 {dimension_numbers = #tpu.dot_dimension_numbers<[1], [0], [0], [1], [0, 0, 1, 1], [], []>} : vector<8x8xbf16>, vector<8x8xbf16>, vector<8x8xf32> -> vector<8x8xf32>
    "tpu.trace_start"() <{level = 10 : i32, message = "qd,kd->qk"}> : () -> ()
    %cst_18 = arith.constant dense<0.000000e+00> : vector<8x8xf32>
    %56 = tpu.matmul %9, %15, %cst_18 {dimension_numbers = #tpu.dot_dimension_numbers<[1], [1], [0], [0], [0, 0, 1, 0], [], []>} : vector<8x8xbf16>, vector<8x8xbf16>, vector<8x8xf32> -> vector<8x8xf32>
    "tpu.trace_stop"() : () -> ()
    %57 = arith.addf %56, %27 : vector<8x8xf32>
    %cst_19 = arith.constant dense<0xFF800000> : vector<8xf32>
    %58 = vector.multi_reduction <maximumf>, %57, %cst_19 [1] : vector<8x8xf32> to vector<8xf32>
    %59 = vector.shape_cast %58 : vector<8xf32> to vector<8x1xf32>
    %60 = vector.broadcast %59 : vector<8x1xf32> to vector<8x8xf32>
    %61 = arith.subf %57, %60 : vector<8x8xf32>
    %62 = math.exp %61 : vector<8x8xf32>
    %cst_20 = arith.constant dense<0.000000e+00> : vector<8xf32>
    %63 = vector.multi_reduction <add>, %62, %cst_20 [1] : vector<8x8xf32> to vector<8xf32>
    %64 = vector.shape_cast %63 : vector<8xf32> to vector<8x1xf32>
    %65 = tpu.reciprocal %64 {approx = true} : vector<8x1xf32> -> vector<8x1xf32>
    %66 = vector.broadcast %65 : vector<8x1xf32> to vector<8x8xf32>
    %67 = arith.mulf %62, %66 : vector<8x8xf32>
    %68 = arith.truncf %67 : vector<8x8xf32> to vector<8x8xbf16>
    %cst_21 = arith.constant dense<0.000000e+00> : vector<8x8xf32>
    %69 = tpu.matmul %68, %19, %cst_21 {dimension_numbers = #tpu.dot_dimension_numbers<[1], [0], [0], [1], [0, 0, 1, 1], [], []>} : vector<8x8xbf16>, vector<8x8xbf16>, vector<8x8xf32> -> vector<8x8xf32>
    "tpu.trace_start"() <{level = 10 : i32, message = "qd,kd->qk"}> : () -> ()
    %cst_22 = arith.constant dense<0.000000e+00> : vector<8x8xf32>
    %70 = tpu.matmul %12, %16, %cst_22 {dimension_numbers = #tpu.dot_dimension_numbers<[1], [1], [0], [0], [0, 0, 1, 0], [], []>} : vector<8x8xbf16>, vector<8x8xbf16>, vector<8x8xf32> -> vector<8x8xf32>
    "tpu.trace_stop"() : () -> ()
    %71 = arith.addf %70, %27 : vector<8x8xf32>
    %cst_23 = arith.constant dense<0xFF800000> : vector<8xf32>
    %72 = vector.multi_reduction <maximumf>, %71, %cst_23 [1] : vector<8x8xf32> to vector<8xf32>
    %73 = vector.shape_cast %72 : vector<8xf32> to vector<8x1xf32>
    %74 = vector.broadcast %73 : vector<8x1xf32> to vector<8x8xf32>
    %75 = arith.subf %71, %74 : vector<8x8xf32>
    %76 = math.exp %75 : vector<8x8xf32>
    %cst_24 = arith.constant dense<0.000000e+00> : vector<8xf32>
    %77 = vector.multi_reduction <add>, %76, %cst_24 [1] : vector<8x8xf32> to vector<8xf32>
    %78 = vector.shape_cast %77 : vector<8xf32> to vector<8x1xf32>
    %79 = tpu.reciprocal %78 {approx = true} : vector<8x1xf32> -> vector<8x1xf32>
    %80 = vector.broadcast %79 : vector<8x1xf32> to vector<8x8xf32>
    %81 = arith.mulf %76, %80 : vector<8x8xf32>
    %82 = arith.truncf %81 : vector<8x8xf32> to vector<8x8xbf16>
    %cst_25 = arith.constant dense<0.000000e+00> : vector<8x8xf32>
    %83 = tpu.matmul %82, %20, %cst_25 {dimension_numbers = #tpu.dot_dimension_numbers<[1], [0], [0], [1], [0, 0, 1, 1], [], []>} : vector<8x8xbf16>, vector<8x8xbf16>, vector<8x8xf32> -> vector<8x8xf32>
    %84 = tpu.concatenate %41, %55, %69, %83 in 1 : vector<8x8xf32>, vector<8x8xf32>, vector<8x8xf32>, vector<8x8xf32> -> vector<8x32xf32>
    %85 = arith.truncf %84 : vector<8x32xf32> to vector<8x32xbf16>
    %c0_26 = arith.constant 0 : index
    %c0_27 = arith.constant 0 : index
    %86 = vector.load %arg3[%c0_26, %c0_27] : memref<8x32xbf16, #tpu.memory_space<vmem>>, vector<8x32xbf16>
    tpu.vector_store %arg3[%c0_26, %c0_27], %85 {strides = array<i32>} : memref<8x32xbf16, #tpu.memory_space<vmem>>, vector<8x32xbf16>,
    return
  }
  func.func @transform_0(%arg0: i32) -> (i32, i32) {
    %c0_i32 = arith.constant 0 : i32
    %c0_i32_0 = arith.constant 0 : i32
    return %arg0, %c0_i32 : i32, i32
  }
  func.func @transform_1(%arg0: i32) -> (i32, i32, i32) {
    %c0_i32 = arith.constant 0 : i32
    %c0_i32_0 = arith.constant 0 : i32
    %c0_i32_1 = arith.constant 0 : i32
    return %arg0, %c0_i32, %c0_i32_0 : i32, i32, i32
  }
  func.func @transform_2(%arg0: i32) -> (i32, i32) {
    %c0_i32 = arith.constant 0 : i32
    %c0_i32_0 = arith.constant 0 : i32
    return %arg0, %c0_i32 : i32, i32
  }
}

module attributes {stable_mosaic.version = 11 : i64} {
  func.func @_ln_matmul_kernel(%arg0: i32, %arg1: memref<8x32xbf16, #tpu.memory_space<vmem>>, %arg2: memref<1x32xf32, #tpu.memory_space<vmem>>, %arg3: memref<1x32xf32, #tpu.memory_space<vmem>>, %arg4: memref<32x32xbf16, #tpu.memory_space<vmem>>, %arg5: memref<1x32xf32, #tpu.memory_space<vmem>>, %arg6: memref<8x32xbf16, #tpu.memory_space<vmem>>) attributes {dimension_semantics = [#tpu.dimension_semantics<parallel>], iteration_bounds = array<i64: 2>, scalar_prefetch = 0 : i64, scratch_operands = 0 : i64, tpu.core_type = #tpu.core_type<tc>, window_params = [{transform_indices = @transform_0, window_bounds = array<i64: 8, 32>}, {pipeline_mode = #tpu.pipeline_mode<synchronous>, transform_indices = @transform_1, window_bounds = array<i64: 1, 32>}, {pipeline_mode = #tpu.pipeline_mode<synchronous>, transform_indices = @transform_2, window_bounds = array<i64: 1, 32>}, {pipeline_mode = #tpu.pipeline_mode<synchronous>, transform_indices = @transform_3, window_bounds = array<i64: 32, 32>}, {pipeline_mode = #tpu.pipeline_mode<synchronous>, transform_indices = @transform_4, window_bounds = array<i64: 1, 32>}, {transform_indices = @transform_5, window_bounds = array<i64: 8, 32>}]} {
    %c0 = arith.constant 0 : index
    %c0_0 = arith.constant 0 : index
    %0 = vector.load %arg1[%c0, %c0_0] : memref<8x32xbf16, #tpu.memory_space<vmem>>, vector<8x32xbf16>
    %c0_1 = arith.constant 0 : index
    %c0_2 = arith.constant 0 : index
    %1 = vector.load %arg2[%c0_1, %c0_2] : memref<1x32xf32, #tpu.memory_space<vmem>>, vector<1x32xf32>
    %c0_3 = arith.constant 0 : index
    %c0_4 = arith.constant 0 : index
    %2 = vector.load %arg3[%c0_3, %c0_4] : memref<1x32xf32, #tpu.memory_space<vmem>>, vector<1x32xf32>
    %3 = arith.extf %0 : vector<8x32xbf16> to vector<8x32xf32>
    %cst = arith.constant dense<0.000000e+00> : vector<8xf32>
    %4 = vector.multi_reduction <add>, %3, %cst [1] : vector<8x32xf32> to vector<8xf32>
    %5 = vector.shape_cast %4 : vector<8xf32> to vector<8x1xf32>
    %cst_5 = arith.constant 3.200000e+01 : f32
    %6 = vector.broadcast %cst_5 : f32 to vector<8x1xf32>
    %7 = arith.divf %5, %6 : vector<8x1xf32>
    %8 = vector.broadcast %7 : vector<8x1xf32> to vector<8x32xf32>
    %9 = arith.subf %3, %8 : vector<8x32xf32>
    %10 = arith.mulf %9, %9 : vector<8x32xf32>
    %cst_6 = arith.constant dense<0.000000e+00> : vector<8xf32>
    %11 = vector.multi_reduction <add>, %10, %cst_6 [1] : vector<8x32xf32> to vector<8xf32>
    %12 = vector.shape_cast %11 : vector<8xf32> to vector<8x1xf32>
    %cst_7 = arith.constant 0.0322580636 : f32
    %13 = vector.broadcast %cst_7 : f32 to vector<8x1xf32>
    %14 = arith.mulf %12, %13 : vector<8x1xf32>
    %15 = math.sqrt %14 : vector<8x1xf32>
    %cst_8 = arith.constant 9.99999997E-7 : f32
    %16 = vector.broadcast %cst_8 : f32 to vector<8x1xf32>
    %17 = arith.addf %15, %16 : vector<8x1xf32>
    %cst_9 = arith.constant 1.000000e+00 : f32
    %18 = vector.broadcast %cst_9 : f32 to vector<8x1xf32>
    %19 = arith.divf %18, %17 : vector<8x1xf32>
    %20 = vector.broadcast %7 : vector<8x1xf32> to vector<8x32xf32>
    %21 = arith.subf %3, %20 : vector<8x32xf32>
    %22 = vector.broadcast %1 : vector<1x32xf32> to vector<8x32xf32>
    %23 = arith.mulf %22, %21 : vector<8x32xf32>
    %24 = vector.broadcast %19 : vector<8x1xf32> to vector<8x32xf32>
    %25 = arith.mulf %23, %24 : vector<8x32xf32>
    %26 = vector.broadcast %2 : vector<1x32xf32> to vector<8x32xf32>
    %27 = arith.addf %25, %26 : vector<8x32xf32>
    %28 = arith.truncf %27 : vector<8x32xf32> to vector<8x32xbf16>
    %c0_10 = arith.constant 0 : index
    %c0_11 = arith.constant 0 : index
    %29 = vector.load %arg4[%c0_10, %c0_11] : memref<32x32xbf16, #tpu.memory_space<vmem>>, vector<32x32xbf16>
    %cst_12 = arith.constant dense<0.000000e+00> : vector<8x32xf32>
    %30 = tpu.matmul %28, %29, %cst_12 {dimension_numbers = #tpu.dot_dimension_numbers<[1], [0], [0], [1], [0, 0, 1, 1], [], []>} : vector<8x32xbf16>, vector<32x32xbf16>, vector<8x32xf32> -> vector<8x32xf32>
    %c0_13 = arith.constant 0 : index
    %c0_14 = arith.constant 0 : index
    %31 = vector.load %arg5[%c0_13, %c0_14] : memref<1x32xf32, #tpu.memory_space<vmem>>, vector<1x32xf32>
    %32 = vector.broadcast %31 : vector<1x32xf32> to vector<8x32xf32>
    %33 = arith.addf %30, %32 : vector<8x32xf32>
    %34 = arith.truncf %33 : vector<8x32xf32> to vector<8x32xbf16>
    %c0_15 = arith.constant 0 : index
    %c0_16 = arith.constant 0 : index
    %35 = vector.load %arg6[%c0_15, %c0_16] : memref<8x32xbf16, #tpu.memory_space<vmem>>, vector<8x32xbf16>
    tpu.vector_store %arg6[%c0_15, %c0_16], %34 {strides = array<i32>} : memref<8x32xbf16, #tpu.memory_space<vmem>>, vector<8x32xbf16>,
    return
  }
  func.func @transform_0(%arg0: i32) -> (i32, i32) {
    %c0_i32 = arith.constant 0 : i32
    %c0_i32_0 = arith.constant 0 : i32
    return %arg0, %c0_i32 : i32, i32
  }
  func.func @transform_1(%arg0: i32) -> (i32, i32) {
    %c0_i32 = arith.constant 0 : i32
    %c0_i32_0 = arith.constant 0 : i32
    %c0_i32_1 = arith.constant 0 : i32
    return %c0_i32, %c0_i32_0 : i32, i32
  }
  func.func @transform_2(%arg0: i32) -> (i32, i32) {
    %c0_i32 = arith.constant 0 : i32
    %c0_i32_0 = arith.constant 0 : i32
    %c0_i32_1 = arith.constant 0 : i32
    return %c0_i32, %c0_i32_0 : i32, i32
  }
  func.func @transform_3(%arg0: i32) -> (i32, i32) {
    %c0_i32 = arith.constant 0 : i32
    %c0_i32_0 = arith.constant 0 : i32
    %c0_i32_1 = arith.constant 0 : i32
    return %c0_i32, %c0_i32_0 : i32, i32
  }
  func.func @transform_4(%arg0: i32) -> (i32, i32) {
    %c0_i32 = arith.constant 0 : i32
    %c0_i32_0 = arith.constant 0 : i32
    %c0_i32_1 = arith.constant 0 : i32
    return %c0_i32, %c0_i32_0 : i32, i32
  }
  func.func @transform_5(%arg0: i32) -> (i32, i32) {
    %c0_i32 = arith.constant 0 : i32
    %c0_i32_0 = arith.constant 0 : i32
    return %arg0, %c0_i32 : i32, i32
  }
}

module attributes {stable_mosaic.version = 11 : i64} {
  func.func @_ln_ffn_residual_kernel(%arg0: i32, %arg1: memref<8x32xbf16, #tpu.memory_space<vmem>>, %arg2: memref<1x32xf32, #tpu.memory_space<vmem>>, %arg3: memref<1x32xf32, #tpu.memory_space<vmem>>, %arg4: memref<32x64xbf16, #tpu.memory_space<vmem>>, %arg5: memref<1x64xf32, #tpu.memory_space<vmem>>, %arg6: memref<64x32xbf16, #tpu.memory_space<vmem>>, %arg7: memref<1x32xf32, #tpu.memory_space<vmem>>, %arg8: memref<8x32xbf16, #tpu.memory_space<vmem>>) attributes {dimension_semantics = [#tpu.dimension_semantics<parallel>], iteration_bounds = array<i64: 2>, scalar_prefetch = 0 : i64, scratch_operands = 0 : i64, tpu.core_type = #tpu.core_type<tc>, window_params = [{transform_indices = @transform_0, window_bounds = array<i64: 8, 32>}, {pipeline_mode = #tpu.pipeline_mode<synchronous>, transform_indices = @transform_1, window_bounds = array<i64: 1, 32>}, {pipeline_mode = #tpu.pipeline_mode<synchronous>, transform_indices = @transform_2, window_bounds = array<i64: 1, 32>}, {pipeline_mode = #tpu.pipeline_mode<synchronous>, transform_indices = @transform_3, window_bounds = array<i64: 32, 64>}, {pipeline_mode = #tpu.pipeline_mode<synchronous>, transform_indices = @transform_4, window_bounds = array<i64: 1, 64>}, {pipeline_mode = #tpu.pipeline_mode<synchronous>, transform_indices = @transform_5, window_bounds = array<i64: 64, 32>}, {pipeline_mode = #tpu.pipeline_mode<synchronous>, transform_indices = @transform_6, window_bounds = array<i64: 1, 32>}, {transform_indices = @transform_7, window_bounds = array<i64: 8, 32>}]} {
    %c0 = arith.constant 0 : index
    %c0_0 = arith.constant 0 : index
    %0 = vector.load %arg1[%c0, %c0_0] : memref<8x32xbf16, #tpu.memory_space<vmem>>, vector<8x32xbf16>
    %c0_1 = arith.constant 0 : index
    %c0_2 = arith.constant 0 : index
    %1 = vector.load %arg2[%c0_1, %c0_2] : memref<1x32xf32, #tpu.memory_space<vmem>>, vector<1x32xf32>
    %c0_3 = arith.constant 0 : index
    %c0_4 = arith.constant 0 : index
    %2 = vector.load %arg3[%c0_3, %c0_4] : memref<1x32xf32, #tpu.memory_space<vmem>>, vector<1x32xf32>
    %3 = arith.extf %0 : vector<8x32xbf16> to vector<8x32xf32>
    %cst = arith.constant dense<0.000000e+00> : vector<8xf32>
    %4 = vector.multi_reduction <add>, %3, %cst [1] : vector<8x32xf32> to vector<8xf32>
    %5 = vector.shape_cast %4 : vector<8xf32> to vector<8x1xf32>
    %cst_5 = arith.constant 3.200000e+01 : f32
    %6 = vector.broadcast %cst_5 : f32 to vector<8x1xf32>
    %7 = arith.divf %5, %6 : vector<8x1xf32>
    %8 = vector.broadcast %7 : vector<8x1xf32> to vector<8x32xf32>
    %9 = arith.subf %3, %8 : vector<8x32xf32>
    %10 = arith.mulf %9, %9 : vector<8x32xf32>
    %cst_6 = arith.constant dense<0.000000e+00> : vector<8xf32>
    %11 = vector.multi_reduction <add>, %10, %cst_6 [1] : vector<8x32xf32> to vector<8xf32>
    %12 = vector.shape_cast %11 : vector<8xf32> to vector<8x1xf32>
    %cst_7 = arith.constant 0.0322580636 : f32
    %13 = vector.broadcast %cst_7 : f32 to vector<8x1xf32>
    %14 = arith.mulf %12, %13 : vector<8x1xf32>
    %15 = math.sqrt %14 : vector<8x1xf32>
    %cst_8 = arith.constant 9.99999997E-7 : f32
    %16 = vector.broadcast %cst_8 : f32 to vector<8x1xf32>
    %17 = arith.addf %15, %16 : vector<8x1xf32>
    %cst_9 = arith.constant 1.000000e+00 : f32
    %18 = vector.broadcast %cst_9 : f32 to vector<8x1xf32>
    %19 = arith.divf %18, %17 : vector<8x1xf32>
    %20 = vector.broadcast %7 : vector<8x1xf32> to vector<8x32xf32>
    %21 = arith.subf %3, %20 : vector<8x32xf32>
    %22 = vector.broadcast %1 : vector<1x32xf32> to vector<8x32xf32>
    %23 = arith.mulf %22, %21 : vector<8x32xf32>
    %24 = vector.broadcast %19 : vector<8x1xf32> to vector<8x32xf32>
    %25 = arith.mulf %23, %24 : vector<8x32xf32>
    %26 = vector.broadcast %2 : vector<1x32xf32> to vector<8x32xf32>
    %27 = arith.addf %25, %26 : vector<8x32xf32>
    %28 = arith.truncf %27 : vector<8x32xf32> to vector<8x32xbf16>
    %c0_10 = arith.constant 0 : index
    %c0_11 = arith.constant 0 : index
    %29 = vector.load %arg4[%c0_10, %c0_11] : memref<32x64xbf16, #tpu.memory_space<vmem>>, vector<32x64xbf16>
    %cst_12 = arith.constant dense<0.000000e+00> : vector<8x64xf32>
    %30 = tpu.matmul %28, %29, %cst_12 {dimension_numbers = #tpu.dot_dimension_numbers<[1], [0], [0], [1], [0, 0, 1, 1], [], []>} : vector<8x32xbf16>, vector<32x64xbf16>, vector<8x64xf32> -> vector<8x64xf32>
    %c0_13 = arith.constant 0 : index
    %c0_14 = arith.constant 0 : index
    %31 = vector.load %arg5[%c0_13, %c0_14] : memref<1x64xf32, #tpu.memory_space<vmem>>, vector<1x64xf32>
    %32 = vector.broadcast %31 : vector<1x64xf32> to vector<8x64xf32>
    %33 = arith.addf %30, %32 : vector<8x64xf32>
    %cst_15 = arith.constant 0.000000e+00 : f32
    %34 = vector.broadcast %cst_15 : f32 to vector<8x64xf32>
    %35 = arith.maximumf %33, %34 : vector<8x64xf32>
    %36 = arith.truncf %35 : vector<8x64xf32> to vector<8x64xbf16>
    %c0_16 = arith.constant 0 : index
    %c0_17 = arith.constant 0 : index
    %37 = vector.load %arg6[%c0_16, %c0_17] : memref<64x32xbf16, #tpu.memory_space<vmem>>, vector<64x32xbf16>
    %cst_18 = arith.constant dense<0.000000e+00> : vector<8x32xf32>
    %38 = tpu.matmul %36, %37, %cst_18 {dimension_numbers = #tpu.dot_dimension_numbers<[1], [0], [0], [1], [0, 0, 1, 1], [], []>} : vector<8x64xbf16>, vector<64x32xbf16>, vector<8x32xf32> -> vector<8x32xf32>
    %c0_19 = arith.constant 0 : index
    %c0_20 = arith.constant 0 : index
    %39 = vector.load %arg7[%c0_19, %c0_20] : memref<1x32xf32, #tpu.memory_space<vmem>>, vector<1x32xf32>
    %40 = vector.broadcast %39 : vector<1x32xf32> to vector<8x32xf32>
    %41 = arith.addf %38, %40 : vector<8x32xf32>
    %c0_21 = arith.constant 0 : index
    %c0_22 = arith.constant 0 : index
    %42 = vector.load %arg1[%c0_21, %c0_22] : memref<8x32xbf16, #tpu.memory_space<vmem>>, vector<8x32xbf16>
    %43 = arith.extf %42 : vector<8x32xbf16> to vector<8x32xf32>
    %44 = arith.addf %43, %41 : vector<8x32xf32>
    %45 = arith.truncf %44 : vector<8x32xf32> to vector<8x32xbf16>
    %c0_23 = arith.constant 0 : index
    %c0_24 = arith.constant 0 : index
    %46 = vector.load %arg8[%c0_23, %c0_24] : memref<8x32xbf16, #tpu.memory_space<vmem>>, vector<8x32xbf16>
    tpu.vector_store %arg8[%c0_23, %c0_24], %45 {strides = array<i32>} : memref<8x32xbf16, #tpu.memory_space<vmem>>, vector<8x32xbf16>,
    return
  }
  func.func @transform_0(%arg0: i32) -> (i32, i32) {
    %c0_i32 = arith.constant 0 : i32
    %c0_i32_0 = arith.constant 0 : i32
    return %arg0, %c0_i32 : i32, i32
  }
  func.func @transform_1(%arg0: i32) -> (i32, i32) {
    %c0_i32 = arith.constant 0 : i32
    %c0_i32_0 = arith.constant 0 : i32
    %c0_i32_1 = arith.constant 0 : i32
    return %c0_i32, %c0_i32_0 : i32, i32
  }
  func.func @transform_2(%arg0: i32) -> (i32, i32) {
    %c0_i32 = arith.constant 0 : i32
    %c0_i32_0 = arith.constant 0 : i32
    %c0_i32_1 = arith.constant 0 : i32
    return %c0_i32, %c0_i32_0 : i32, i32
  }
  func.func @transform_3(%arg0: i32) -> (i32, i32) {
    %c0_i32 = arith.constant 0 : i32
    %c0_i32_0 = arith.constant 0 : i32
    %c0_i32_1 = arith.constant 0 : i32
    return %c0_i32, %c0_i32_0 : i32, i32
  }
  func.func @transform_4(%arg0: i32) -> (i32, i32) {
    %c0_i32 = arith.constant 0 : i32
    %c0_i32_0 = arith.constant 0 : i32
    %c0_i32_1 = arith.constant 0 : i32
    return %c0_i32, %c0_i32_0 : i32, i32
  }
  func.func @transform_5(%arg0: i32) -> (i32, i32) {
    %c0_i32 = arith.constant 0 : i32
    %c0_i32_0 = arith.constant 0 : i32
    %c0_i32_1 = arith.constant 0 : i32
    return %c0_i32, %c0_i32_0 : i32, i32
  }
  func.func @transform_6(%arg0: i32) -> (i32, i32) {
    %c0_i32 = arith.constant 0 : i32
    %c0_i32_0 = arith.constant 0 : i32
    %c0_i32_1 = arith.constant 0 : i32
    return %c0_i32, %c0_i32_0 : i32, i32
  }
  func.func @transform_7(%arg0: i32) -> (i32, i32) {
    %c0_i32 = arith.constant 0 : i32
    %c0_i32_0 = arith.constant 0 : i32
    return %arg0, %c0_i32 : i32, i32
  }
}

module attributes {stable_mosaic.version = 11 : i64} {
  func.func @_cross_attn_kernel(%arg0: i32, %arg1: memref<8x32xbf16, #tpu.memory_space<vmem>>, %arg2: memref<8x64xbf16, #tpu.memory_space<vmem>>, %arg3: memref<1x1x8xf32, #tpu.memory_space<vmem>>, %arg4: memref<8x32xbf16, #tpu.memory_space<vmem>>) attributes {dimension_semantics = [#tpu.dimension_semantics<parallel>], iteration_bounds = array<i64: 2>, scalar_prefetch = 0 : i64, scratch_operands = 0 : i64, tpu.core_type = #tpu.core_type<tc>, window_params = [{transform_indices = @transform_0, window_bounds = array<i64: 8, 32>}, {transform_indices = @transform_1, window_bounds = array<i64: 8, 64>}, {transform_indices = @transform_2, window_bounds = array<i64: 1, 1, 8>}, {transform_indices = @transform_3, window_bounds = array<i64: 8, 32>}]} {
    %c0 = arith.constant 0 : index
    %c0_0 = arith.constant 0 : index
    %0 = vector.load %arg1[%c0, %c0_0] : memref<8x32xbf16, #tpu.memory_space<vmem>>, vector<8x32xbf16>
    %c0_1 = arith.constant 0 : index
    %c0_2 = arith.constant 0 : index
    %1 = vector.load %arg2[%c0_1, %c0_2] : memref<8x64xbf16, #tpu.memory_space<vmem>>, vector<8x64xbf16>
    %2 = vector.extract_strided_slice %0 {offsets = [0, 0], sizes = [8, 8], strides = [1, 1]} : vector<8x32xbf16> to vector<8x8xbf16>
    %cst = arith.constant 3.535160e-01 : bf16
    %3 = vector.broadcast %cst : bf16 to vector<8x8xbf16>
    %4 = arith.mulf %2, %3 : vector<8x8xbf16>
    %5 = vector.extract_strided_slice %0 {offsets = [0, 8], sizes = [8, 8], strides = [1, 1]} : vector<8x32xbf16> to vector<8x8xbf16>
    %cst_3 = arith.constant 3.535160e-01 : bf16
    %6 = vector.broadcast %cst_3 : bf16 to vector<8x8xbf16>
    %7 = arith.mulf %5, %6 : vector<8x8xbf16>
    %8 = vector.extract_strided_slice %0 {offsets = [0, 16], sizes = [8, 8], strides = [1, 1]} : vector<8x32xbf16> to vector<8x8xbf16>
    %cst_4 = arith.constant 3.535160e-01 : bf16
    %9 = vector.broadcast %cst_4 : bf16 to vector<8x8xbf16>
    %10 = arith.mulf %8, %9 : vector<8x8xbf16>
    %11 = vector.extract_strided_slice %0 {offsets = [0, 24], sizes = [8, 8], strides = [1, 1]} : vector<8x32xbf16> to vector<8x8xbf16>
    %cst_5 = arith.constant 3.535160e-01 : bf16
    %12 = vector.broadcast %cst_5 : bf16 to vector<8x8xbf16>
    %13 = arith.mulf %11, %12 : vector<8x8xbf16>
    %14 = vector.extract_strided_slice %1 {offsets = [0, 0], sizes = [8, 8], strides = [1, 1]} : vector<8x64xbf16> to vector<8x8xbf16>
    %15 = vector.extract_strided_slice %1 {offsets = [0, 8], sizes = [8, 8], strides = [1, 1]} : vector<8x64xbf16> to vector<8x8xbf16>
    %16 = vector.extract_strided_slice %1 {offsets = [0, 16], sizes = [8, 8], strides = [1, 1]} : vector<8x64xbf16> to vector<8x8xbf16>
    %17 = vector.extract_strided_slice %1 {offsets = [0, 24], sizes = [8, 8], strides = [1, 1]} : vector<8x64xbf16> to vector<8x8xbf16>
    %18 = vector.extract_strided_slice %1 {offsets = [0, 32], sizes = [8, 8], strides = [1, 1]} : vector<8x64xbf16> to vector<8x8xbf16>
    %19 = vector.extract_strided_slice %1 {offsets = [0, 40], sizes = [8, 8], strides = [1, 1]} : vector<8x64xbf16> to vector<8x8xbf16>
    %20 = vector.extract_strided_slice %1 {offsets = [0, 48], sizes = [8, 8], strides = [1, 1]} : vector<8x64xbf16> to vector<8x8xbf16>
    %21 = vector.extract_strided_slice %1 {offsets = [0, 56], sizes = [8, 8], strides = [1, 1]} : vector<8x64xbf16> to vector<8x8xbf16>
    %c0_6 = arith.constant 0 : index
    %c0_7 = arith.constant 0 : index
    %c0_8 = arith.constant 0 : index
    %22 = vector.load %arg3[%c0_6, %c0_7, %c0_8] : memref<1x1x8xf32, #tpu.memory_space<vmem>>, vector<1x1x8xf32>
    %23 = vector.shape_cast %22 : vector<1x1x8xf32> to vector<1x8xf32>
    %cst_9 = arith.constant 0.000000e+00 : f32
    %24 = vector.broadcast %cst_9 : f32 to vector<1x8xf32>
    %25 = arith.cmpf ogt, %23, %24 : vector<1x8xf32>
    %cst_10 = arith.constant 0.000000e+00 : f32
    %cst_11 = arith.constant -1.000000e+09 : f32
    %26 = vector.broadcast %cst_10 : f32 to vector<1x8xf32>
    %27 = vector.broadcast %cst_11 : f32 to vector<1x8xf32>
    %28 = arith.select %25, %26, %27 : vector<1x8xi1>, vector<1x8xf32>
    "tpu.trace_start"() <{level = 10 : i32, message = "qd,kd->qk"}> : () -> ()
    %cst_12 = arith.constant dense<0.000000e+00> : vector<8x8xf32>
    %29 = tpu.matmul %4, %14, %cst_12 {dimension_numbers = #tpu.dot_dimension_numbers<[1], [1], [0], [0], [0, 0, 1, 0], [], []>} : vector<8x8xbf16>, vector<8x8xbf16>, vector<8x8xf32> -> vector<8x8xf32>
    "tpu.trace_stop"() : () -> ()
    %30 = vector.broadcast %28 : vector<1x8xf32> to vector<8x8xf32>
    %31 = arith.addf %29, %30 : vector<8x8xf32>
    %cst_13 = arith.constant dense<0xFF800000> : vector<8xf32>
    %32 = vector.multi_reduction <maximumf>, %31, %cst_13 [1] : vector<8x8xf32> to vector<8xf32>
    %33 = vector.shape_cast %32 : vector<8xf32> to vector<8x1xf32>
    %34 = vector.broadcast %33 : vector<8x1xf32> to vector<8x8xf32>
    %35 = arith.subf %31, %34 : vector<8x8xf32>
    %36 = math.exp %35 : vector<8x8xf32>
    %cst_14 = arith.constant dense<0.000000e+00> : vector<8xf32>
    %37 = vector.multi_reduction <add>, %36, %cst_14 [1] : vector<8x8xf32> to vector<8xf32>
    %38 = vector.shape_cast %37 : vector<8xf32> to vector<8x1xf32>
    %39 = tpu.reciprocal %38 {approx = true} : vector<8x1xf32> -> vector<8x1xf32>
    %40 = vector.broadcast %39 : vector<8x1xf32> to vector<8x8xf32>
    %41 = arith.mulf %36, %40 : vector<8x8xf32>
    %42 = arith.truncf %41 : vector<8x8xf32> to vector<8x8xbf16>
    %cst_15 = arith.constant dense<0.000000e+00> : vector<8x8xf32>
    %43 = tpu.matmul %42, %18, %cst_15 {dimension_numbers = #tpu.dot_dimension_numbers<[1], [0], [0], [1], [0, 0, 1, 1], [], []>} : vector<8x8xbf16>, vector<8x8xbf16>, vector<8x8xf32> -> vector<8x8xf32>
    "tpu.trace_start"() <{level = 10 : i32, message = "qd,kd->qk"}> : () -> ()
    %cst_16 = arith.constant dense<0.000000e+00> : vector<8x8xf32>
    %44 = tpu.matmul %7, %15, %cst_16 {dimension_numbers = #tpu.dot_dimension_numbers<[1], [1], [0], [0], [0, 0, 1, 0], [], []>} : vector<8x8xbf16>, vector<8x8xbf16>, vector<8x8xf32> -> vector<8x8xf32>
    "tpu.trace_stop"() : () -> ()
    %45 = vector.broadcast %28 : vector<1x8xf32> to vector<8x8xf32>
    %46 = arith.addf %44, %45 : vector<8x8xf32>
    %cst_17 = arith.constant dense<0xFF800000> : vector<8xf32>
    %47 = vector.multi_reduction <maximumf>, %46, %cst_17 [1] : vector<8x8xf32> to vector<8xf32>
    %48 = vector.shape_cast %47 : vector<8xf32> to vector<8x1xf32>
    %49 = vector.broadcast %48 : vector<8x1xf32> to vector<8x8xf32>
    %50 = arith.subf %46, %49 : vector<8x8xf32>
    %51 = math.exp %50 : vector<8x8xf32>
    %cst_18 = arith.constant dense<0.000000e+00> : vector<8xf32>
    %52 = vector.multi_reduction <add>, %51, %cst_18 [1] : vector<8x8xf32> to vector<8xf32>
    %53 = vector.shape_cast %52 : vector<8xf32> to vector<8x1xf32>
    %54 = tpu.reciprocal %53 {approx = true} : vector<8x1xf32> -> vector<8x1xf32>
    %55 = vector.broadcast %54 : vector<8x1xf32> to vector<8x8xf32>
    %56 = arith.mulf %51, %55 : vector<8x8xf32>
    %57 = arith.truncf %56 : vector<8x8xf32> to vector<8x8xbf16>
    %cst_19 = arith.constant dense<0.000000e+00> : vector<8x8xf32>
    %58 = tpu.matmul %57, %19, %cst_19 {dimension_numbers = #tpu.dot_dimension_numbers<[1], [0], [0], [1], [0, 0, 1, 1], [], []>} : vector<8x8xbf16>, vector<8x8xbf16>, vector<8x8xf32> -> vector<8x8xf32>
    "tpu.trace_start"() <{level = 10 : i32, message = "qd,kd->qk"}> : () -> ()
    %cst_20 = arith.constant dense<0.000000e+00> : vector<8x8xf32>
    %59 = tpu.matmul %10, %16, %cst_20 {dimension_numbers = #tpu.dot_dimension_numbers<[1], [1], [0], [0], [0, 0, 1, 0], [], []>} : vector<8x8xbf16>, vector<8x8xbf16>, vector<8x8xf32> -> vector<8x8xf32>
    "tpu.trace_stop"() : () -> ()
    %60 = vector.broadcast %28 : vector<1x8xf32> to vector<8x8xf32>
    %61 = arith.addf %59, %60 : vector<8x8xf32>
    %cst_21 = arith.constant dense<0xFF800000> : vector<8xf32>
    %62 = vector.multi_reduction <maximumf>, %61, %cst_21 [1] : vector<8x8xf32> to vector<8xf32>
    %63 = vector.shape_cast %62 : vector<8xf32> to vector<8x1xf32>
    %64 = vector.broadcast %63 : vector<8x1xf32> to vector<8x8xf32>
    %65 = arith.subf %61, %64 : vector<8x8xf32>
    %66 = math.exp %65 : vector<8x8xf32>
    %cst_22 = arith.constant dense<0.000000e+00> : vector<8xf32>
    %67 = vector.multi_reduction <add>, %66, %cst_22 [1] : vector<8x8xf32> to vector<8xf32>
    %68 = vector.shape_cast %67 : vector<8xf32> to vector<8x1xf32>
    %69 = tpu.reciprocal %68 {approx = true} : vector<8x1xf32> -> vector<8x1xf32>
    %70 = vector.broadcast %69 : vector<8x1xf32> to vector<8x8xf32>
    %71 = arith.mulf %66, %70 : vector<8x8xf32>
    %72 = arith.truncf %71 : vector<8x8xf32> to vector<8x8xbf16>
    %cst_23 = arith.constant dense<0.000000e+00> : vector<8x8xf32>
    %73 = tpu.matmul %72, %20, %cst_23 {dimension_numbers = #tpu.dot_dimension_numbers<[1], [0], [0], [1], [0, 0, 1, 1], [], []>} : vector<8x8xbf16>, vector<8x8xbf16>, vector<8x8xf32> -> vector<8x8xf32>
    "tpu.trace_start"() <{level = 10 : i32, message = "qd,kd->qk"}> : () -> ()
    %cst_24 = arith.constant dense<0.000000e+00> : vector<8x8xf32>
    %74 = tpu.matmul %13, %17, %cst_24 {dimension_numbers = #tpu.dot_dimension_numbers<[1], [1], [0], [0], [0, 0, 1, 0], [], []>} : vector<8x8xbf16>, vector<8x8xbf16>, vector<8x8xf32> -> vector<8x8xf32>
    "tpu.trace_stop"() : () -> ()
    %75 = vector.broadcast %28 : vector<1x8xf32> to vector<8x8xf32>
    %76 = arith.addf %74, %75 : vector<8x8xf32>
    %cst_25 = arith.constant dense<0xFF800000> : vector<8xf32>
    %77 = vector.multi_reduction <maximumf>, %76, %cst_25 [1] : vector<8x8xf32> to vector<8xf32>
    %78 = vector.shape_cast %77 : vector<8xf32> to vector<8x1xf32>
    %79 = vector.broadcast %78 : vector<8x1xf32> to vector<8x8xf32>
    %80 = arith.subf %76, %79 : vector<8x8xf32>
    %81 = math.exp %80 : vector<8x8xf32>
    %cst_26 = arith.constant dense<0.000000e+00> : vector<8xf32>
    %82 = vector.multi_reduction <add>, %81, %cst_26 [1] : vector<8x8xf32> to vector<8xf32>
    %83 = vector.shape_cast %82 : vector<8xf32> to vector<8x1xf32>
    %84 = tpu.reciprocal %83 {approx = true} : vector<8x1xf32> -> vector<8x1xf32>
    %85 = vector.broadcast %84 : vector<8x1xf32> to vector<8x8xf32>
    %86 = arith.mulf %81, %85 : vector<8x8xf32>
    %87 = arith.truncf %86 : vector<8x8xf32> to vector<8x8xbf16>
    %cst_27 = arith.constant dense<0.000000e+00> : vector<8x8xf32>
    %88 = tpu.matmul %87, %21, %cst_27 {dimension_numbers = #tpu.dot_dimension_numbers<[1], [0], [0], [1], [0, 0, 1, 1], [], []>} : vector<8x8xbf16>, vector<8x8xbf16>, vector<8x8xf32> -> vector<8x8xf32>
    %89 = tpu.concatenate %43, %58, %73, %88 in 1 : vector<8x8xf32>, vector<8x8xf32>, vector<8x8xf32>, vector<8x8xf32> -> vector<8x32xf32>
    %90 = arith.truncf %89 : vector<8x32xf32> to vector<8x32xbf16>
    %c0_28 = arith.constant 0 : index
    %c0_29 = arith.constant 0 : index
    %91 = vector.load %arg4[%c0_28, %c0_29] : memref<8x32xbf16, #tpu.memory_space<vmem>>, vector<8x32xbf16>
    tpu.vector_store %arg4[%c0_28, %c0_29], %90 {strides = array<i32>} : memref<8x32xbf16, #tpu.memory_space<vmem>>, vector<8x32xbf16>,
    return
  }
  func.func @transform_0(%arg0: i32) -> (i32, i32) {
    %c0_i32 = arith.constant 0 : i32
    %c0_i32_0 = arith.constant 0 : i32
    return %arg0, %c0_i32 : i32, i32
  }
  func.func @transform_1(%arg0: i32) -> (i32, i32) {
    %c0_i32 = arith.constant 0 : i32
    %c0_i32_0 = arith.constant 0 : i32
    return %arg0, %c0_i32 : i32, i32
  }
  func.func @transform_2(%arg0: i32) -> (i32, i32, i32) {
    %c0_i32 = arith.constant 0 : i32
    %c0_i32_0 = arith.constant 0 : i32
    %c0_i32_1 = arith.constant 0 : i32
    return %arg0, %c0_i32, %c0_i32_0 : i32, i32, i32
  }
  func.func @transform_3(%arg0: i32) -> (i32, i32) {
    %c0_i32 = arith.constant 0 : i32
    %c0_i32_0 = arith.constant 0 : i32
    return %arg0, %c0_i32 : i32, i32
  }
}

module attributes {stable_mosaic.version = 11 : i64} {
  func.func @_ln_matmul_kernel(%arg0: i32, %arg1: memref<8x32xbf16, #tpu.memory_space<vmem>>, %arg2: memref<1x32xf32, #tpu.memory_space<vmem>>, %arg3: memref<1x32xf32, #tpu.memory_space<vmem>>, %arg4: memref<32x96xbf16, #tpu.memory_space<vmem>>, %arg5: memref<1x96xf32, #tpu.memory_space<vmem>>, %arg6: memref<8x96xbf16, #tpu.memory_space<vmem>>) attributes {dimension_semantics = [#tpu.dimension_semantics<parallel>], iteration_bounds = array<i64: 2>, scalar_prefetch = 0 : i64, scratch_operands = 0 : i64, tpu.core_type = #tpu.core_type<tc>, window_params = [{transform_indices = @transform_0, window_bounds = array<i64: 8, 32>}, {pipeline_mode = #tpu.pipeline_mode<synchronous>, transform_indices = @transform_1, window_bounds = array<i64: 1, 32>}, {pipeline_mode = #tpu.pipeline_mode<synchronous>, transform_indices = @transform_2, window_bounds = array<i64: 1, 32>}, {pipeline_mode = #tpu.pipeline_mode<synchronous>, transform_indices = @transform_3, window_bounds = array<i64: 32, 96>}, {pipeline_mode = #tpu.pipeline_mode<synchronous>, transform_indices = @transform_4, window_bounds = array<i64: 1, 96>}, {transform_indices = @transform_5, window_bounds = array<i64: 8, 96>}]} {
    %c0 = arith.constant 0 : index
    %c0_0 = arith.constant 0 : index
    %0 = vector.load %arg1[%c0, %c0_0] : memref<8x32xbf16, #tpu.memory_space<vmem>>, vector<8x32xbf16>
    %c0_1 = arith.constant 0 : index
    %c0_2 = arith.constant 0 : index
    %1 = vector.load %arg2[%c0_1, %c0_2] : memref<1x32xf32, #tpu.memory_space<vmem>>, vector<1x32xf32>
    %c0_3 = arith.constant 0 : index
    %c0_4 = arith.constant 0 : index
    %2 = vector.load %arg3[%c0_3, %c0_4] : memref<1x32xf32, #tpu.memory_space<vmem>>, vector<1x32xf32>
    %3 = arith.extf %0 : vector<8x32xbf16> to vector<8x32xf32>
    %cst = arith.constant dense<0.000000e+00> : vector<8xf32>
    %4 = vector.multi_reduction <add>, %3, %cst [1] : vector<8x32xf32> to vector<8xf32>
    %5 = vector.shape_cast %4 : vector<8xf32> to vector<8x1xf32>
    %cst_5 = arith.constant 3.200000e+01 : f32
    %6 = vector.broadcast %cst_5 : f32 to vector<8x1xf32>
    %7 = arith.divf %5, %6 : vector<8x1xf32>
    %8 = vector.broadcast %7 : vector<8x1xf32> to vector<8x32xf32>
    %9 = arith.subf %3, %8 : vector<8x32xf32>
    %10 = arith.mulf %9, %9 : vector<8x32xf32>
    %cst_6 = arith.constant dense<0.000000e+00> : vector<8xf32>
    %11 = vector.multi_reduction <add>, %10, %cst_6 [1] : vector<8x32xf32> to vector<8xf32>
    %12 = vector.shape_cast %11 : vector<8xf32> to vector<8x1xf32>
    %cst_7 = arith.constant 0.0322580636 : f32
    %13 = vector.broadcast %cst_7 : f32 to vector<8x1xf32>
    %14 = arith.mulf %12, %13 : vector<8x1xf32>
    %15 = math.sqrt %14 : vector<8x1xf32>
    %cst_8 = arith.constant 9.99999997E-7 : f32
    %16 = vector.broadcast %cst_8 : f32 to vector<8x1xf32>
    %17 = arith.addf %15, %16 : vector<8x1xf32>
    %cst_9 = arith.constant 1.000000e+00 : f32
    %18 = vector.broadcast %cst_9 : f32 to vector<8x1xf32>
    %19 = arith.divf %18, %17 : vector<8x1xf32>
    %20 = vector.broadcast %7 : vector<8x1xf32> to vector<8x32xf32>
    %21 = arith.subf %3, %20 : vector<8x32xf32>
    %22 = vector.broadcast %1 : vector<1x32xf32> to vector<8x32xf32>
    %23 = arith.mulf %22, %21 : vector<8x32xf32>
    %24 = vector.broadcast %19 : vector<8x1xf32> to vector<8x32xf32>
    %25 = arith.mulf %23, %24 : vector<8x32xf32>
    %26 = vector.broadcast %2 : vector<1x32xf32> to vector<8x32xf32>
    %27 = arith.addf %25, %26 : vector<8x32xf32>
    %28 = arith.truncf %27 : vector<8x32xf32> to vector<8x32xbf16>
    %c0_10 = arith.constant 0 : index
    %c0_11 = arith.constant 0 : index
    %29 = vector.load %arg4[%c0_10, %c0_11] : memref<32x96xbf16, #tpu.memory_space<vmem>>, vector<32x96xbf16>
    %cst_12 = arith.constant dense<0.000000e+00> : vector<8x96xf32>
    %30 = tpu.matmul %28, %29, %cst_12 {dimension_numbers = #tpu.dot_dimension_numbers<[1], [0], [0], [1], [0, 0, 1, 1], [], []>} : vector<8x32xbf16>, vector<32x96xbf16>, vector<8x96xf32> -> vector<8x96xf32>
    %c0_13 = arith.constant 0 : index
    %c0_14 = arith.constant 0 : index
    %31 = vector.load %arg5[%c0_13, %c0_14] : memref<1x96xf32, #tpu.memory_space<vmem>>, vector<1x96xf32>
    %32 = vector.broadcast %31 : vector<1x96xf32> to vector<8x96xf32>
    %33 = arith.addf %30, %32 : vector<8x96xf32>
    %34 = arith.truncf %33 : vector<8x96xf32> to vector<8x96xbf16>
    %c0_15 = arith.constant 0 : index
    %c0_16 = arith.constant 0 : index
    %35 = vector.load %arg6[%c0_15, %c0_16] : memref<8x96xbf16, #tpu.memory_space<vmem>>, vector<8x96xbf16>
    tpu.vector_store %arg6[%c0_15, %c0_16], %34 {strides = array<i32>} : memref<8x96xbf16, #tpu.memory_space<vmem>>, vector<8x96xbf16>,
    return
  }
  func.func @transform_0(%arg0: i32) -> (i32, i32) {
    %c0_i32 = arith.constant 0 : i32
    %c0_i32_0 = arith.constant 0 : i32
    return %arg0, %c0_i32 : i32, i32
  }
  func.func @transform_1(%arg0: i32) -> (i32, i32) {
    %c0_i32 = arith.constant 0 : i32
    %c0_i32_0 = arith.constant 0 : i32
    %c0_i32_1 = arith.constant 0 : i32
    return %c0_i32, %c0_i32_0 : i32, i32
  }
  func.func @transform_2(%arg0: i32) -> (i32, i32) {
    %c0_i32 = arith.constant 0 : i32
    %c0_i32_0 = arith.constant 0 : i32
    %c0_i32_1 = arith.constant 0 : i32
    return %c0_i32, %c0_i32_0 : i32, i32
  }
  func.func @transform_3(%arg0: i32) -> (i32, i32) {
    %c0_i32 = arith.constant 0 : i32
    %c0_i32_0 = arith.constant 0 : i32
    %c0_i32_1 = arith.constant 0 : i32
    return %c0_i32, %c0_i32_0 : i32, i32
  }
  func.func @transform_4(%arg0: i32) -> (i32, i32) {
    %c0_i32 = arith.constant 0 : i32
    %c0_i32_0 = arith.constant 0 : i32
    %c0_i32_1 = arith.constant 0 : i32
    return %c0_i32, %c0_i32_0 : i32, i32
  }
  func.func @transform_5(%arg0: i32) -> (i32, i32) {
    %c0_i32 = arith.constant 0 : i32
    %c0_i32_0 = arith.constant 0 : i32
    return %arg0, %c0_i32 : i32, i32
  }
}

module attributes {stable_mosaic.version = 11 : i64} {
  func.func @_layernorm_kernel(%arg0: i32, %arg1: memref<8x32xbf16, #tpu.memory_space<vmem>>, %arg2: memref<1x32xf32, #tpu.memory_space<vmem>>, %arg3: memref<1x32xf32, #tpu.memory_space<vmem>>, %arg4: memref<8x32xbf16, #tpu.memory_space<vmem>>) attributes {dimension_semantics = [#tpu.dimension_semantics<parallel>], iteration_bounds = array<i64: 2>, scalar_prefetch = 0 : i64, scratch_operands = 0 : i64, tpu.core_type = #tpu.core_type<tc>, window_params = [{transform_indices = @transform_0, window_bounds = array<i64: 8, 32>}, {pipeline_mode = #tpu.pipeline_mode<synchronous>, transform_indices = @transform_1, window_bounds = array<i64: 1, 32>}, {pipeline_mode = #tpu.pipeline_mode<synchronous>, transform_indices = @transform_2, window_bounds = array<i64: 1, 32>}, {transform_indices = @transform_3, window_bounds = array<i64: 8, 32>}]} {
    %c0 = arith.constant 0 : index
    %c0_0 = arith.constant 0 : index
    %0 = vector.load %arg1[%c0, %c0_0] : memref<8x32xbf16, #tpu.memory_space<vmem>>, vector<8x32xbf16>
    %c0_1 = arith.constant 0 : index
    %c0_2 = arith.constant 0 : index
    %1 = vector.load %arg2[%c0_1, %c0_2] : memref<1x32xf32, #tpu.memory_space<vmem>>, vector<1x32xf32>
    %c0_3 = arith.constant 0 : index
    %c0_4 = arith.constant 0 : index
    %2 = vector.load %arg3[%c0_3, %c0_4] : memref<1x32xf32, #tpu.memory_space<vmem>>, vector<1x32xf32>
    %3 = arith.extf %0 : vector<8x32xbf16> to vector<8x32xf32>
    %cst = arith.constant dense<0.000000e+00> : vector<8xf32>
    %4 = vector.multi_reduction <add>, %3, %cst [1] : vector<8x32xf32> to vector<8xf32>
    %5 = vector.shape_cast %4 : vector<8xf32> to vector<8x1xf32>
    %cst_5 = arith.constant 3.200000e+01 : f32
    %6 = vector.broadcast %cst_5 : f32 to vector<8x1xf32>
    %7 = arith.divf %5, %6 : vector<8x1xf32>
    %8 = vector.broadcast %7 : vector<8x1xf32> to vector<8x32xf32>
    %9 = arith.subf %3, %8 : vector<8x32xf32>
    %10 = arith.mulf %9, %9 : vector<8x32xf32>
    %cst_6 = arith.constant dense<0.000000e+00> : vector<8xf32>
    %11 = vector.multi_reduction <add>, %10, %cst_6 [1] : vector<8x32xf32> to vector<8xf32>
    %12 = vector.shape_cast %11 : vector<8xf32> to vector<8x1xf32>
    %cst_7 = arith.constant 0.0322580636 : f32
    %13 = vector.broadcast %cst_7 : f32 to vector<8x1xf32>
    %14 = arith.mulf %12, %13 : vector<8x1xf32>
    %15 = math.sqrt %14 : vector<8x1xf32>
    %cst_8 = arith.constant 9.99999997E-7 : f32
    %16 = vector.broadcast %cst_8 : f32 to vector<8x1xf32>
    %17 = arith.addf %15, %16 : vector<8x1xf32>
    %cst_9 = arith.constant 1.000000e+00 : f32
    %18 = vector.broadcast %cst_9 : f32 to vector<8x1xf32>
    %19 = arith.divf %18, %17 : vector<8x1xf32>
    %20 = vector.broadcast %7 : vector<8x1xf32> to vector<8x32xf32>
    %21 = arith.subf %3, %20 : vector<8x32xf32>
    %22 = vector.broadcast %1 : vector<1x32xf32> to vector<8x32xf32>
    %23 = arith.mulf %22, %21 : vector<8x32xf32>
    %24 = vector.broadcast %19 : vector<8x1xf32> to vector<8x32xf32>
    %25 = arith.mulf %23, %24 : vector<8x32xf32>
    %26 = vector.broadcast %2 : vector<1x32xf32> to vector<8x32xf32>
    %27 = arith.addf %25, %26 : vector<8x32xf32>
    %28 = arith.truncf %27 : vector<8x32xf32> to vector<8x32xbf16>
    %c0_10 = arith.constant 0 : index
    %c0_11 = arith.constant 0 : index
    %29 = vector.load %arg4[%c0_10, %c0_11] : memref<8x32xbf16, #tpu.memory_space<vmem>>, vector<8x32xbf16>
    tpu.vector_store %arg4[%c0_10, %c0_11], %28 {strides = array<i32>} : memref<8x32xbf16, #tpu.memory_space<vmem>>, vector<8x32xbf16>,
    return
  }
  func.func @transform_0(%arg0: i32) -> (i32, i32) {
    %c0_i32 = arith.constant 0 : i32
    %c0_i32_0 = arith.constant 0 : i32
    return %arg0, %c0_i32 : i32, i32
  }
  func.func @transform_1(%arg0: i32) -> (i32, i32) {
    %c0_i32 = arith.constant 0 : i32
    %c0_i32_0 = arith.constant 0 : i32
    %c0_i32_1 = arith.constant 0 : i32
    return %c0_i32, %c0_i32_0 : i32, i32
  }
  func.func @transform_2(%arg0: i32) -> (i32, i32) {
    %c0_i32 = arith.constant 0 : i32
    %c0_i32_0 = arith.constant 0 : i32
    %c0_i32_1 = arith.constant 0 : i32
    return %c0_i32, %c0_i32_0 : i32, i32
  }
  func.func @transform_3(%arg0: i32) -> (i32, i32) {
    %c0_i32 = arith.constant 0 : i32
    %c0_i32_0 = arith.constant 0 : i32
    return %arg0, %c0_i32 : i32, i32
  }
}

module attributes {stable_mosaic.version = 11 : i64} {
  func.func @_lse_kernel(%arg0: i32, %arg1: i32, %arg2: memref<8x32xbf16, #tpu.memory_space<vmem>>, %arg3: memref<32x16xbf16, #tpu.memory_space<vmem>>, %arg4: memref<1x16xf32, #tpu.memory_space<vmem>>, %arg5: memref<8x1xf32, #tpu.memory_space<vmem>>, %arg6: memref<8x1xf32, #tpu.memory_space<vmem>>, %arg7: memref<8x1xf32, #tpu.memory_space<vmem>>) attributes {dimension_semantics = [#tpu.dimension_semantics<parallel>, #tpu.dimension_semantics<arbitrary>], iteration_bounds = array<i64: 2, 1>, scalar_prefetch = 0 : i64, scratch_operands = 2 : i64, tpu.core_type = #tpu.core_type<tc>, window_params = [{transform_indices = @transform_0, window_bounds = array<i64: 8, 32>}, {transform_indices = @transform_1, window_bounds = array<i64: 32, 16>}, {transform_indices = @transform_2, window_bounds = array<i64: 1, 16>}, {transform_indices = @transform_3, window_bounds = array<i64: 8, 1>}]} {
    %c0_i32 = arith.constant 0 : i32
    %0 = arith.cmpi eq, %arg1, %c0_i32 : i32
    %1 = arith.extui %0 : i1 to i32
    %c0_i32_0 = arith.constant 0 : i32
    %2 = arith.cmpi ne, %1, %c0_i32_0 : i32
    scf.if %2 {
      %cst_20 = arith.constant 0xFF800000 : f32
      %29 = vector.broadcast %cst_20 : f32 to vector<8x1xf32>
      %c0_21 = arith.constant 0 : index
      %c0_22 = arith.constant 0 : index
      %30 = vector.load %arg6[%c0_21, %c0_22] : memref<8x1xf32, #tpu.memory_space<vmem>>, vector<8x1xf32>
      tpu.vector_store %arg6[%c0_21, %c0_22], %29 {strides = array<i32>} : memref<8x1xf32, #tpu.memory_space<vmem>>, vector<8x1xf32>,
      %cst_23 = arith.constant 0.000000e+00 : f32
      %31 = vector.broadcast %cst_23 : f32 to vector<8x1xf32>
      %c0_24 = arith.constant 0 : index
      %c0_25 = arith.constant 0 : index
      %32 = vector.load %arg7[%c0_24, %c0_25] : memref<8x1xf32, #tpu.memory_space<vmem>>, vector<8x1xf32>
      tpu.vector_store %arg7[%c0_24, %c0_25], %31 {strides = array<i32>} : memref<8x1xf32, #tpu.memory_space<vmem>>, vector<8x1xf32>,
    } else {
    }
    %c0 = arith.constant 0 : index
    %c0_1 = arith.constant 0 : index
    %3 = vector.load %arg2[%c0, %c0_1] : memref<8x32xbf16, #tpu.memory_space<vmem>>, vector<8x32xbf16>
    %c0_2 = arith.constant 0 : index
    %c0_3 = arith.constant 0 : index
    %4 = vector.load %arg3[%c0_2, %c0_3] : memref<32x16xbf16, #tpu.memory_space<vmem>>, vector<32x16xbf16>
    %cst = arith.constant dense<0.000000e+00> : vector<8x16xf32>
    %5 = tpu.matmul %3, %4, %cst {dimension_numbers = #tpu.dot_dimension_numbers<[1], [0], [0], [1], [0, 0, 1, 1], [], []>} : vector<8x32xbf16>, vector<32x16xbf16>, vector<8x16xf32> -> vector<8x16xf32>
    %c0_4 = arith.constant 0 : index
    %c0_5 = arith.constant 0 : index
    %6 = vector.load %arg4[%c0_4, %c0_5] : memref<1x16xf32, #tpu.memory_space<vmem>>, vector<1x16xf32>
    %7 = vector.broadcast %6 : vector<1x16xf32> to vector<8x16xf32>
    %8 = arith.addf %5, %7 : vector<8x16xf32>
    %c0_6 = arith.constant 0 : index
    %c0_7 = arith.constant 0 : index
    %9 = vector.load %arg6[%c0_6, %c0_7] : memref<8x1xf32, #tpu.memory_space<vmem>>, vector<8x1xf32>
    %cst_8 = arith.constant dense<0xFF800000> : vector<8xf32>
    %10 = vector.multi_reduction <maximumf>, %8, %cst_8 [1] : vector<8x16xf32> to vector<8xf32>
    %11 = vector.shape_cast %10 : vector<8xf32> to vector<8x1xf32>
    %12 = arith.maximumf %9, %11 : vector<8x1xf32>
    %c0_9 = arith.constant 0 : index
    %c0_10 = arith.constant 0 : index
    %13 = vector.load %arg7[%c0_9, %c0_10] : memref<8x1xf32, #tpu.memory_space<vmem>>, vector<8x1xf32>
    %c0_11 = arith.constant 0 : index
    %c0_12 = arith.constant 0 : index
    %14 = vector.load %arg6[%c0_11, %c0_12] : memref<8x1xf32, #tpu.memory_space<vmem>>, vector<8x1xf32>
    %15 = arith.subf %14, %12 : vector<8x1xf32>
    %16 = math.exp %15 : vector<8x1xf32>
    %17 = arith.mulf %13, %16 : vector<8x1xf32>
    %18 = vector.broadcast %12 : vector<8x1xf32> to vector<8x16xf32>
    %19 = arith.subf %8, %18 : vector<8x16xf32>
    %20 = math.exp %19 : vector<8x16xf32>
    %cst_13 = arith.constant dense<0.000000e+00> : vector<8xf32>
    %21 = vector.multi_reduction <add>, %20, %cst_13 [1] : vector<8x16xf32> to vector<8xf32>
    %22 = vector.shape_cast %21 : vector<8xf32> to vector<8x1xf32>
    %23 = arith.addf %17, %22 : vector<8x1xf32>
    %c0_14 = arith.constant 0 : index
    %c0_15 = arith.constant 0 : index
    %24 = vector.load %arg7[%c0_14, %c0_15] : memref<8x1xf32, #tpu.memory_space<vmem>>, vector<8x1xf32>
    tpu.vector_store %arg7[%c0_14, %c0_15], %23 {strides = array<i32>} : memref<8x1xf32, #tpu.memory_space<vmem>>, vector<8x1xf32>,
    %c0_16 = arith.constant 0 : index
    %c0_17 = arith.constant 0 : index
    %25 = vector.load %arg6[%c0_16, %c0_17] : memref<8x1xf32, #tpu.memory_space<vmem>>, vector<8x1xf32>
    tpu.vector_store %arg6[%c0_16, %c0_17], %12 {strides = array<i32>} : memref<8x1xf32, #tpu.memory_space<vmem>>, vector<8x1xf32>,
    %c0_i32_18 = arith.constant 0 : i32
    %26 = arith.cmpi eq, %arg1, %c0_i32_18 : i32
    %27 = arith.extui %26 : i1 to i32
    %c0_i32_19 = arith.constant 0 : i32
    %28 = arith.cmpi ne, %27, %c0_i32_19 : i32
    scf.if %28 {
      %c0_20 = arith.constant 0 : index
      %c0_21 = arith.constant 0 : index
      %29 = vector.load %arg6[%c0_20, %c0_21] : memref<8x1xf32, #tpu.memory_space<vmem>>, vector<8x1xf32>
      %c0_22 = arith.constant 0 : index
      %c0_23 = arith.constant 0 : index
      %30 = vector.load %arg7[%c0_22, %c0_23] : memref<8x1xf32, #tpu.memory_space<vmem>>, vector<8x1xf32>
      %31 = math.log %30 : vector<8x1xf32>
      %32 = arith.addf %29, %31 : vector<8x1xf32>
      %c0_24 = arith.constant 0 : index
      %c0_25 = arith.constant 0 : index
      %33 = vector.load %arg5[%c0_24, %c0_25] : memref<8x1xf32, #tpu.memory_space<vmem>>, vector<8x1xf32>
      tpu.vector_store %arg5[%c0_24, %c0_25], %32 {strides = array<i32>} : memref<8x1xf32, #tpu.memory_space<vmem>>, vector<8x1xf32>,
    } else {
    }
    return
  }
  func.func @transform_0(%arg0: i32, %arg1: i32) -> (i32, i32) {
    %c0_i32 = arith.constant 0 : i32
    %c0_i32_0 = arith.constant 0 : i32
    return %arg0, %c0_i32 : i32, i32
  }
  func.func @transform_1(%arg0: i32, %arg1: i32) -> (i32, i32) {
    %c0_i32 = arith.constant 0 : i32
    %c0_i32_0 = arith.constant 0 : i32
    return %c0_i32, %arg1 : i32, i32
  }
  func.func @transform_2(%arg0: i32, %arg1: i32) -> (i32, i32) {
    %c0_i32 = arith.constant 0 : i32
    %c0_i32_0 = arith.constant 0 : i32
    return %c0_i32, %arg1 : i32, i32
  }
  func.func @transform_3(%arg0: i32, %arg1: i32) -> (i32, i32) {
    %c0_i32 = arith.constant 0 : i32
    %c0_i32_0 = arith.constant 0 : i32
    return %arg0, %c0_i32 : i32, i32
  }
}

module attributes {stable_mosaic.version = 11 : i64} {
  func.func @_logsoftmax_kernel(%arg0: i32, %arg1: i32, %arg2: memref<8x32xbf16, #tpu.memory_space<vmem>>, %arg3: memref<8x1xf32, #tpu.memory_space<vmem>>, %arg4: memref<32x16xbf16, #tpu.memory_space<vmem>>, %arg5: memref<1x16xf32, #tpu.memory_space<vmem>>, %arg6: memref<8x16xf32, #tpu.memory_space<vmem>>) attributes {dimension_semantics = [#tpu.dimension_semantics<parallel>, #tpu.dimension_semantics<arbitrary>], iteration_bounds = array<i64: 2, 1>, scalar_prefetch = 0 : i64, scratch_operands = 0 : i64, tpu.core_type = #tpu.core_type<tc>, window_params = [{transform_indices = @transform_0, window_bounds = array<i64: 8, 32>}, {transform_indices = @transform_1, window_bounds = array<i64: 8, 1>}, {transform_indices = @transform_2, window_bounds = array<i64: 32, 16>}, {transform_indices = @transform_3, window_bounds = array<i64: 1, 16>}, {transform_indices = @transform_4, window_bounds = array<i64: 8, 16>}]} {
    %c0 = arith.constant 0 : index
    %c0_0 = arith.constant 0 : index
    %0 = vector.load %arg2[%c0, %c0_0] : memref<8x32xbf16, #tpu.memory_space<vmem>>, vector<8x32xbf16>
    %c0_1 = arith.constant 0 : index
    %c0_2 = arith.constant 0 : index
    %1 = vector.load %arg4[%c0_1, %c0_2] : memref<32x16xbf16, #tpu.memory_space<vmem>>, vector<32x16xbf16>
    %cst = arith.constant dense<0.000000e+00> : vector<8x16xf32>
    %2 = tpu.matmul %0, %1, %cst {dimension_numbers = #tpu.dot_dimension_numbers<[1], [0], [0], [1], [0, 0, 1, 1], [], []>} : vector<8x32xbf16>, vector<32x16xbf16>, vector<8x16xf32> -> vector<8x16xf32>
    %c0_3 = arith.constant 0 : index
    %c0_4 = arith.constant 0 : index
    %3 = vector.load %arg5[%c0_3, %c0_4] : memref<1x16xf32, #tpu.memory_space<vmem>>, vector<1x16xf32>
    %4 = vector.broadcast %3 : vector<1x16xf32> to vector<8x16xf32>
    %5 = arith.addf %2, %4 : vector<8x16xf32>
    %c0_5 = arith.constant 0 : index
    %c0_6 = arith.constant 0 : index
    %6 = vector.load %arg3[%c0_5, %c0_6] : memref<8x1xf32, #tpu.memory_space<vmem>>, vector<8x1xf32>
    %7 = vector.broadcast %6 : vector<8x1xf32> to vector<8x16xf32>
    %8 = arith.subf %5, %7 : vector<8x16xf32>
    %c0_7 = arith.constant 0 : index
    %c0_8 = arith.constant 0 : index
    %9 = vector.load %arg6[%c0_7, %c0_8] : memref<8x16xf32, #tpu.memory_space<vmem>>, vector<8x16xf32>
    tpu.vector_store %arg6[%c0_7, %c0_8], %8 {strides = array<i32>} : memref<8x16xf32, #tpu.memory_space<vmem>>, vector<8x16xf32>,
    return
  }
  func.func @transform_0(%arg0: i32, %arg1: i32) -> (i32, i32) {
    %c0_i32 = arith.constant 0 : i32
    %c0_i32_0 = arith.constant 0 : i32
    return %arg0, %c0_i32 : i32, i32
  }
  func.func @transform_1(%arg0: i32, %arg1: i32) -> (i32, i32) {
    %c0_i32 = arith.constant 0 : i32
    %c0_i32_0 = arith.constant 0 : i32
    return %arg0, %c0_i32 : i32, i32
  }
  func.func @transform_2(%arg0: i32, %arg1: i32) -> (i32, i32) {
    %c0_i32 = arith.constant 0 : i32
    %c0_i32_0 = arith.constant 0 : i32
    return %c0_i32, %arg1 : i32, i32
  }
  func.func @transform_3(%arg0: i32, %arg1: i32) -> (i32, i32) {
    %c0_i32 = arith.constant 0 : i32
    %c0_i32_0 = arith.constant 0 : i32
    return %c0_i32, %arg1 : i32, i32
  }
  func.func @transform_4(%arg0: i32, %arg1: i32) -> (i32, i32) {
    %c0_i32 = arith.constant 0 : i32
    return %arg0, %arg1 : i32, i32
  }
}

</mosaic_0001>

<bundles_post_ra>
// kernel: tpu_custom_call.1
= control target key start
LH: loop header
LB: loop body
LE: loop exit
PB: predicated region body
PF: predicated region fallthrough
CT: control target
= control target key end

     0   :  { %6 = vsyncpa [#allocation3], 0  ;;  %s286_s0 = inlined_call_operand.hbm [shape: f32[8,128], index: 0, kind: input, shape index: {}]   ;;  %s287_s1 = inlined_call_operand.hbm [shape: f32[8,128], index: 1, kind: output, shape index: {}]  }
   0x1   :  { %7 = vsyncpa [#allocation4], 0  ;;  %s269_s6 = smov 0  }
   0x2 LB: > { %s148_s7 = sadd.s32 4294967295, %s255_s6   ;;  %p149_p0 = scmp.ge.s32.totalorder %s255_s6, 1  ;;  %s255_s6 = sphi %s269_s6, %s13_s6  }
   0x3   : > { %p60_p1 = scmp.lt.s32.totalorder %s255_s6, 3  ;;  %s72_s10 = sshll.u32 %s286_s0, 4  ;;  %s73_s10 = int_to_ptr.hbm [resolvable:$true] %s72_s10 }
   0x4   : > { %p169_p3 = scmp.eq.s32.totalorder %s148_s7, 0  ;;  %s257_s11 = smov [#allocation2]  }
   0x5   : > { %p61_p2 = pnand %p149_p0, %p60_p1  ;;  %s74_s12 = sshll.u32 %s257_s11, 4  ;;  %s75_s12 = int_to_ptr.vmem [resolvable:$true] %s74_s12 }
   0x7   : > { %p165_p4 = pneg %p61_p2  ;;  %87 = sbr.rel (%p61_p2) target bundleno = 19 (0x13), region = 24 }
   0x9   : > { %p166_p5 = pnand %p169_p3, %p165_p4 }
   0xb   : > { %168 = dma.hbm_to_vmem [thread:$0]  (!%p166_p5), %s73_s10, 128, %s75_s12, [#allocation3]  }
   0xc   : > { %246 = dma.done.wait (%p169_p3), [#allocation3], 128  }
   0xd   : > { %248 = vsyncadd (%p169_p3), [#allocation3], 4294967168  ;;  %s258_s13 = smov [#allocation5]   ;;  %s108_s17 = sshll.u32 %s287_s1, 4  ;;  %v98_v0 = vld [vmem:[#allocation2] sm:$0xff]  ;;  %s109_s17 = int_to_ptr.hbm [resolvable:$true] %s108_s17 }
   0xe   : > { %s106_s14 = sshll.u32 %s258_s13, 4  ;;  %p171_p6 = scmp.eq.s32.totalorder %s148_s7, 1  ;;  %99 = vst [vmem:[#allocation5] sm:$0xff] %v98_v0  ;;  %s107_s14 = int_to_ptr.vmem [resolvable:$true] %s106_s14 }
  0x10   : > { %162 = dma.vmem_to_hbm [thread:$0]  (%p171_p6), %s107_s14, 128, %s109_s17, [#allocation4]  }
  0x11   : > { %250 = dma.done.wait (%p171_p6), [#allocation4], 128  }
  0x12   : > { %252 = vsyncadd (%p171_p6), [#allocation4], 4294967168 }
  0x13 PF: > { %s13_s6 = sadd.s32 1, %s255_s6  }
  0x14   : > { %p10_p7 = scmp.ge.s32.totalorder %s13_s6, 4  }
  0x16   :  { %12 = sbr.rel (!%p10_p7) target bundleno = 2 (0x2), region = 53 }
  0x1b   :  { %122 = vsyncpa [#allocation3], 1 }
  0x1c   :  { %124 = vsyncpa [#allocation3 + $0x1], 1 }
  0x1d   :  { %125 = vsyncpa [#allocation4], 1 }
  0x1e   :  { %127 = vsyncpa [#allocation4 + $0x1], 1 }

// kernel: encoder_decoder_forward.30
= control target key start
LH: loop header
LB: loop body
LE: loop exit
PB: predicated region body
PF: predicated region fallthrough
CT: control target
= control target key end

     0   :  { %s383_s15 = smov 0   ;;  %s412_s0 = inlined_call_operand.vmem [shape: bf16[16,32], index: 0, kind: input, shape index: {}]   ;;  %s413_s1 = inlined_call_operand.vmem [shape: bf16[16,32], index: 1, kind: input, shape index: {}]   ;;  %s414_s2 = inlined_call_operand.vmem [shape: bf16[32,32], index: 2, kind: input, shape index: {}]   ;;  %s415_s3 = inlined_call_operand.vmem [shape: f32[1,32], index: 3, kind: input, shape index: {}]   ;;  %s416_s4 = inlined_call_operand.vmem [shape: bf16[16,32], index: 4, kind: output, shape index: {}]  }
   0x1 LB: > { %s320_s16 = sadd.s32 4294967295, %s356_s15   ;;  %p324_p0 = scmp.ge.s32.totalorder %s356_s15, 1  ;;  %s356_s15 = sphi %s383_s15, %s14_s15  }
   0x2   : > { %p170_p1 = scmp.lt.s32.totalorder %s356_s15, 3 }
   0x4   : > { %p171_p2 = pnand %p324_p0, %p170_p1 }
   0x5   : > { %p198_p3 = scmp.lt.s32.totalorder (!%p171_p2), %s320_s16, 1 }
   0x6   : > { %174 = sbr.rel (%p171_p2) target bundleno = 153 (0x99), region = 36 }
   0xb   : > { %v340_v0 = vld [vmem:[%s414_s2 + $0x8] sm:$0xff]  ;;  %v339_v1 = vld [vmem:[%s414_s2] sm:$0xff]  ;;  %s418_s16 = smov (!%p198_p3, %s320_s16), 1  ;;  %vm232_vm0 = vcmask 261120   ;;  %vm253_vm1 = vcmask 257024  }
   0xc   : > { %242 = vmatpush.bf16.msra.mxu0 %v340_v0  ;;  %s325_s21 = sshll.u32 %s418_s16, 2  ;;  %v349_v4 = vld [vmem:[%s415_s3] ss:$0 sm:$0xff] }
   0xd   : > { %s201_s24 = scalar_lea.vmem %s412_s0, %s325_s21  ;;  %s205_s27 = scalar_lea.vmem %s413_s1, %s325_s21 }
   0xe   : > { %v211_v2 = vld [vmem:[%s201_s24] sm:$0xf]  ;;  %s209_s6 = scalar_lea.vmem %s416_s4, %s325_s21 }
   0xf   : > { %v249_v3 = vld [vmem:[%s205_s27] sm:$0xf] }
  0x10   : > { %243 = vmatpush.bf16.msra.mxu0 %v339_v1  ;;  %v250_v5 = vunpack.c.l.bf16 %v249_v3 }
  0x13   : > { %336 = vmatmul.msk.bf16.vlgmr.msra.gmra.mxu0 %vm232_vm0, %v211_v2 }
  0x90   : > { %v245_v6 = vpop.f32.mrf.mxu0 }
  0x91   : > { %v246_v7 = vadd.f32 %v349_v4, %v245_v6 }
  0x93   : > { %v251_v8 = vadd.f32 %v250_v5, %v246_v7 }
  0x95   : > { %v252_v9 = vpack.c.bf16 %v251_v8, %v251_v8 }
  0x97   : > { %254 = vst.msk [vmem:[%s209_s6] sm:$0xf] %vm253_vm1, %v252_v9 }
  0x98   : > { %v247_v10 = vpop.f32.mrf.mxu0 }
  0x99 PF: > { %s14_s15 = sadd.s32 1, %s356_s15  }
  0x9a   : > { %p11_p4 = scmp.ge.s32.totalorder %s14_s15, 4  }
  0x9c   :  { %13 = sbr.rel (!%p11_p4) target bundleno = 1 (0x1), region = 69 }

// kernel: encoder_decoder_forward.28
= control target key start
LH: loop header
LB: loop body
LE: loop exit
PB: predicated region body
PF: predicated region fallthrough
CT: control target
= control target key end

     0   :  { %s450_s18 = smov 0   ;;  %s492_s0 = inlined_call_operand.vmem [shape: bf16[16,32], index: 0, kind: input, shape index: {}]   ;;  %s493_s1 = inlined_call_operand.vmem [shape: f32[1,32], index: 1, kind: input, shape index: {}]   ;;  %s494_s2 = inlined_call_operand.vmem [shape: f32[1,32], index: 2, kind: input, shape index: {}]   ;;  %s495_s3 = inlined_call_operand.vmem [shape: bf16[32,96], index: 3, kind: input, shape index: {}]   ;;  %s496_s4 = inlined_call_operand.vmem [shape: f32[1,96], index: 4, kind: input, shape index: {}]   ;;  %s497_s5 = inlined_call_operand.vmem [shape: bf16[16,96], index: 5, kind: output, shape index: {}]  }
   0x1 LB: > { %s373_s19 = sadd.s32 4294967295, %s417_s18   ;;  %p377_p0 = scmp.ge.s32.totalorder %s417_s18, 1  ;;  %s417_s18 = sphi %s450_s18, %s15_s18  }
   0x2   : > { %p186_p1 = scmp.lt.s32.totalorder %s417_s18, 3 }
   0x4   : > { %p187_p2 = pnand %p377_p0, %p186_p1 }
   0x5   : > { %p212_p3 = scmp.lt.s32.totalorder (!%p187_p2), %s373_s19, 1 }
   0x6   : > { %190 = sbr.rel (%p187_p2) target bundleno = 439 (0x1b7), region = 40 }
   0xb   : > { %s499_s19 = smov (!%p212_p3, %s373_s19), 1  ;;  %vm225_vm0 = vcmask 261120   ;;  %v419_v3 = vmov 32.0   ;;  %v392_v15 = vld [vmem:[%s495_s3 + $0x8] sm:$0xff]  ;;  %v391_v16 = vld [vmem:[%s495_s3] sm:$0xff]  ;;  %vm318_vm8 = vcmask 781312  }
   0xc   : > { %s378_s20 = sshll.u32 %s499_s19, 2  ;;  %405 = vrcp.f32 %v419_v3  ;;  %310 = vmatpush.bf16.msra.mxu0 %v392_v15  ;;  %v402_v34 = vld [vmem:[%s493_s1] ss:$0 sm:$0xff] }
   0xd   : > { %s215_s23 = scalar_lea.vmem %s492_s0, %s378_s20  ;;  %v403_v41 = vld [vmem:[%s494_s2] ss:$0 sm:$0xff]  ;;  %s219_s11 = scalar_lea.vmem %s497_s5, %s378_s20 }
   0xe   : > { %v221_v0 = vld [vmem:[%s215_s23] sm:$0xf] }
   0xf   : > { %v224_v1 = vunpack.c.l.bf16 %v221_v0  ;;  %v404_v46 = vld [vmem:[%s496_s4] ss:$0 sm:$0xff] }
  0x10   : > { %311 = vmatpush.bf16.msra.mxu0 %v391_v16 }
  0x11   : > { %v226_v2 = vsel %vm225_vm0, %v224_v1, 0.0 }
  0x12   : > { %227 = vadd.xlane.f32.xlu0 %v226_v2  ;;  %v406_v4 = vpop.eup %405 }
  0x13   : > { %v230_v5 = vmul.f32 32.0, %v406_v4  ;;  %vm234_vm1 = vweird.f32 %v406_v4 }
  0x15   : > { %v231_v6 = vsub.f32 1.0, %v230_v5 }
  0x17   : > { %v232_v7 = vmul.f32 %v406_v4, %v231_v6 }
  0x19   : > { %v233_v8 = vadd.f32 %v406_v4, %v232_v7 }
  0x1b   : > { %v235_v9 = vsel %vm234_vm1, %v406_v4, %v233_v8 }
  0x85   : > { %v228_v10 = vpop.xlane.xlu0 %227 }
  0x86   : > { %v236_v11 = vmul.f32 %v235_v9, %v228_v10 }
  0x88   : > { %v237_v12 = vsub.f32 %v224_v1, %v236_v11 }
  0x8a   : > { %v238_v13 = vmul.f32 %v237_v12, %v237_v12  ;;  %v274_v39 = vmul.f32 %v402_v34, %v237_v12 }
  0x8c   : > { %v239_v14 = vsel %vm225_vm0, %v238_v13, 0.0 }
  0x8d   : > { %240 = vadd.xlane.f32.xlu0 %v239_v14 }
 0x100   : > { %v241_v17 = vpop.xlane.xlu0 %240 }
 0x101   : > { %v242_v18 = vmul.f32 0.032258064, %v241_v17 }
 0x103   : > { %407 = vrsqrt.f32 %v242_v18  ;;  %vm250_vm2 = vcmp.eq.f32.partialorder %v242_v18, inf  ;;  %v253_v26 = vand.u32 2147483648, %v242_v18  ;;  %vm252_vm3 = vcmp.eq.f32.partialorder %v242_v18, 0.0 }
 0x109   : > { %v408_v19 = vpop.eup %407 }
 0x10a   : > { %v244_v20 = vmul.f32 %v408_v19, %v242_v18 }
 0x10c   : > { %v245_v21 = vmul.f32 %v408_v19, %v244_v20 }
 0x10e   : > { %v246_v22 = vmul.f32 0.5, %v245_v21 }
 0x110   : > { %v247_v23 = vsub.f32 1.5, %v246_v22 }
 0x112   : > { %v248_v24 = vmul.f32 %v408_v19, %v247_v23 }
 0x114   : > { %v249_v25 = vmul.f32 %v248_v24, %v242_v18 }
 0x116   : > { %v251_v27 = vsel %vm250_vm2, %v242_v18, %v249_v25 }
 0x117   : > { %v254_v28 = vsel %vm252_vm3, %v253_v26, %v251_v27 }
 0x118   : > { %v255_v29 = vadd.f32 1e-06, %v254_v28 }
 0x11a   : > { %409 = vrcp.f32 %v255_v29  ;;  %v267_v33 = vand.u32 2147483648, %v255_v29  ;;  %v265_v36 = vand.u32 2147483647, %v255_v29  ;;  %vm261_vm5 = vweird.f32 %v255_v29 }
 0x11c   : > { %v268_v38 = vor.u32 1.1754944e-38, %v267_v33  ;;  %vm266_vm7 = vcmp.eq.f32.partialorder %v265_v36, 8.507059e+37 }
 0x120   : > { %v410_v30 = vpop.eup %409 }
 0x121   : > { %v257_v31 = vmul.f32 %v410_v30, %v255_v29  ;;  %vm262_vm4 = vweird.f32 %v410_v30 }
 0x122   : > { %vm263_vm6 = vmor %vm261_vm5, %vm262_vm4 }
 0x123   : > { %v258_v32 = vsub.f32 1.0, %v257_v31 }
 0x125   : > { %v259_v35 = vmul.f32 %v410_v30, %v258_v32 }
 0x127   : > { %v260_v37 = vadd.f32 %v410_v30, %v259_v35 }
 0x129   : > { %v264_v40 = vsel %vm263_vm6, %v410_v30, %v260_v37 }
 0x12a   : > { %v269_v42 = vsel %vm266_vm7, %v268_v38, %v264_v40 }
 0x12b   : > { %v275_v43 = vmul.f32 %v274_v39, %v269_v42 }
 0x12d   : > { %v279_v44 = vadd.f32 %v403_v41, %v275_v43 }
 0x12f   : > { %v280_v45 = vpack.c.bf16 %v279_v44, %v279_v44 }
 0x131   : > { %388 = vmatmul.msk.bf16.vlgmr.msra.gmra.mxu0 %vm225_vm0, %v280_v45 }
 0x1ae   : > { %v313_v47 = vpop.f32.mrf.mxu0 }
 0x1af   : > { %v314_v48 = vadd.f32 %v404_v46, %v313_v47 }
 0x1b1   : > { %v317_v49 = vpack.c.bf16 %v314_v48, %v314_v48 }
 0x1b3   : > { %319 = vst.msk [vmem:[%s219_s11] sm:$0xf] %vm318_vm8, %v317_v49 }
 0x1b6   : > { %v315_v50 = vpop.f32.mrf.mxu0 }
 0x1b7 PF: > { %s15_s18 = sadd.s32 1, %s417_s18  }
 0x1b8   : > { %p12_p4 = scmp.ge.s32.totalorder %s15_s18, 4  }
 0x1ba   :  { %14 = sbr.rel (!%p12_p4) target bundleno = 1 (0x1), region = 70 }

// kernel: encoder_decoder_forward.29
= control target key start
LH: loop header
LB: loop body
LE: loop exit
PB: predicated region body
PF: predicated region fallthrough
CT: control target
= control target key end

     0   :  { %s568_s9 = smov 0   ;;  %s634_s0 = inlined_call_operand.vmem [shape: bf16[16,96], index: 0, kind: input, shape index: {}]   ;;  %s635_s1 = inlined_call_operand.vmem [shape: f32[2,1,8], index: 1, kind: input, shape index: {}]   ;;  %s636_s2 = inlined_call_operand.vmem [shape: bf16[16,32], index: 2, kind: output, shape index: {}]  }
   0x1 LB: > { %s474_s10 = sadd.s32 4294967295, %s536_s9   ;;  %p478_p0 = scmp.ge.s32.totalorder %s536_s9, 1  ;;  %s536_s9 = sphi %s568_s9, %s12_s9  }
   0x2   : > { %p119_p1 = scmp.lt.s32.totalorder %s536_s9, 3 }
   0x4   : > { %p120_p2 = pnand %p478_p0, %p119_p1 }
   0x5   : > { %p142_p3 = scmp.lt.s32.totalorder (!%p120_p2), %s474_s10, 1  ;;  %s538_s15 = smov (!%p120_p2), 96  }
   0x6   : > { %123 = sbr.rel (%p120_p2) target bundleno = 1197 (0x4ad), region = 28  ;;  %s539_s16 = smov (!%p120_p2), 88  }
   0x7   : > { %s540_s17 = smov (!%p120_p2), 120   ;;  %s541_s18 = smov (!%p120_p2), 64  }
   0x8   : > { %s542_s19 = smov (!%p120_p2), 80   ;;  %s543_s20 = smov (!%p120_p2), 72  }
   0x9   : > { %s544_s21 = smov (!%p120_p2), 112   ;;  %s545_s22 = smov (!%p120_p2), 104  }
   0xa   : > { %s547_s26 = smov (!%p120_p2), 56   ;;  %s548_s27 = smov (!%p120_p2), 40  }
   0xb   : > { %s638_s10 = smov (!%p142_p3, %s474_s10), 1  ;;  %vm169_vm0 = vcmask 64512   ;;  %v546_v12 = vmov -1e+09   ;;  %vm206_vm2 = vcmask 1043456   ;;  %s549_s28 = smov 48  }
   0xc   : > { %s479_s11 = sshll.u32 %s638_s10, 2  ;;  %s148_s25 = scalar_lea.vmem %s635_s1, %s638_s10  ;;  %vm405_vm3 = vcmask 130048   ;;  %vm407_vm4 = vcmask 195584   ;;  %vm410_vm5 = vcmask 257024  }
   0xd   : > { %s145_s14 = scalar_lea.vmem %s634_s0, %s479_s11  ;;  %v158_v11 = vld [vmem:[%s148_s25] sm:$0x1]  ;;  %s550_s29 = smov 8  }
   0xe   : > { %v154_v0 = vld [vmem:[%s145_s14] sm:$0xf]  ;;  %vm159_vm1 = vcmp.gt.f32.partialorder %v158_v11, 0.0  ;;  %s551_s30 = smov 16   ;;  %s552_s3 = smov 24  }
   0xf   : > { %v165_v1 = vunpack.c.l.b16 %v154_v0  ;;  %v155_v3 = vunpack.c.l.bf16 %v154_v0  ;;  %v160_v13 = vsel %vm159_vm1, 0.0, %v546_v12  ;;  %s152_s6 = scalar_lea.vmem %s636_s2, %s479_s11 }
  0x10   : > { %v162_v14 = vperm.slane %v160_v13, 0 }
  0x11   : > { %v584_v2 = vpack.c.b16 %v165_v1, %v165_v1  ;;  %v156_v6 = vmul.f32 0.35351563, %v155_v3 }
  0x13   : > { %167 = vrot.lane.b32.xlu0 %v584_v2, %s538_s15  ;;  %226 = vrot.lane.b32.xlu1 %v584_v2, %s539_s16  ;;  %v157_v7 = vpack.c.bf16 %v156_v6, %v156_v6 }
  0x15   : > { %224 = vrot.lane.b32.xlu2 %v157_v7, %s540_s17 }
  0x1d   : > { %201 = vrot.lane.b32.xlu2 %v584_v2, %s541_s18 }
  0x25   : > { %282 = vrot.lane.b32.xlu2 %v584_v2, %s542_s19 }
  0x2d   : > { %338 = vrot.lane.b32.xlu2 %v584_v2, %s543_s20 }
  0x35   : > { %280 = vrot.lane.b32.xlu2 %v157_v7, %s544_s21 }
  0x3d   : > { %336 = vrot.lane.b32.xlu2 %v157_v7, %s545_s22 }
  0x6f   : > { %v225_v10 = vpop.permute.xlu2 %224 }
  0x77   : > { %v202_v19 = vpop.permute.xlu2 %201 }
  0x78   : > { %v208_v24 = vsel %vm206_vm2, %v202_v19, 0 }
  0x79   : > { %217 = vmatpush.bf16.msra.mxu1 %v208_v24 }
  0x7f   : > { %v283_v20 = vpop.permute.xlu2 %282 }
  0x80   : > { %v288_v22 = vsel %vm169_vm0, %v283_v20, 0 }
  0x81   : > { %297 = vmatpush.bf16.xpose.msrb.mxu1 %v288_v22 }
  0x85   : > { %v168_v4 = vpop.permute.xlu0 %167  ;;  %v227_v8 = vpop.permute.xlu1 %226 }
  0x86   : > { %v174_v5 = vsel %vm169_vm0, %v168_v4, 0  ;;  %v232_v9 = vsel %vm169_vm0, %v227_v8, 0 }
  0x87   : > { %183 = vmatpush.bf16.xpose.msra.mxu0 %v174_v5  ;;  %241 = vmatpush.bf16.xpose.msra.mxu2 %v232_v9  ;;  %v339_v21 = vpop.permute.xlu2 %338 }
  0x88   : > { %v344_v23 = vsel %vm169_vm0, %v339_v21, 0 }
  0x8e   : > { %481 = vmatmul.msk.bf16.vlgmr.msra.gmra.mxu0 %vm169_vm0, %v157_v7  ;;  %483 = vmatmul.msk.bf16.vlgmr.msra.gmra.mxu2 %vm169_vm0, %v225_v10 }
  0x8f   : > { %353 = vmatpush.bf16.xpose.msrb.mxu0 %v344_v23  ;;  %v281_v25 = vpop.permute.xlu2 %280 }
  0x97   : > { %v337_v26 = vpop.permute.xlu2 %336 }
  0x9e   : > { %487 = vmatmul.msk.bf16.vlgmr.msrb.gmra.mxu0 %vm169_vm0, %v337_v26 }
 0x10b   : > { %v185_v15 = vpop.f32.mrf.mxu0 }
 0x10c   : > { %v186_v16 = vadd.f32 %v185_v15, %v162_v14 }
 0x10e   : > { %v189_v17 = vsel %vm169_vm0, %v186_v16, -inf }
 0x10f   : > { %190 = vmax.xlane.f32.xlu0 %v189_v17 }
 0x111   : > { %v243_v27 = vpop.f32.mrf.mxu2 }
 0x112   : > { %v244_v28 = vadd.f32 %v243_v27, %v162_v14 }
 0x113   : > { %v187_v18 = vpop.f32.mrf.mxu0 }
 0x114   : > { %v247_v30 = vsel %vm169_vm0, %v244_v28, -inf }
 0x115   : > { %248 = vmax.xlane.f32.xlu2 %v247_v30 }
 0x119   : > { %v245_v33 = vpop.f32.mrf.mxu2 }
 0x11b   : > { %v355_v36 = vpop.f32.mrf.mxu0 }
 0x11c   : > { %v356_v37 = vadd.f32 %v355_v36, %v162_v14 }
 0x11e   : > { %v359_v38 = vsel %vm169_vm0, %v356_v37, -inf }
 0x123   : > { %v357_v40 = vpop.f32.mrf.mxu0 }
 0x182   : > { %v191_v29 = vpop.xlane.xlu0 %190 }
 0x183   : > { %v192_v31 = vsub.f32 %v186_v16, %v191_v29 }
 0x185   : > { %v193_v32 = vmul.f32 1.442695, %v192_v31 }
 0x187   : > { %514 = vpow2.f32 %v193_v32 }
 0x188   : > { %v249_v45 = vpop.xlane.xlu2 %248 }
 0x189   : > { %v250_v47 = vsub.f32 %v244_v28, %v249_v45 }
 0x18b   : > { %v251_v48 = vmul.f32 1.442695, %v250_v47 }
 0x18d   : > { %v515_v34 = vpop.eup %514 }
 0x18e   : > { %v195_v35 = vsel %vm169_vm0, %v515_v34, 0.0 }
 0x18f   : > { %196 = vadd.xlane.f32.xlu1 %v195_v35 }
 0x197   : > { %360 = vmax.xlane.f32.xlu1 %v359_v38 }
 0x1b0   : > { %259 = vrot.lane.b32.xlu1 %v584_v2, %s547_s26 }
 0x1b8   : > { %371 = vrot.lane.b32.xlu1 %v584_v2, %s548_s27 }
 0x202   : > { %v197_v39 = vpop.xlane.xlu1 %196 }
 0x203   : > { %516 = vrcp.f32 %v197_v39 }
 0x204   : > { %518 = vpow2.f32 %v251_v48 }
 0x209   : > { %v517_v41 = vpop.eup %516 }
 0x20a   : > { %v199_v42 = vmul.f32 %v517_v41, %v515_v34  ;;  %v361_v49 = vpop.xlane.xlu1 %360  ;;  %v519_v55 = vpop.eup %518 }
 0x20b   : > { %v362_v52 = vsub.f32 %v356_v37, %v361_v49  ;;  %v253_v57 = vsel %vm169_vm0, %v519_v55, 0.0 }
 0x20c   : > { %v200_v43 = vpack.c.bf16 %v199_v42, %v199_v42 }
 0x20d   : > { %v363_v54 = vmul.f32 1.442695, %v362_v52 }
 0x20e   : > { %482 = vmatmul.msk.bf16.vlgmr.msra.gmra.mxu1 %vm169_vm0, %v200_v43 }
 0x20f   : > { %520 = vpow2.f32 %v363_v54 }
 0x215   : > { %v521_v58 = vpop.eup %520 }
 0x216   : > { %v365_v59 = vsel %vm169_vm0, %v521_v58, 0.0 }
 0x21e   : > { %485 = vmatmul.msk.bf16.vlgmr.msrb.gmra.mxu1 %vm169_vm0, %v281_v25 }
 0x222   : > { %v260_v60 = vpop.permute.xlu1 %259 }
 0x223   : > { %v265_v61 = vsel %vm206_vm2, %v260_v60, 0 }
 0x224   : > { %274 = vmatpush.bf16.msra.mxu3 %v265_v61 }
 0x22a   : > { %v372_v62 = vpop.permute.xlu1 %371 }
 0x22b   : > { %v377_v63 = vsel %vm206_vm2, %v372_v62, 0 }
 0x22c   : > { %386 = vmatpush.bf16.msrb.mxu2 %v377_v63 }
 0x28b   : > { %v611_v44 = vpop.f32.mrf.mxu1 }
 0x293   : > { %v221_v46 = vpop.f32.mrf.mxu1 }
 0x29b   : > { %v299_v50 = vpop.f32.mrf.mxu1 }
 0x29c   : > { %v300_v51 = vadd.f32 %v299_v50, %v162_v14 }
 0x29e   : > { %v303_v53 = vsel %vm169_vm0, %v300_v51, -inf }
 0x29f   : > { %304 = vmax.xlane.f32.xlu0 %v303_v53 }
 0x2a3   : > { %v301_v56 = vpop.f32.mrf.mxu1 }
 0x2a7   : > { %254 = vadd.xlane.f32.xlu0 %v253_v57 }
 0x2af   : > { %366 = vadd.xlane.f32.xlu0 %v365_v59 }
 0x312   : > { %v305_v0 = vpop.xlane.xlu0 %304 }
 0x313   : > { %v306_v1 = vsub.f32 %v300_v51, %v305_v0 }
 0x315   : > { %v307_v3 = vmul.f32 1.442695, %v306_v1 }
 0x317   : > { %522 = vpow2.f32 %v307_v3 }
 0x31a   : > { %v255_v4 = vpop.xlane.xlu0 %254 }
 0x31b   : > { %524 = vrcp.f32 %v255_v4 }
 0x31d   : > { %v523_v5 = vpop.eup %522 }
 0x31e   : > { %v309_v6 = vsel %vm169_vm0, %v523_v5, 0.0 }
 0x31f   : > { %310 = vadd.xlane.f32.xlu0 %v309_v6 }
 0x321   : > { %v525_v7 = vpop.eup %524 }
 0x322   : > { %v367_v8 = vpop.xlane.xlu0 %366  ;;  %v257_v9 = vmul.f32 %v525_v7, %v519_v55 }
 0x323   : > { %526 = vrcp.f32 %v367_v8 }
 0x324   : > { %v258_v10 = vpack.c.bf16 %v257_v9, %v257_v9 }
 0x326   : > { %484 = vmatmul.msk.bf16.vlgmr.msra.gmra.mxu3 %vm169_vm0, %v258_v10 }
 0x329   : > { %v527_v11 = vpop.eup %526 }
 0x32a   : > { %v369_v12 = vmul.f32 %v527_v11, %v521_v58 }
 0x32c   : > { %v370_v13 = vpack.c.bf16 %v369_v12, %v369_v12 }
 0x32e   : > { %488 = vmatmul.msk.bf16.vlgmr.msrb.gmra.mxu2 %vm169_vm0, %v370_v13 }
 0x333   : > { %315 = vrot.lane.b32.xlu0 %v584_v2, %s549_s28 }
 0x392   : > { %v311_v14 = vpop.xlane.xlu0 %310 }
 0x393   : > { %528 = vrcp.f32 %v311_v14 }
 0x399   : > { %v529_v15 = vpop.eup %528 }
 0x39a   : > { %v313_v16 = vmul.f32 %v529_v15, %v523_v5 }
 0x39c   : > { %v314_v19 = vpack.c.bf16 %v313_v16, %v313_v16 }
 0x3a5   : > { %v316_v17 = vpop.permute.xlu0 %315 }
 0x3a6   : > { %v321_v18 = vsel %vm206_vm2, %v316_v17, 0 }
 0x3a7   : > { %330 = vmatpush.bf16.msrb.mxu3 %v321_v18 }
 0x3a9   : > { %v276_v20 = vpop.f32.mrf.mxu3 }
 0x3aa   : > { %486 = vmatmul.msk.bf16.vlgmr.msrb.gmra.mxu3 %vm169_vm0, %v314_v19  ;;  %393 = vrot.lane.b32.xlu2 %v276_v20, %s550_s29 }
 0x3b1   : > { %v278_v21 = vpop.f32.mrf.mxu3  ;;  %v388_v22 = vpop.f32.mrf.mxu2 }
 0x3b9   : > { %v390_v23 = vpop.f32.mrf.mxu2 }
 0x404   : > { %v394_v26 = vpop.permute.xlu2 %393 }
 0x405   : > { %v404_v27 = vsel %vm169_vm0, %v611_v44, %v394_v26 }
 0x42d   : > { %v332_v24 = vpop.f32.mrf.mxu3 }
 0x42e   : > { %397 = vrot.lane.b32.xlu1 %v332_v24, %s551_s30 }
 0x435   : > { %v334_v2 = vpop.f32.mrf.mxu3 }
 0x436   : > { %401 = vrot.lane.b32.xlu1 %v388_v22, %s552_s3 }
 0x4a0   : > { %v398_v25 = vpop.permute.xlu1 %397 }
 0x4a1   : > { %v406_v28 = vsel %vm405_vm3, %v404_v27, %v398_v25 }
 0x4a8   : > { %v402_v29 = vpop.permute.xlu1 %401 }
 0x4a9   : > { %v408_v30 = vsel %vm407_vm4, %v406_v28, %v402_v29 }
 0x4aa   : > { %v409_v31 = vpack.c.bf16 %v408_v30, %v408_v30 }
 0x4ac   : > { %411 = vst.msk [vmem:[%s152_s6] sm:$0xf] %vm410_vm5, %v409_v31 }
 0x4ad PF: > { %s12_s9 = sadd.s32 1, %s536_s9  }
 0x4ae   : > { %p9_p4 = scmp.ge.s32.totalorder %s12_s9, 4  }
 0x4b0   :  { %11 = sbr.rel (!%p9_p4) target bundleno = 1 (0x1), region = 61 }

// kernel: encoder_decoder_forward.31
= control target key start
LH: loop header
LB: loop body
LE: loop exit
PB: predicated region body
PF: predicated region fallthrough
CT: control target
= control target key end

     0   :  { %s592_s24 = smov 0   ;;  %s654_s0 = inlined_call_operand.vmem [shape: bf16[16,32], index: 0, kind: input, shape index: {}]   ;;  %s655_s1 = inlined_call_operand.vmem [shape: f32[1,32], index: 1, kind: input, shape index: {}]   ;;  %s656_s2 = inlined_call_operand.vmem [shape: f32[1,32], index: 2, kind: input, shape index: {}]   ;;  %s657_s3 = inlined_call_operand.vmem [shape: bf16[32,64], index: 3, kind: input, shape index: {}]   ;;  %s658_s4 = inlined_call_operand.vmem [shape: f32[1,64], index: 4, kind: input, shape index: {}]   ;;  %s659_s5 = inlined_call_operand.vmem [shape: bf16[64,32], index: 5, kind: input, shape index: {}]   ;;  %s660_s6 = inlined_call_operand.vmem [shape: f32[1,32], index: 6, kind: input, shape index: {}]   ;;  %s661_s7 = inlined_call_operand.vmem [shape: bf16[16,32], index: 7, kind: output, shape index: {}]  }
   0x1 LB: > { %s483_s25 = sadd.s32 4294967295, %s549_s24   ;;  %p487_p0 = scmp.ge.s32.totalorder %s549_s24, 1  ;;  %s549_s24 = sphi %s592_s24, %s17_s24  }
   0x2   : > { %p236_p1 = scmp.lt.s32.totalorder %s549_s24, 3 }
   0x4   : > { %p237_p2 = pnand %p487_p0, %p236_p1 }
   0x5   : > { %p266_p3 = scmp.lt.s32.totalorder (!%p237_p2), %s483_s25, 1 }
   0x6   : > { %240 = sbr.rel (%p237_p2) target bundleno = 571 (0x23b), region = 48 }
   0xb   : > { %s663_s25 = smov (!%p266_p3, %s483_s25), 1  ;;  %vm279_vm0 = vcmask 261120   ;;  %v551_v3 = vmov 32.0   ;;  %v519_v15 = vld [vmem:[%s657_s3 + $0x8] sm:$0xff]  ;;  %v518_v16 = vld [vmem:[%s657_s3] sm:$0xff]  ;;  %v523_v24 = vld [vmem:[%s659_s5 + $0x18] sm:$0xff] }
   0xc   : > { %s488_s26 = sshll.u32 %s663_s25, 2  ;;  %537 = vrcp.f32 %v551_v3  ;;  %364 = vmatpush.bf16.msra.mxu0 %v519_v15  ;;  %417 = vmatpush.bf16.msra.mxu1 %v523_v24  ;;  %v522_v26 = vld [vmem:[%s659_s5 + $0x10] sm:$0xff]  ;;  %v533_v36 = vld [vmem:[%s655_s1] ss:$0 sm:$0xff]  ;;  %v521_v48 = vld [vmem:[%s659_s5 + $0x8] sm:$0xff]  ;;  %vm409_vm8 = vcmask 523264  }
   0xd   : > { %s269_s29 = scalar_lea.vmem %s654_s0, %s488_s26  ;;  %v534_v43 = vld [vmem:[%s656_s2] ss:$0 sm:$0xff]  ;;  %s273_s9 = scalar_lea.vmem %s661_s7, %s488_s26  ;;  %vm428_vm9 = vcmask 257024  }
   0xe   : > { %v275_v0 = vld [vmem:[%s269_s29] sm:$0xf] }
   0xf   : > { %v608_v1 = vunpack.c.l.bf16 %v275_v0  ;;  %v520_v49 = vld [vmem:[%s659_s5] sm:$0xff] }
  0x10   : > { %365 = vmatpush.bf16.msra.mxu0 %v518_v16  ;;  %418 = vmatpush.bf16.msra.mxu1 %v522_v26  ;;  %v535_v50 = vld [vmem:[%s658_s4] ss:$0 sm:$0xff] }
  0x11   : > { %v280_v2 = vsel %vm279_vm0, %v608_v1, 0.0  ;;  %v536_v56 = vld [vmem:[%s660_s6] ss:$0 sm:$0xff] }
  0x12   : > { %281 = vadd.xlane.f32.xlu0 %v280_v2  ;;  %v538_v4 = vpop.eup %537 }
  0x13   : > { %v284_v5 = vmul.f32 32.0, %v538_v4  ;;  %vm288_vm1 = vweird.f32 %v538_v4 }
  0x14   : > { %419 = vmatpush.bf16.msra.mxu1 %v521_v48 }
  0x15   : > { %v285_v6 = vsub.f32 1.0, %v284_v5 }
  0x17   : > { %v286_v7 = vmul.f32 %v538_v4, %v285_v6 }
  0x18   : > { %420 = vmatpush.bf16.msra.mxu1 %v520_v49 }
  0x19   : > { %v287_v8 = vadd.f32 %v538_v4, %v286_v7 }
  0x1b   : > { %v289_v9 = vsel %vm288_vm1, %v538_v4, %v287_v8 }
  0x85   : > { %v282_v10 = vpop.xlane.xlu0 %281 }
  0x86   : > { %v290_v11 = vmul.f32 %v289_v9, %v282_v10 }
  0x88   : > { %v291_v12 = vsub.f32 %v608_v1, %v290_v11 }
  0x8a   : > { %v292_v13 = vmul.f32 %v291_v12, %v291_v12  ;;  %v328_v41 = vmul.f32 %v533_v36, %v291_v12 }
  0x8c   : > { %v293_v14 = vsel %vm279_vm0, %v292_v13, 0.0 }
  0x8d   : > { %294 = vadd.xlane.f32.xlu0 %v293_v14 }
 0x100   : > { %v295_v17 = vpop.xlane.xlu0 %294 }
 0x101   : > { %v296_v18 = vmul.f32 0.032258064, %v295_v17 }
 0x103   : > { %539 = vrsqrt.f32 %v296_v18  ;;  %vm304_vm2 = vcmp.eq.f32.partialorder %v296_v18, inf  ;;  %v307_v28 = vand.u32 2147483648, %v296_v18  ;;  %vm306_vm3 = vcmp.eq.f32.partialorder %v296_v18, 0.0 }
 0x109   : > { %v540_v19 = vpop.eup %539 }
 0x10a   : > { %v298_v20 = vmul.f32 %v540_v19, %v296_v18 }
 0x10c   : > { %v299_v21 = vmul.f32 %v540_v19, %v298_v20 }
 0x10e   : > { %v300_v22 = vmul.f32 0.5, %v299_v21 }
 0x110   : > { %v301_v23 = vsub.f32 1.5, %v300_v22 }
 0x112   : > { %v302_v25 = vmul.f32 %v540_v19, %v301_v23 }
 0x114   : > { %v303_v27 = vmul.f32 %v302_v25, %v296_v18 }
 0x116   : > { %v305_v29 = vsel %vm304_vm2, %v296_v18, %v303_v27 }
 0x117   : > { %v308_v30 = vsel %vm306_vm3, %v307_v28, %v305_v29 }
 0x118   : > { %v309_v31 = vadd.f32 1e-06, %v308_v30 }
 0x11a   : > { %541 = vrcp.f32 %v309_v31  ;;  %v321_v35 = vand.u32 2147483648, %v309_v31  ;;  %v319_v38 = vand.u32 2147483647, %v309_v31  ;;  %vm315_vm5 = vweird.f32 %v309_v31 }
 0x11c   : > { %v322_v40 = vor.u32 1.1754944e-38, %v321_v35  ;;  %vm320_vm7 = vcmp.eq.f32.partialorder %v319_v38, 8.507059e+37 }
 0x120   : > { %v542_v32 = vpop.eup %541 }
 0x121   : > { %v311_v33 = vmul.f32 %v542_v32, %v309_v31  ;;  %vm316_vm4 = vweird.f32 %v542_v32 }
 0x122   : > { %vm317_vm6 = vmor %vm315_vm5, %vm316_vm4 }
 0x123   : > { %v312_v34 = vsub.f32 1.0, %v311_v33 }
 0x125   : > { %v313_v37 = vmul.f32 %v542_v32, %v312_v34 }
 0x127   : > { %v314_v39 = vadd.f32 %v542_v32, %v313_v37 }
 0x129   : > { %v318_v42 = vsel %vm317_vm6, %v542_v32, %v314_v39 }
 0x12a   : > { %v323_v44 = vsel %vm320_vm7, %v322_v40, %v318_v42 }
 0x12b   : > { %v329_v45 = vmul.f32 %v328_v41, %v323_v44 }
 0x12d   : > { %v333_v46 = vadd.f32 %v534_v43, %v329_v45 }
 0x12f   : > { %v334_v47 = vpack.c.bf16 %v333_v46, %v333_v46 }
 0x131   : > { %498 = vmatmul.msk.bf16.vlgmr.msra.gmra.mxu0 %vm279_vm0, %v334_v47 }
 0x1ae   : > { %v367_v51 = vpop.f32.mrf.mxu0 }
 0x1af   : > { %v368_v52 = vadd.f32 %v535_v50, %v367_v51 }
 0x1b1   : > { %v371_v53 = vmax.f32 %v368_v52, 0.0 }
 0x1b3   : > { %v372_v54 = vpack.c.bf16 %v371_v53, %v371_v53 }
 0x1b5   : > { %515 = vmatmul.msk.bf16.vlgmr.msra.gmra.mxu1 %vm409_vm8, %v372_v54 }
 0x1b6   : > { %v369_v55 = vpop.f32.mrf.mxu0 }
 0x232   : > { %v422_v57 = vpop.f32.mrf.mxu1 }
 0x233   : > { %v423_v58 = vadd.f32 %v536_v56, %v422_v57 }
 0x235   : > { %v426_v59 = vadd.f32 %v423_v58, %v608_v1 }
 0x237   : > { %v427_v60 = vpack.c.bf16 %v426_v59, %v426_v59 }
 0x239   : > { %429 = vst.msk [vmem:[%s273_s9] sm:$0xf] %vm428_vm9, %v427_v60 }
 0x23a   : > { %v424_v61 = vpop.f32.mrf.mxu1 }
 0x23b PF: > { %s17_s24 = sadd.s32 1, %s549_s24  }
 0x23c   : > { %p14_p4 = scmp.ge.s32.totalorder %s17_s24, 4  }
 0x23e   :  { %16 = sbr.rel (!%p14_p4) target bundleno = 1 (0x1), region = 78 }

// kernel: encoder_decoder_forward.41
= control target key start
LH: loop header
LB: loop body
LE: loop exit
PB: predicated region body
PF: predicated region fallthrough
CT: control target
= control target key end

     0   :  { %s318_s12 = smov 0   ;;  %s338_s0 = inlined_call_operand.vmem [shape: bf16[16,32], index: 0, kind: input, shape index: {}]   ;;  %s339_s1 = inlined_call_operand.vmem [shape: bf16[32,64], index: 1, kind: input, shape index: {}]   ;;  %s340_s2 = inlined_call_operand.vmem [shape: f32[1,64], index: 2, kind: input, shape index: {}]   ;;  %s341_s3 = inlined_call_operand.vmem [shape: bf16[16,64], index: 3, kind: output, shape index: {}]  }
   0x1 LB: > { %s261_s13 = sadd.s32 4294967295, %s296_s12   ;;  %p265_p0 = scmp.ge.s32.totalorder %s296_s12, 1  ;;  %s296_s12 = sphi %s318_s12, %s13_s12  }
   0x2   : > { %p136_p1 = scmp.lt.s32.totalorder %s296_s12, 3 }
   0x4   : > { %p137_p2 = pnand %p265_p0, %p136_p1 }
   0x5   : > { %p158_p3 = scmp.lt.s32.totalorder (!%p137_p2), %s261_s13, 1 }
   0x6   : > { %140 = sbr.rel (%p137_p2) target bundleno = 153 (0x99), region = 32 }
   0xb   : > { %v280_v0 = vld [vmem:[%s339_s1 + $0x8] sm:$0xff]  ;;  %v279_v1 = vld [vmem:[%s339_s1] sm:$0xff]  ;;  %s343_s13 = smov (!%p158_p3, %s261_s13), 1  ;;  %vm188_vm0 = vcmask 261120   ;;  %vm206_vm1 = vcmask 519168  }
   0xc   : > { %198 = vmatpush.bf16.msra.mxu0 %v280_v0  ;;  %s266_s18 = sshll.u32 %s343_s13, 2  ;;  %v289_v3 = vld [vmem:[%s340_s2] ss:$0 sm:$0xff] }
   0xd   : > { %s161_s21 = scalar_lea.vmem %s338_s0, %s266_s18  ;;  %s165_s26 = scalar_lea.vmem %s341_s3, %s266_s18 }
   0xe   : > { %v167_v2 = vld [vmem:[%s161_s21] sm:$0xf] }
  0x10   : > { %199 = vmatpush.bf16.msra.mxu0 %v279_v1 }
  0x13   : > { %276 = vmatmul.msk.bf16.vlgmr.msra.gmra.mxu0 %vm188_vm0, %v167_v2 }
  0x90   : > { %v201_v4 = vpop.f32.mrf.mxu0 }
  0x91   : > { %v202_v5 = vadd.f32 %v289_v3, %v201_v4 }
  0x93   : > { %v205_v6 = vpack.c.bf16 %v202_v5, %v202_v5 }
  0x95   : > { %207 = vst.msk [vmem:[%s165_s26] sm:$0xf] %vm206_vm1, %v205_v6 }
  0x98   : > { %v203_v7 = vpop.f32.mrf.mxu0 }
  0x99 PF: > { %s13_s12 = sadd.s32 1, %s296_s12  }
  0x9a   : > { %p10_p4 = scmp.ge.s32.totalorder %s13_s12, 4  }
  0x9c   :  { %12 = sbr.rel (!%p10_p4) target bundleno = 1 (0x1), region = 62 }

// kernel: encoder_decoder_forward.35
= control target key start
LH: loop header
LB: loop body
LE: loop exit
PB: predicated region body
PF: predicated region fallthrough
CT: control target
= control target key end

     0   :  { %12 = vsyncpa [#allocation3], 0  ;;  %s667_s24 = smov 0   ;;  %s729_s0 = inlined_call_operand.vmem [shape: bf16[16,32], index: 0, kind: input, shape index: {}]   ;;  %s730_s1 = inlined_call_operand.vmem [shape: f32[1,32], index: 1, kind: input, shape index: {}]   ;;  %s731_s2 = inlined_call_operand.vmem [shape: f32[1,32], index: 2, kind: input, shape index: {}]   ;;  %s732_s3 = inlined_call_operand.vmem [shape: bf16[32,64], index: 3, kind: input, shape index: {}]   ;;  %s733_s4 = inlined_call_operand.vmem [shape: f32[1,64], index: 4, kind: input, shape index: {}]   ;;  %s734_s5 = inlined_call_operand.vmem [shape: bf16[64,32], index: 5, kind: input, shape index: {}]   ;;  %s735_s6 = inlined_call_operand.hbm [shape: f32[1,32], index: 6, kind: input, shape index: {}]   ;;  %s736_s7 = inlined_call_operand.vmem [shape: bf16[16,32], index: 7, kind: output, shape index: {}]  }
   0x1 LB: > { %s510_s25 = sadd.s32 4294967295, %s623_s24   ;;  %p512_p0 = scmp.ge.s32.totalorder %s623_s24, 1  ;;  %s623_s24 = sphi %s667_s24, %s18_s24  }
   0x2   : > { %p201_p1 = scmp.lt.s32.totalorder %s623_s24, 3  ;;  %s228_s28 = sshll.u32 %s735_s6, 4  ;;  %s229_s28 = int_to_ptr.hbm [resolvable:$true] %s228_s28 }
   0x3   : > { %p561_p3 = scmp.eq.s32.totalorder %s510_s25, 0  ;;  %s625_s29 = smov [#allocation2]  }
   0x4   : > { %p202_p2 = pnand %p512_p0, %p201_p1  ;;  %s230_s30 = sshll.u32 %s625_s29, 4  ;;  %s231_s30 = int_to_ptr.vmem [resolvable:$true] %s230_s30 }
   0x6   : > { %p557_p4 = pneg %p202_p2  ;;  %250 = sbr.rel (%p202_p2) target bundleno = 574 (0x23e), region = 48 }
   0x8   : > { %p558_p5 = pnand %p561_p3, %p557_p4 }
   0xa   : > { %560 = dma.hbm_to_vmem [thread:$0]  (!%p558_p5), %s229_s28, 16, %s231_s30, [#allocation3]  }
   0xb   : > { %618 = dma.done.wait (%p561_p3), [#allocation3], 16  }
   0xc   : > { %620 = vsyncadd (%p561_p3), [#allocation3], 4294967280  ;;  %p281_p6 = scmp.lt.s32.totalorder %s510_s25, 1  ;;  %vm294_vm0 = vcmask 261120   ;;  %v626_v3 = vmov 32.0   ;;  %v548_v15 = vld [vmem:[%s732_s3 + $0x8] sm:$0xff] }
   0xd   : > { %577 = vrcp.f32 %v626_v3  ;;  %379 = vmatpush.bf16.msra.mxu0 %v548_v15  ;;  %v547_v16 = vld [vmem:[%s732_s3] sm:$0xff]  ;;  %v552_v24 = vld [vmem:[%s734_s5 + $0x18] sm:$0xff]  ;;  %v551_v26 = vld [vmem:[%s734_s5 + $0x10] sm:$0xff]  ;;  %vm424_vm8 = vcmask 523264   ;;  %vm443_vm9 = vcmask 257024  }
   0xe   : > { %s738_s25 = smov (!%p281_p6, %s510_s25), 1  ;;  %432 = vmatpush.bf16.msra.mxu1 %v552_v24  ;;  %v573_v36 = vld [vmem:[%s730_s1] ss:$0 sm:$0xff]  ;;  %v550_v48 = vld [vmem:[%s734_s5 + $0x8] sm:$0xff] }
   0xf   : > { %s517_s8 = sshll.u32 %s738_s25, 2  ;;  %v574_v43 = vld [vmem:[%s731_s2] ss:$0 sm:$0xff] }
  0x10   : > { %s284_s11 = scalar_lea.vmem %s729_s0, %s517_s8  ;;  %v549_v49 = vld [vmem:[%s734_s5] sm:$0xff]  ;;  %s288_s12 = scalar_lea.vmem %s736_s7, %s517_s8 }
  0x11   : > { %v290_v0 = vld [vmem:[%s284_s11] sm:$0xf]  ;;  %380 = vmatpush.bf16.msra.mxu0 %v547_v16 }
  0x12   : > { %v686_v1 = vunpack.c.l.bf16 %v290_v0  ;;  %433 = vmatpush.bf16.msra.mxu1 %v551_v26  ;;  %v575_v50 = vld [vmem:[%s733_s4] ss:$0 sm:$0xff] }
  0x13   : > { %v578_v4 = vpop.eup %577  ;;  %v576_v56 = vld [vmem:[#allocation2] ss:$0 sm:$0xff] }
  0x14   : > { %v295_v2 = vsel %vm294_vm0, %v686_v1, 0.0  ;;  %v299_v5 = vmul.f32 32.0, %v578_v4  ;;  %vm303_vm1 = vweird.f32 %v578_v4 }
  0x15   : > { %296 = vadd.xlane.f32.xlu0 %v295_v2 }
  0x16   : > { %v300_v6 = vsub.f32 1.0, %v299_v5  ;;  %434 = vmatpush.bf16.msra.mxu1 %v550_v48 }
  0x18   : > { %v301_v7 = vmul.f32 %v578_v4, %v300_v6 }
  0x1a   : > { %v302_v8 = vadd.f32 %v578_v4, %v301_v7  ;;  %435 = vmatpush.bf16.msra.mxu1 %v549_v49 }
  0x1c   : > { %v304_v9 = vsel %vm303_vm1, %v578_v4, %v302_v8 }
  0x88   : > { %v297_v10 = vpop.xlane.xlu0 %296 }
  0x89   : > { %v305_v11 = vmul.f32 %v304_v9, %v297_v10 }
  0x8b   : > { %v306_v12 = vsub.f32 %v686_v1, %v305_v11 }
  0x8d   : > { %v307_v13 = vmul.f32 %v306_v12, %v306_v12  ;;  %v343_v41 = vmul.f32 %v573_v36, %v306_v12 }
  0x8f   : > { %v308_v14 = vsel %vm294_vm0, %v307_v13, 0.0 }
  0x90   : > { %309 = vadd.xlane.f32.xlu0 %v308_v14 }
 0x103   : > { %v310_v17 = vpop.xlane.xlu0 %309 }
 0x104   : > { %v311_v18 = vmul.f32 0.032258064, %v310_v17 }
 0x106   : > { %579 = vrsqrt.f32 %v311_v18  ;;  %vm319_vm2 = vcmp.eq.f32.partialorder %v311_v18, inf  ;;  %v322_v28 = vand.u32 2147483648, %v311_v18  ;;  %vm321_vm3 = vcmp.eq.f32.partialorder %v311_v18, 0.0 }
 0x10c   : > { %v580_v19 = vpop.eup %579 }
 0x10d   : > { %v313_v20 = vmul.f32 %v580_v19, %v311_v18 }
 0x10f   : > { %v314_v21 = vmul.f32 %v580_v19, %v313_v20 }
 0x111   : > { %v315_v22 = vmul.f32 0.5, %v314_v21 }
 0x113   : > { %v316_v23 = vsub.f32 1.5, %v315_v22 }
 0x115   : > { %v317_v25 = vmul.f32 %v580_v19, %v316_v23 }
 0x117   : > { %v318_v27 = vmul.f32 %v317_v25, %v311_v18 }
 0x119   : > { %v320_v29 = vsel %vm319_vm2, %v311_v18, %v318_v27 }
 0x11a   : > { %v323_v30 = vsel %vm321_vm3, %v322_v28, %v320_v29 }
 0x11b   : > { %v324_v31 = vadd.f32 1e-06, %v323_v30 }
 0x11d   : > { %581 = vrcp.f32 %v324_v31  ;;  %v336_v35 = vand.u32 2147483648, %v324_v31  ;;  %v334_v38 = vand.u32 2147483647, %v324_v31  ;;  %vm330_vm5 = vweird.f32 %v324_v31 }
 0x11f   : > { %v337_v40 = vor.u32 1.1754944e-38, %v336_v35  ;;  %vm335_vm7 = vcmp.eq.f32.partialorder %v334_v38, 8.507059e+37 }
 0x123   : > { %v582_v32 = vpop.eup %581 }
 0x124   : > { %v326_v33 = vmul.f32 %v582_v32, %v324_v31  ;;  %vm331_vm4 = vweird.f32 %v582_v32 }
 0x125   : > { %vm332_vm6 = vmor %vm330_vm5, %vm331_vm4 }
 0x126   : > { %v327_v34 = vsub.f32 1.0, %v326_v33 }
 0x128   : > { %v328_v37 = vmul.f32 %v582_v32, %v327_v34 }
 0x12a   : > { %v329_v39 = vadd.f32 %v582_v32, %v328_v37 }
 0x12c   : > { %v333_v42 = vsel %vm332_vm6, %v582_v32, %v329_v39 }
 0x12d   : > { %v338_v44 = vsel %vm335_vm7, %v337_v40, %v333_v42 }
 0x12e   : > { %v344_v45 = vmul.f32 %v343_v41, %v338_v44 }
 0x130   : > { %v348_v46 = vadd.f32 %v574_v43, %v344_v45 }
 0x132   : > { %v349_v47 = vpack.c.bf16 %v348_v46, %v348_v46 }
 0x134   : > { %527 = vmatmul.msk.bf16.vlgmr.msra.gmra.mxu0 %vm294_vm0, %v349_v47 }
 0x1b1   : > { %v382_v51 = vpop.f32.mrf.mxu0 }
 0x1b2   : > { %v383_v52 = vadd.f32 %v575_v50, %v382_v51 }
 0x1b4   : > { %v386_v53 = vmax.f32 %v383_v52, 0.0 }
 0x1b6   : > { %v387_v54 = vpack.c.bf16 %v386_v53, %v386_v53 }
 0x1b8   : > { %544 = vmatmul.msk.bf16.vlgmr.msra.gmra.mxu1 %vm424_vm8, %v387_v54 }
 0x1b9   : > { %v384_v55 = vpop.f32.mrf.mxu0 }
 0x235   : > { %v437_v57 = vpop.f32.mrf.mxu1 }
 0x236   : > { %v438_v58 = vadd.f32 %v576_v56, %v437_v57 }
 0x238   : > { %v441_v59 = vadd.f32 %v438_v58, %v686_v1 }
 0x23a   : > { %v442_v60 = vpack.c.bf16 %v441_v59, %v441_v59 }
 0x23c   : > { %444 = vst.msk [vmem:[%s288_s12] sm:$0xf] %vm443_vm9, %v442_v60 }
 0x23d   : > { %v439_v61 = vpop.f32.mrf.mxu1 }
 0x23e PF: > { %s18_s24 = sadd.s32 1, %s623_s24  }
 0x23f   : > { %p15_p7 = scmp.ge.s32.totalorder %s18_s24, 4  }
 0x241   :  { %17 = sbr.rel (!%p15_p7) target bundleno = 1 (0x1), region = 83 }
 0x246   :  { %464 = vsyncpa [#allocation3], 1 }
 0x247   :  { %466 = vsyncpa [#allocation3 + $0x1], 1 }

// kernel: encoder_decoder_forward.36
= control target key start
LH: loop header
LB: loop body
LE: loop exit
PB: predicated region body
PF: predicated region fallthrough
CT: control target
= control target key end

     0   :  { %8 = vsyncpa [#allocation3], 0  ;;  %s528_s0 = inlined_call_operand.vmem [shape: bf16[16,32], index: 0, kind: input, shape index: {}]   ;;  %s529_s1 = inlined_call_operand.hbm [shape: f32[1,32], index: 1, kind: input, shape index: {}]   ;;  %s530_s2 = inlined_call_operand.hbm [shape: f32[1,32], index: 2, kind: input, shape index: {}]   ;;  %s531_s3 = inlined_call_operand.vmem [shape: bf16[16,32], index: 3, kind: output, shape index: {}]  }
   0x1   :  { %9 = vsyncpa [#allocation5], 0  ;;  %s483_s12 = smov 0  }
   0x2 LB: > { %s126_s15 = sshll.u32 %s529_s1, 4  ;;  %s333_s16 = sadd.s32 4294967295, %s458_s12   ;;  %s458_s12 = sphi %s483_s12, %s15_s12   ;;  %s127_s15 = int_to_ptr.hbm [resolvable:$true] %s126_s15 }
   0x3   : > { %p335_p0 = scmp.ge.s32.totalorder %s458_s12, 1  ;;  %p114_p1 = scmp.lt.s32.totalorder %s458_s12, 3 }
   0x4   : > { %p361_p2 = scmp.eq.s32.totalorder %s333_s16, 0  ;;  %s460_s18 = smov [#allocation2]  }
   0x5   : > { %p494_p3 = pnand %p335_p0, %p114_p1  ;;  %s128_s19 = sshll.u32 %s460_s18, 4  ;;  %s129_s19 = int_to_ptr.vmem [resolvable:$true] %s128_s19 }
   0x6   : > { %s138_s22 = sshll.u32 %s530_s2, 4  ;;  %s461_s23 = smov [#allocation4]   ;;  %s139_s22 = int_to_ptr.hbm [resolvable:$true] %s138_s22 }
   0x7   : > { %p354_p4 = pneg %p494_p3  ;;  %s140_s24 = sshll.u32 %s461_s23, 4  ;;  %s141_s24 = int_to_ptr.vmem [resolvable:$true] %s140_s24 }
   0x8   : > { %160 = sbr.rel (%p494_p3) target bundleno = 313 (0x139), region = 32 }
   0x9   : > { %p355_p5 = pnand %p361_p2, %p354_p4 }
   0xb   : > { %357 = dma.hbm_to_vmem [thread:$0]  (!%p355_p5), %s127_s15, 16, %s129_s19, [#allocation3]  }
   0xc   : > { %360 = dma.hbm_to_vmem [thread:$0]  (!%p355_p5), %s139_s22, 16, %s141_s24, [#allocation5]  }
   0xd   : > { %449 = dma.done.wait (%p361_p2), [#allocation3], 16  }
   0xe   : > { %451 = vsyncadd (%p361_p2), [#allocation3], 4294967280 }
   0xf   : > { %453 = dma.done.wait (%p361_p2), [#allocation5], 16  }
  0x10   : > { %455 = vsyncadd (%p361_p2), [#allocation5], 4294967280  ;;  %p188_p6 = scmp.lt.s32.totalorder %s333_s16, 1  ;;  %vm200_vm0 = vcmask 261120   ;;  %v462_v3 = vmov 32.0   ;;  %vm256_vm8 = vcmask 257024  }
  0x11   : > { %378 = vrcp.f32 %v462_v3  ;;  %v377_v32 = vld [vmem:[#allocation2] ss:$0 sm:$0xff]  ;;  %v376_v37 = vld [vmem:[#allocation4] ss:$0 sm:$0xff] }
  0x12   : > { %s534_s16 = smov (!%p188_p6, %s333_s16), 1 }
  0x13   : > { %s342_s25 = sshll.u32 %s534_s16, 2 }
  0x14   : > { %s191_s28 = scalar_lea.vmem %s528_s0, %s342_s25  ;;  %s195_s4 = scalar_lea.vmem %s531_s3, %s342_s25 }
  0x15   : > { %v196_v0 = vld [vmem:[%s191_s28] sm:$0xf] }
  0x16   : > { %v199_v1 = vunpack.c.l.bf16 %v196_v0 }
  0x17   : > { %v379_v4 = vpop.eup %378 }
  0x18   : > { %v201_v2 = vsel %vm200_vm0, %v199_v1, 0.0  ;;  %v205_v5 = vmul.f32 32.0, %v379_v4  ;;  %vm209_vm1 = vweird.f32 %v379_v4 }
  0x19   : > { %202 = vadd.xlane.f32.xlu0 %v201_v2 }
  0x1a   : > { %v206_v6 = vsub.f32 1.0, %v205_v5 }
  0x1c   : > { %v207_v7 = vmul.f32 %v379_v4, %v206_v6 }
  0x1e   : > { %v208_v8 = vadd.f32 %v379_v4, %v207_v7 }
  0x20   : > { %v210_v9 = vsel %vm209_vm1, %v379_v4, %v208_v8 }
  0x8c   : > { %v203_v10 = vpop.xlane.xlu0 %202 }
  0x8d   : > { %v211_v11 = vmul.f32 %v210_v9, %v203_v10 }
  0x8f   : > { %v212_v12 = vsub.f32 %v199_v1, %v211_v11 }
  0x91   : > { %v213_v13 = vmul.f32 %v212_v12, %v212_v12  ;;  %v249_v38 = vmul.f32 %v377_v32, %v212_v12 }
  0x93   : > { %v214_v14 = vsel %vm200_vm0, %v213_v13, 0.0 }
  0x94   : > { %215 = vadd.xlane.f32.xlu0 %v214_v14 }
 0x107   : > { %v216_v15 = vpop.xlane.xlu0 %215 }
 0x108   : > { %v217_v16 = vmul.f32 0.032258064, %v216_v15 }
 0x10a   : > { %380 = vrsqrt.f32 %v217_v16  ;;  %vm225_vm2 = vcmp.eq.f32.partialorder %v217_v16, inf  ;;  %v228_v24 = vand.u32 2147483648, %v217_v16  ;;  %vm227_vm3 = vcmp.eq.f32.partialorder %v217_v16, 0.0 }
 0x110   : > { %v381_v17 = vpop.eup %380 }
 0x111   : > { %v219_v18 = vmul.f32 %v381_v17, %v217_v16 }
 0x113   : > { %v220_v19 = vmul.f32 %v381_v17, %v219_v18 }
 0x115   : > { %v221_v20 = vmul.f32 0.5, %v220_v19 }
 0x117   : > { %v222_v21 = vsub.f32 1.5, %v221_v20 }
 0x119   : > { %v223_v22 = vmul.f32 %v381_v17, %v222_v21 }
 0x11b   : > { %v224_v23 = vmul.f32 %v223_v22, %v217_v16 }
 0x11d   : > { %v226_v25 = vsel %vm225_vm2, %v217_v16, %v224_v23 }
 0x11e   : > { %v229_v26 = vsel %vm227_vm3, %v228_v24, %v226_v25 }
 0x11f   : > { %v230_v27 = vadd.f32 1e-06, %v229_v26 }
 0x121   : > { %382 = vrcp.f32 %v230_v27  ;;  %v242_v31 = vand.u32 2147483648, %v230_v27  ;;  %v240_v34 = vand.u32 2147483647, %v230_v27  ;;  %vm236_vm5 = vweird.f32 %v230_v27 }
 0x123   : > { %v243_v36 = vor.u32 1.1754944e-38, %v242_v31  ;;  %vm241_vm7 = vcmp.eq.f32.partialorder %v240_v34, 8.507059e+37 }
 0x127   : > { %v383_v28 = vpop.eup %382 }
 0x128   : > { %v232_v29 = vmul.f32 %v383_v28, %v230_v27  ;;  %vm237_vm4 = vweird.f32 %v383_v28 }
 0x129   : > { %vm238_vm6 = vmor %vm236_vm5, %vm237_vm4 }
 0x12a   : > { %v233_v30 = vsub.f32 1.0, %v232_v29 }
 0x12c   : > { %v234_v33 = vmul.f32 %v383_v28, %v233_v30 }
 0x12e   : > { %v235_v35 = vadd.f32 %v383_v28, %v234_v33 }
 0x130   : > { %v239_v39 = vsel %vm238_vm6, %v383_v28, %v235_v35 }
 0x131   : > { %v244_v40 = vsel %vm241_vm7, %v243_v36, %v239_v39 }
 0x132   : > { %v250_v41 = vmul.f32 %v249_v38, %v244_v40 }
 0x134   : > { %v254_v42 = vadd.f32 %v376_v37, %v250_v41 }
 0x136   : > { %v255_v43 = vpack.c.bf16 %v254_v42, %v254_v42 }
 0x138   : > { %257 = vst.msk [vmem:[%s195_s4] sm:$0xf] %vm256_vm8, %v255_v43 }
 0x139 PF: > { %s15_s12 = sadd.s32 1, %s458_s12  }
 0x13a   : > { %p12_p7 = scmp.ge.s32.totalorder %s15_s12, 4  }
 0x13c   :  { %14 = sbr.rel (!%p12_p7) target bundleno = 2 (0x2), region = 71 }
 0x141   :  { %277 = vsyncpa [#allocation3], 1 }
 0x142   :  { %279 = vsyncpa [#allocation3 + $0x1], 1 }
 0x143   :  { %280 = vsyncpa [#allocation5], 1 }

// kernel: encoder_decoder_forward.37
= control target key start
LH: loop header
LB: loop body
LE: loop exit
PB: predicated region body
PF: predicated region fallthrough
CT: control target
= control target key end

     0   :  { %10 = vsyncpa [#allocation3], 0  ;;  %s652_s0 = inlined_call_operand.vmem [shape: bf16[16,32], index: 0, kind: input, shape index: {}]   ;;  %s653_s1 = inlined_call_operand.vmem [shape: f32[1,32], index: 1, kind: input, shape index: {}]   ;;  %s654_s2 = inlined_call_operand.hbm [shape: f32[1,32], index: 2, kind: input, shape index: {}]   ;;  %s655_s3 = inlined_call_operand.vmem [shape: bf16[32,96], index: 3, kind: input, shape index: {}]   ;;  %s656_s4 = inlined_call_operand.hbm [shape: f32[1,96], index: 4, kind: input, shape index: {}]   ;;  %s657_s5 = inlined_call_operand.vmem [shape: bf16[16,96], index: 5, kind: output, shape index: {}]  }
   0x1   :  { %11 = vsyncpa [#allocation5], 0  ;;  %s597_s18 = smov 0  }
   0x2 LB: > { %s173_s21 = sshll.u32 %s654_s2, 4  ;;  %s425_s22 = sadd.s32 4294967295, %s562_s18   ;;  %s562_s18 = sphi %s597_s18, %s17_s18   ;;  %s174_s21 = int_to_ptr.hbm [resolvable:$true] %s173_s21 }
   0x3   : > { %p427_p0 = scmp.ge.s32.totalorder %s562_s18, 1  ;;  %p158_p1 = scmp.lt.s32.totalorder %s562_s18, 3 }
   0x4   : > { %p464_p2 = scmp.eq.s32.totalorder %s425_s22, 0  ;;  %s564_s24 = smov [#allocation2]  }
   0x5   : > { %p608_p3 = pnand %p427_p0, %p158_p1  ;;  %s175_s25 = sshll.u32 %s564_s24, 4  ;;  %s176_s25 = int_to_ptr.vmem [resolvable:$true] %s175_s25 }
   0x6   : > { %s188_s28 = sshll.u32 %s656_s4, 4  ;;  %s565_s29 = smov [#allocation4]   ;;  %s189_s28 = int_to_ptr.hbm [resolvable:$true] %s188_s28 }
   0x7   : > { %p457_p4 = pneg %p608_p3  ;;  %s190_s30 = sshll.u32 %s565_s29, 4  ;;  %s191_s30 = int_to_ptr.vmem [resolvable:$true] %s190_s30 }
   0x8   : > { %210 = sbr.rel (%p608_p3) target bundleno = 446 (0x1be), region = 40 }
   0x9   : > { %p458_p5 = pnand %p464_p2, %p457_p4 }
   0xb   : > { %460 = dma.hbm_to_vmem [thread:$0]  (!%p458_p5), %s174_s21, 16, %s176_s25, [#allocation3]  }
   0xc   : > { %463 = dma.hbm_to_vmem [thread:$0]  (!%p458_p5), %s189_s28, 16, %s191_s30, [#allocation5]  }
   0xd   : > { %553 = dma.done.wait (%p464_p2), [#allocation3], 16  }
   0xe   : > { %555 = vsyncadd (%p464_p2), [#allocation3], 4294967280 }
   0xf   : > { %557 = dma.done.wait (%p464_p2), [#allocation5], 16  }
  0x10   : > { %559 = vsyncadd (%p464_p2), [#allocation5], 4294967280  ;;  %p242_p6 = scmp.lt.s32.totalorder %s425_s22, 1  ;;  %vm255_vm0 = vcmask 261120   ;;  %v566_v3 = vmov 32.0   ;;  %v448_v15 = vld [vmem:[%s655_s3 + $0x8] sm:$0xff] }
  0x11   : > { %482 = vrcp.f32 %v566_v3  ;;  %340 = vmatpush.bf16.msra.mxu0 %v448_v15  ;;  %v447_v16 = vld [vmem:[%s655_s3] sm:$0xff]  ;;  %vm348_vm8 = vcmask 781312  }
  0x12   : > { %s660_s22 = smov (!%p242_p6, %s425_s22), 1  ;;  %v479_v34 = vld [vmem:[%s653_s1] ss:$0 sm:$0xff]  ;;  %v481_v46 = vld [vmem:[#allocation4] ss:$0 sm:$0xff] }
  0x13   : > { %s434_s6 = sshll.u32 %s660_s22, 2  ;;  %v480_v41 = vld [vmem:[#allocation2] ss:$0 sm:$0xff] }
  0x14   : > { %s245_s9 = scalar_lea.vmem %s652_s0, %s434_s6  ;;  %s249_s19 = scalar_lea.vmem %s657_s5, %s434_s6 }
  0x15   : > { %v251_v0 = vld [vmem:[%s245_s9] sm:$0xf]  ;;  %341 = vmatpush.bf16.msra.mxu0 %v447_v16 }
  0x16   : > { %v254_v1 = vunpack.c.l.bf16 %v251_v0 }
  0x17   : > { %v483_v4 = vpop.eup %482 }
  0x18   : > { %v256_v2 = vsel %vm255_vm0, %v254_v1, 0.0  ;;  %v260_v5 = vmul.f32 32.0, %v483_v4  ;;  %vm264_vm1 = vweird.f32 %v483_v4 }
  0x19   : > { %257 = vadd.xlane.f32.xlu0 %v256_v2 }
  0x1a   : > { %v261_v6 = vsub.f32 1.0, %v260_v5 }
  0x1c   : > { %v262_v7 = vmul.f32 %v483_v4, %v261_v6 }
  0x1e   : > { %v263_v8 = vadd.f32 %v483_v4, %v262_v7 }
  0x20   : > { %v265_v9 = vsel %vm264_vm1, %v483_v4, %v263_v8 }
  0x8c   : > { %v258_v10 = vpop.xlane.xlu0 %257 }
  0x8d   : > { %v266_v11 = vmul.f32 %v265_v9, %v258_v10 }
  0x8f   : > { %v267_v12 = vsub.f32 %v254_v1, %v266_v11 }
  0x91   : > { %v268_v13 = vmul.f32 %v267_v12, %v267_v12  ;;  %v304_v39 = vmul.f32 %v479_v34, %v267_v12 }
  0x93   : > { %v269_v14 = vsel %vm255_vm0, %v268_v13, 0.0 }
  0x94   : > { %270 = vadd.xlane.f32.xlu0 %v269_v14 }
 0x107   : > { %v271_v17 = vpop.xlane.xlu0 %270 }
 0x108   : > { %v272_v18 = vmul.f32 0.032258064, %v271_v17 }
 0x10a   : > { %484 = vrsqrt.f32 %v272_v18  ;;  %vm280_vm2 = vcmp.eq.f32.partialorder %v272_v18, inf  ;;  %v283_v26 = vand.u32 2147483648, %v272_v18  ;;  %vm282_vm3 = vcmp.eq.f32.partialorder %v272_v18, 0.0 }
 0x110   : > { %v485_v19 = vpop.eup %484 }
 0x111   : > { %v274_v20 = vmul.f32 %v485_v19, %v272_v18 }
 0x113   : > { %v275_v21 = vmul.f32 %v485_v19, %v274_v20 }
 0x115   : > { %v276_v22 = vmul.f32 0.5, %v275_v21 }
 0x117   : > { %v277_v23 = vsub.f32 1.5, %v276_v22 }
 0x119   : > { %v278_v24 = vmul.f32 %v485_v19, %v277_v23 }
 0x11b   : > { %v279_v25 = vmul.f32 %v278_v24, %v272_v18 }
 0x11d   : > { %v281_v27 = vsel %vm280_vm2, %v272_v18, %v279_v25 }
 0x11e   : > { %v284_v28 = vsel %vm282_vm3, %v283_v26, %v281_v27 }
 0x11f   : > { %v285_v29 = vadd.f32 1e-06, %v284_v28 }
 0x121   : > { %486 = vrcp.f32 %v285_v29  ;;  %v297_v33 = vand.u32 2147483648, %v285_v29  ;;  %v295_v36 = vand.u32 2147483647, %v285_v29  ;;  %vm291_vm5 = vweird.f32 %v285_v29 }
 0x123   : > { %v298_v38 = vor.u32 1.1754944e-38, %v297_v33  ;;  %vm296_vm7 = vcmp.eq.f32.partialorder %v295_v36, 8.507059e+37 }
 0x127   : > { %v487_v30 = vpop.eup %486 }
 0x128   : > { %v287_v31 = vmul.f32 %v487_v30, %v285_v29  ;;  %vm292_vm4 = vweird.f32 %v487_v30 }
 0x129   : > { %vm293_vm6 = vmor %vm291_vm5, %vm292_vm4 }
 0x12a   : > { %v288_v32 = vsub.f32 1.0, %v287_v31 }
 0x12c   : > { %v289_v35 = vmul.f32 %v487_v30, %v288_v32 }
 0x12e   : > { %v290_v37 = vadd.f32 %v487_v30, %v289_v35 }
 0x130   : > { %v294_v40 = vsel %vm293_vm6, %v487_v30, %v290_v37 }
 0x131   : > { %v299_v42 = vsel %vm296_vm7, %v298_v38, %v294_v40 }
 0x132   : > { %v305_v43 = vmul.f32 %v304_v39, %v299_v42 }
 0x134   : > { %v309_v44 = vadd.f32 %v480_v41, %v305_v43 }
 0x136   : > { %v310_v45 = vpack.c.bf16 %v309_v44, %v309_v44 }
 0x138   : > { %444 = vmatmul.msk.bf16.vlgmr.msra.gmra.mxu0 %vm255_vm0, %v310_v45 }
 0x1b5   : > { %v343_v47 = vpop.f32.mrf.mxu0 }
 0x1b6   : > { %v344_v48 = vadd.f32 %v481_v46, %v343_v47 }
 0x1b8   : > { %v347_v49 = vpack.c.bf16 %v344_v48, %v344_v48 }
 0x1ba   : > { %349 = vst.msk [vmem:[%s249_s19] sm:$0xf] %vm348_vm8, %v347_v49 }
 0x1bd   : > { %v345_v50 = vpop.f32.mrf.mxu0 }
 0x1be PF: > { %s17_s18 = sadd.s32 1, %s562_s18  }
 0x1bf   : > { %p14_p7 = scmp.ge.s32.totalorder %s17_s18, 4  }
 0x1c1   :  { %16 = sbr.rel (!%p14_p7) target bundleno = 2 (0x2), region = 79 }
 0x1c6   :  { %369 = vsyncpa [#allocation3], 1 }
 0x1c7   :  { %371 = vsyncpa [#allocation3 + $0x1], 1 }
 0x1c8   :  { %372 = vsyncpa [#allocation5], 1 }

// kernel: encoder_decoder_forward.40
= control target key start
LH: loop header
LB: loop body
LE: loop exit
PB: predicated region body
PF: predicated region fallthrough
CT: control target
= control target key end

     0   :  { %10 = vsyncpa [#allocation3], 0  ;;  %s525_s18 = smov 0   ;;  %s567_s0 = inlined_call_operand.vmem [shape: bf16[16,32], index: 0, kind: input, shape index: {}]   ;;  %s568_s1 = inlined_call_operand.vmem [shape: f32[1,32], index: 1, kind: input, shape index: {}]   ;;  %s569_s2 = inlined_call_operand.vmem [shape: f32[1,32], index: 2, kind: input, shape index: {}]   ;;  %s570_s3 = inlined_call_operand.vmem [shape: bf16[32,32], index: 3, kind: input, shape index: {}]   ;;  %s571_s4 = inlined_call_operand.hbm [shape: f32[1,32], index: 4, kind: input, shape index: {}]   ;;  %s572_s5 = inlined_call_operand.vmem [shape: bf16[16,32], index: 5, kind: output, shape index: {}]  }
   0x1 LB: > { %s400_s19 = sadd.s32 4294967295, %s491_s18   ;;  %p402_p0 = scmp.ge.s32.totalorder %s491_s18, 1  ;;  %s491_s18 = sphi %s525_s18, %s16_s18  }
   0x2   : > { %p157_p1 = scmp.lt.s32.totalorder %s491_s18, 3  ;;  %s178_s22 = sshll.u32 %s571_s4, 4  ;;  %s179_s22 = int_to_ptr.hbm [resolvable:$true] %s178_s22 }
   0x3   : > { %p430_p3 = scmp.eq.s32.totalorder %s400_s19, 0  ;;  %s493_s23 = smov [#allocation2]  }
   0x4   : > { %p158_p2 = pnand %p402_p0, %p157_p1  ;;  %s180_s24 = sshll.u32 %s493_s23, 4  ;;  %s181_s24 = int_to_ptr.vmem [resolvable:$true] %s180_s24 }
   0x6   : > { %p426_p4 = pneg %p158_p2  ;;  %200 = sbr.rel (%p158_p2) target bundleno = 442 (0x1ba), region = 40 }
   0x8   : > { %p427_p5 = pnand %p430_p3, %p426_p4 }
   0xa   : > { %429 = dma.hbm_to_vmem [thread:$0]  (!%p427_p5), %s179_s22, 16, %s181_s24, [#allocation3]  }
   0xb   : > { %486 = dma.done.wait (%p430_p3), [#allocation3], 16  }
   0xc   : > { %488 = vsyncadd (%p430_p3), [#allocation3], 4294967280  ;;  %p227_p6 = scmp.lt.s32.totalorder %s400_s19, 1  ;;  %vm240_vm0 = vcmask 261120   ;;  %v494_v3 = vmov 32.0   ;;  %v421_v15 = vld [vmem:[%s570_s3 + $0x8] sm:$0xff] }
   0xd   : > { %445 = vrcp.f32 %v494_v3  ;;  %325 = vmatpush.bf16.msra.mxu0 %v421_v15  ;;  %v420_v16 = vld [vmem:[%s570_s3] sm:$0xff]  ;;  %vm333_vm8 = vcmask 257024  }
   0xe   : > { %s574_s19 = smov (!%p227_p6, %s400_s19), 1  ;;  %v442_v34 = vld [vmem:[%s568_s1] ss:$0 sm:$0xff] }
   0xf   : > { %s407_s25 = sshll.u32 %s574_s19, 2  ;;  %v443_v41 = vld [vmem:[%s569_s2] ss:$0 sm:$0xff] }
  0x10   : > { %s230_s28 = scalar_lea.vmem %s567_s0, %s407_s25  ;;  %v444_v46 = vld [vmem:[#allocation2] ss:$0 sm:$0xff]  ;;  %s234_s14 = scalar_lea.vmem %s572_s5, %s407_s25 }
  0x11   : > { %v236_v0 = vld [vmem:[%s230_s28] sm:$0xf]  ;;  %326 = vmatpush.bf16.msra.mxu0 %v420_v16 }
  0x12   : > { %v239_v1 = vunpack.c.l.bf16 %v236_v0 }
  0x13   : > { %v446_v4 = vpop.eup %445 }
  0x14   : > { %v241_v2 = vsel %vm240_vm0, %v239_v1, 0.0  ;;  %v245_v5 = vmul.f32 32.0, %v446_v4  ;;  %vm249_vm1 = vweird.f32 %v446_v4 }
  0x15   : > { %242 = vadd.xlane.f32.xlu0 %v241_v2 }
  0x16   : > { %v246_v6 = vsub.f32 1.0, %v245_v5 }
  0x18   : > { %v247_v7 = vmul.f32 %v446_v4, %v246_v6 }
  0x1a   : > { %v248_v8 = vadd.f32 %v446_v4, %v247_v7 }
  0x1c   : > { %v250_v9 = vsel %vm249_vm1, %v446_v4, %v248_v8 }
  0x88   : > { %v243_v10 = vpop.xlane.xlu0 %242 }
  0x89   : > { %v251_v11 = vmul.f32 %v250_v9, %v243_v10 }
  0x8b   : > { %v252_v12 = vsub.f32 %v239_v1, %v251_v11 }
  0x8d   : > { %v253_v13 = vmul.f32 %v252_v12, %v252_v12  ;;  %v289_v39 = vmul.f32 %v442_v34, %v252_v12 }
  0x8f   : > { %v254_v14 = vsel %vm240_vm0, %v253_v13, 0.0 }
  0x90   : > { %255 = vadd.xlane.f32.xlu0 %v254_v14 }
 0x103   : > { %v256_v17 = vpop.xlane.xlu0 %255 }
 0x104   : > { %v257_v18 = vmul.f32 0.032258064, %v256_v17 }
 0x106   : > { %447 = vrsqrt.f32 %v257_v18  ;;  %vm265_vm2 = vcmp.eq.f32.partialorder %v257_v18, inf  ;;  %v268_v26 = vand.u32 2147483648, %v257_v18  ;;  %vm267_vm3 = vcmp.eq.f32.partialorder %v257_v18, 0.0 }
 0x10c   : > { %v448_v19 = vpop.eup %447 }
 0x10d   : > { %v259_v20 = vmul.f32 %v448_v19, %v257_v18 }
 0x10f   : > { %v260_v21 = vmul.f32 %v448_v19, %v259_v20 }
 0x111   : > { %v261_v22 = vmul.f32 0.5, %v260_v21 }
 0x113   : > { %v262_v23 = vsub.f32 1.5, %v261_v22 }
 0x115   : > { %v263_v24 = vmul.f32 %v448_v19, %v262_v23 }
 0x117   : > { %v264_v25 = vmul.f32 %v263_v24, %v257_v18 }
 0x119   : > { %v266_v27 = vsel %vm265_vm2, %v257_v18, %v264_v25 }
 0x11a   : > { %v269_v28 = vsel %vm267_vm3, %v268_v26, %v266_v27 }
 0x11b   : > { %v270_v29 = vadd.f32 1e-06, %v269_v28 }
 0x11d   : > { %449 = vrcp.f32 %v270_v29  ;;  %v282_v33 = vand.u32 2147483648, %v270_v29  ;;  %v280_v36 = vand.u32 2147483647, %v270_v29  ;;  %vm276_vm5 = vweird.f32 %v270_v29 }
 0x11f   : > { %v283_v38 = vor.u32 1.1754944e-38, %v282_v33  ;;  %vm281_vm7 = vcmp.eq.f32.partialorder %v280_v36, 8.507059e+37 }
 0x123   : > { %v450_v30 = vpop.eup %449 }
 0x124   : > { %v272_v31 = vmul.f32 %v450_v30, %v270_v29  ;;  %vm277_vm4 = vweird.f32 %v450_v30 }
 0x125   : > { %vm278_vm6 = vmor %vm276_vm5, %vm277_vm4 }
 0x126   : > { %v273_v32 = vsub.f32 1.0, %v272_v31 }
 0x128   : > { %v274_v35 = vmul.f32 %v450_v30, %v273_v32 }
 0x12a   : > { %v275_v37 = vadd.f32 %v450_v30, %v274_v35 }
 0x12c   : > { %v279_v40 = vsel %vm278_vm6, %v450_v30, %v275_v37 }
 0x12d   : > { %v284_v42 = vsel %vm281_vm7, %v283_v38, %v279_v40 }
 0x12e   : > { %v290_v43 = vmul.f32 %v289_v39, %v284_v42 }
 0x130   : > { %v294_v44 = vadd.f32 %v443_v41, %v290_v43 }
 0x132   : > { %v295_v45 = vpack.c.bf16 %v294_v44, %v294_v44 }
 0x134   : > { %417 = vmatmul.msk.bf16.vlgmr.msra.gmra.mxu0 %vm240_vm0, %v295_v45 }
 0x1b1   : > { %v328_v47 = vpop.f32.mrf.mxu0 }
 0x1b2   : > { %v329_v48 = vadd.f32 %v444_v46, %v328_v47 }
 0x1b4   : > { %v332_v49 = vpack.c.bf16 %v329_v48, %v329_v48 }
 0x1b6   : > { %334 = vst.msk [vmem:[%s234_s14] sm:$0xf] %vm333_vm8, %v332_v49 }
 0x1b9   : > { %v330_v50 = vpop.f32.mrf.mxu0 }
 0x1ba PF: > { %s16_s18 = sadd.s32 1, %s491_s18  }
 0x1bb   : > { %p13_p7 = scmp.ge.s32.totalorder %s16_s18, 4  }
 0x1bd   :  { %15 = sbr.rel (!%p13_p7) target bundleno = 1 (0x1), region = 75 }
 0x1c2   :  { %354 = vsyncpa [#allocation3], 1 }
 0x1c3   :  { %356 = vsyncpa [#allocation3 + $0x1], 1 }

// kernel: encoder_decoder_forward.38
= control target key start
LH: loop header
LB: loop body
LE: loop exit
PB: predicated region body
PF: predicated region fallthrough
CT: control target
= control target key end

     0   :  { %s572_s9 = smov 0   ;;  %s638_s0 = inlined_call_operand.vmem [shape: bf16[16,96], index: 0, kind: input, shape index: {}]   ;;  %s639_s1 = inlined_call_operand.vmem [shape: f32[2,8,8], index: 1, kind: input, shape index: {}]   ;;  %s640_s2 = inlined_call_operand.vmem [shape: bf16[16,32], index: 2, kind: output, shape index: {}]  }
   0x1 LB: > { %s477_s10 = sadd.s32 4294967295, %s540_s9   ;;  %p481_p0 = scmp.ge.s32.totalorder %s540_s9, 1  ;;  %s540_s9 = sphi %s572_s9, %s12_s9  }
   0x2   : > { %p120_p1 = scmp.lt.s32.totalorder %s540_s9, 3 }
   0x4   : > { %p121_p2 = pnand %p481_p0, %p120_p1 }
   0x5   : > { %p144_p3 = scmp.lt.s32.totalorder (!%p121_p2), %s477_s10, 1  ;;  %s542_s15 = smov (!%p121_p2), 96  }
   0x6   : > { %124 = sbr.rel (%p121_p2) target bundleno = 1197 (0x4ad), region = 28  ;;  %s543_s16 = smov (!%p121_p2), 88  }
   0x7   : > { %s544_s17 = smov (!%p121_p2), 120   ;;  %s545_s18 = smov (!%p121_p2), 64  }
   0x8   : > { %s546_s19 = smov (!%p121_p2), 80   ;;  %s547_s20 = smov (!%p121_p2), 72  }
   0x9   : > { %s548_s21 = smov (!%p121_p2), 112   ;;  %s549_s22 = smov (!%p121_p2), 104  }
   0xa   : > { %s551_s27 = smov (!%p121_p2), 56   ;;  %s552_s28 = smov (!%p121_p2), 40  }
   0xb   : > { %s642_s10 = smov (!%p144_p3, %s477_s10), 1  ;;  %vm169_vm0 = vcmask 64512   ;;  %v550_v12 = vmov -1e+09   ;;  %vm206_vm2 = vcmask 1043456   ;;  %s553_s29 = smov 48  }
   0xc   : > { %s482_s11 = sshll.u32 %s642_s10, 2  ;;  %s483_s23 = sshll.u32 %s642_s10, 3  ;;  %vm405_vm3 = vcmask 130048   ;;  %vm407_vm4 = vcmask 195584   ;;  %vm410_vm5 = vcmask 257024  }
   0xd   : > { %s147_s14 = scalar_lea.vmem %s638_s0, %s482_s11  ;;  %s151_s26 = scalar_lea.vmem %s639_s1, %s483_s23 }
   0xe   : > { %v157_v0 = vld [vmem:[%s147_s14] sm:$0xf]  ;;  %s554_s30 = smov 8   ;;  %s555_s3 = smov 16  }
   0xf   : > { %v165_v1 = vunpack.c.l.b16 %v157_v0  ;;  %v158_v3 = vunpack.c.l.bf16 %v157_v0  ;;  %v161_v11 = vld [vmem:[%s151_s26] sm:$0xff]  ;;  %s556_s4 = smov 24   ;;  %s155_s7 = scalar_lea.vmem %s640_s2, %s482_s11 }
  0x10   : > { %vm162_vm1 = vcmp.gt.f32.partialorder %v161_v11, 0.0 }
  0x11   : > { %v588_v2 = vpack.c.b16 %v165_v1, %v165_v1  ;;  %v159_v6 = vmul.f32 0.35351563, %v158_v3  ;;  %v163_v13 = vsel %vm162_vm1, 0.0, %v550_v12 }
  0x13   : > { %167 = vrot.lane.b32.xlu0 %v588_v2, %s542_s15  ;;  %226 = vrot.lane.b32.xlu1 %v588_v2, %s543_s16  ;;  %v160_v7 = vpack.c.bf16 %v159_v6, %v159_v6 }
  0x15   : > { %224 = vrot.lane.b32.xlu2 %v160_v7, %s544_s17 }
  0x1d   : > { %201 = vrot.lane.b32.xlu2 %v588_v2, %s545_s18 }
  0x25   : > { %282 = vrot.lane.b32.xlu2 %v588_v2, %s546_s19 }
  0x2d   : > { %338 = vrot.lane.b32.xlu2 %v588_v2, %s547_s20 }
  0x35   : > { %280 = vrot.lane.b32.xlu2 %v160_v7, %s548_s21 }
  0x3d   : > { %336 = vrot.lane.b32.xlu2 %v160_v7, %s549_s22 }
  0x6f   : > { %v225_v10 = vpop.permute.xlu2 %224 }
  0x77   : > { %v202_v18 = vpop.permute.xlu2 %201 }
  0x78   : > { %v208_v23 = vsel %vm206_vm2, %v202_v18, 0 }
  0x79   : > { %217 = vmatpush.bf16.msra.mxu1 %v208_v23 }
  0x7f   : > { %v283_v19 = vpop.permute.xlu2 %282 }
  0x80   : > { %v288_v21 = vsel %vm169_vm0, %v283_v19, 0 }
  0x81   : > { %297 = vmatpush.bf16.xpose.msrb.mxu1 %v288_v21 }
  0x85   : > { %v168_v4 = vpop.permute.xlu0 %167  ;;  %v227_v8 = vpop.permute.xlu1 %226 }
  0x86   : > { %v174_v5 = vsel %vm169_vm0, %v168_v4, 0  ;;  %v232_v9 = vsel %vm169_vm0, %v227_v8, 0 }
  0x87   : > { %183 = vmatpush.bf16.xpose.msra.mxu0 %v174_v5  ;;  %241 = vmatpush.bf16.xpose.msra.mxu2 %v232_v9  ;;  %v339_v20 = vpop.permute.xlu2 %338 }
  0x88   : > { %v344_v22 = vsel %vm169_vm0, %v339_v20, 0 }
  0x8e   : > { %485 = vmatmul.msk.bf16.vlgmr.msra.gmra.mxu0 %vm169_vm0, %v160_v7  ;;  %487 = vmatmul.msk.bf16.vlgmr.msra.gmra.mxu2 %vm169_vm0, %v225_v10 }
  0x8f   : > { %353 = vmatpush.bf16.xpose.msrb.mxu0 %v344_v22  ;;  %v281_v24 = vpop.permute.xlu2 %280 }
  0x97   : > { %v337_v25 = vpop.permute.xlu2 %336 }
  0x9e   : > { %491 = vmatmul.msk.bf16.vlgmr.msrb.gmra.mxu0 %vm169_vm0, %v337_v25 }
 0x10b   : > { %v185_v14 = vpop.f32.mrf.mxu0 }
 0x10c   : > { %v186_v15 = vadd.f32 %v185_v14, %v163_v13 }
 0x10e   : > { %v189_v16 = vsel %vm169_vm0, %v186_v15, -inf }
 0x10f   : > { %190 = vmax.xlane.f32.xlu0 %v189_v16 }
 0x111   : > { %v243_v26 = vpop.f32.mrf.mxu2 }
 0x112   : > { %v244_v27 = vadd.f32 %v243_v26, %v163_v13 }
 0x113   : > { %v187_v17 = vpop.f32.mrf.mxu0 }
 0x114   : > { %v247_v29 = vsel %vm169_vm0, %v244_v27, -inf }
 0x115   : > { %248 = vmax.xlane.f32.xlu2 %v247_v29 }
 0x119   : > { %v245_v32 = vpop.f32.mrf.mxu2 }
 0x11b   : > { %v355_v35 = vpop.f32.mrf.mxu0 }
 0x11c   : > { %v356_v36 = vadd.f32 %v355_v35, %v163_v13 }
 0x11e   : > { %v359_v37 = vsel %vm169_vm0, %v356_v36, -inf }
 0x123   : > { %v357_v39 = vpop.f32.mrf.mxu0 }
 0x182   : > { %v191_v28 = vpop.xlane.xlu0 %190 }
 0x183   : > { %v192_v30 = vsub.f32 %v186_v15, %v191_v28 }
 0x185   : > { %v193_v31 = vmul.f32 1.442695, %v192_v30 }
 0x187   : > { %518 = vpow2.f32 %v193_v31 }
 0x188   : > { %v249_v44 = vpop.xlane.xlu2 %248 }
 0x189   : > { %v250_v46 = vsub.f32 %v244_v27, %v249_v44 }
 0x18b   : > { %v251_v47 = vmul.f32 1.442695, %v250_v46 }
 0x18d   : > { %v519_v33 = vpop.eup %518 }
 0x18e   : > { %v195_v34 = vsel %vm169_vm0, %v519_v33, 0.0 }
 0x18f   : > { %196 = vadd.xlane.f32.xlu1 %v195_v34 }
 0x197   : > { %360 = vmax.xlane.f32.xlu1 %v359_v37 }
 0x1b0   : > { %259 = vrot.lane.b32.xlu1 %v588_v2, %s551_s27 }
 0x1b8   : > { %371 = vrot.lane.b32.xlu1 %v588_v2, %s552_s28 }
 0x202   : > { %v197_v38 = vpop.xlane.xlu1 %196 }
 0x203   : > { %520 = vrcp.f32 %v197_v38 }
 0x204   : > { %522 = vpow2.f32 %v251_v47 }
 0x209   : > { %v521_v40 = vpop.eup %520 }
 0x20a   : > { %v199_v41 = vmul.f32 %v521_v40, %v519_v33  ;;  %v361_v48 = vpop.xlane.xlu1 %360  ;;  %v523_v54 = vpop.eup %522 }
 0x20b   : > { %v362_v51 = vsub.f32 %v356_v36, %v361_v48  ;;  %v253_v56 = vsel %vm169_vm0, %v523_v54, 0.0 }
 0x20c   : > { %v200_v42 = vpack.c.bf16 %v199_v41, %v199_v41 }
 0x20d   : > { %v363_v53 = vmul.f32 1.442695, %v362_v51 }
 0x20e   : > { %486 = vmatmul.msk.bf16.vlgmr.msra.gmra.mxu1 %vm169_vm0, %v200_v42 }
 0x20f   : > { %524 = vpow2.f32 %v363_v53 }
 0x215   : > { %v525_v57 = vpop.eup %524 }
 0x216   : > { %v365_v58 = vsel %vm169_vm0, %v525_v57, 0.0 }
 0x21e   : > { %489 = vmatmul.msk.bf16.vlgmr.msrb.gmra.mxu1 %vm169_vm0, %v281_v24 }
 0x222   : > { %v260_v59 = vpop.permute.xlu1 %259 }
 0x223   : > { %v265_v60 = vsel %vm206_vm2, %v260_v59, 0 }
 0x224   : > { %274 = vmatpush.bf16.msra.mxu3 %v265_v60 }
 0x22a   : > { %v372_v61 = vpop.permute.xlu1 %371 }
 0x22b   : > { %v377_v62 = vsel %vm206_vm2, %v372_v61, 0 }
 0x22c   : > { %386 = vmatpush.bf16.msrb.mxu2 %v377_v62 }
 0x28b   : > { %v615_v43 = vpop.f32.mrf.mxu1 }
 0x293   : > { %v221_v45 = vpop.f32.mrf.mxu1 }
 0x29b   : > { %v299_v49 = vpop.f32.mrf.mxu1 }
 0x29c   : > { %v300_v50 = vadd.f32 %v299_v49, %v163_v13 }
 0x29e   : > { %v303_v52 = vsel %vm169_vm0, %v300_v50, -inf }
 0x29f   : > { %304 = vmax.xlane.f32.xlu0 %v303_v52 }
 0x2a3   : > { %v301_v55 = vpop.f32.mrf.mxu1 }
 0x2a7   : > { %254 = vadd.xlane.f32.xlu0 %v253_v56 }
 0x2af   : > { %366 = vadd.xlane.f32.xlu0 %v365_v58 }
 0x312   : > { %v305_v63 = vpop.xlane.xlu0 %304 }
 0x313   : > { %v306_v0 = vsub.f32 %v300_v50, %v305_v63 }
 0x315   : > { %v307_v1 = vmul.f32 1.442695, %v306_v0 }
 0x317   : > { %526 = vpow2.f32 %v307_v1 }
 0x31a   : > { %v255_v3 = vpop.xlane.xlu0 %254 }
 0x31b   : > { %528 = vrcp.f32 %v255_v3 }
 0x31d   : > { %v527_v4 = vpop.eup %526 }
 0x31e   : > { %v309_v5 = vsel %vm169_vm0, %v527_v4, 0.0 }
 0x31f   : > { %310 = vadd.xlane.f32.xlu0 %v309_v5 }
 0x321   : > { %v529_v6 = vpop.eup %528 }
 0x322   : > { %v367_v7 = vpop.xlane.xlu0 %366  ;;  %v257_v8 = vmul.f32 %v529_v6, %v523_v54 }
 0x323   : > { %530 = vrcp.f32 %v367_v7 }
 0x324   : > { %v258_v9 = vpack.c.bf16 %v257_v8, %v257_v8 }
 0x326   : > { %488 = vmatmul.msk.bf16.vlgmr.msra.gmra.mxu3 %vm169_vm0, %v258_v9 }
 0x329   : > { %v531_v10 = vpop.eup %530 }
 0x32a   : > { %v369_v11 = vmul.f32 %v531_v10, %v525_v57 }
 0x32c   : > { %v370_v12 = vpack.c.bf16 %v369_v11, %v369_v11 }
 0x32e   : > { %492 = vmatmul.msk.bf16.vlgmr.msrb.gmra.mxu2 %vm169_vm0, %v370_v12 }
 0x333   : > { %315 = vrot.lane.b32.xlu0 %v588_v2, %s553_s29 }
 0x392   : > { %v311_v13 = vpop.xlane.xlu0 %310 }
 0x393   : > { %532 = vrcp.f32 %v311_v13 }
 0x399   : > { %v533_v14 = vpop.eup %532 }
 0x39a   : > { %v313_v15 = vmul.f32 %v533_v14, %v527_v4 }
 0x39c   : > { %v314_v18 = vpack.c.bf16 %v313_v15, %v313_v15 }
 0x3a5   : > { %v316_v16 = vpop.permute.xlu0 %315 }
 0x3a6   : > { %v321_v17 = vsel %vm206_vm2, %v316_v16, 0 }
 0x3a7   : > { %330 = vmatpush.bf16.msrb.mxu3 %v321_v17 }
 0x3a9   : > { %v276_v19 = vpop.f32.mrf.mxu3 }
 0x3aa   : > { %490 = vmatmul.msk.bf16.vlgmr.msrb.gmra.mxu3 %vm169_vm0, %v314_v18  ;;  %393 = vrot.lane.b32.xlu2 %v276_v19, %s554_s30 }
 0x3b1   : > { %v278_v20 = vpop.f32.mrf.mxu3  ;;  %v388_v21 = vpop.f32.mrf.mxu2 }
 0x3b9   : > { %v390_v22 = vpop.f32.mrf.mxu2 }
 0x404   : > { %v394_v25 = vpop.permute.xlu2 %393 }
 0x405   : > { %v404_v26 = vsel %vm169_vm0, %v615_v43, %v394_v25 }
 0x42d   : > { %v332_v23 = vpop.f32.mrf.mxu3 }
 0x42e   : > { %397 = vrot.lane.b32.xlu1 %v332_v23, %s555_s3 }
 0x435   : > { %v334_v2 = vpop.f32.mrf.mxu3 }
 0x436   : > { %401 = vrot.lane.b32.xlu1 %v388_v21, %s556_s4 }
 0x4a0   : > { %v398_v24 = vpop.permute.xlu1 %397 }
 0x4a1   : > { %v406_v27 = vsel %vm405_vm3, %v404_v26, %v398_v24 }
 0x4a8   : > { %v402_v28 = vpop.permute.xlu1 %401 }
 0x4a9   : > { %v408_v29 = vsel %vm407_vm4, %v406_v27, %v402_v28 }
 0x4aa   : > { %v409_v30 = vpack.c.bf16 %v408_v29, %v408_v29 }
 0x4ac   : > { %411 = vst.msk [vmem:[%s155_s7] sm:$0xf] %vm410_vm5, %v409_v30 }
 0x4ad PF: > { %s12_s9 = sadd.s32 1, %s540_s9  }
 0x4ae   : > { %p9_p4 = scmp.ge.s32.totalorder %s12_s9, 4  }
 0x4b0   :  { %11 = sbr.rel (!%p9_p4) target bundleno = 1 (0x1), region = 61 }

// kernel: encoder_decoder_forward.44
= control target key start
LH: loop header
LB: loop body
LE: loop exit
PB: predicated region body
PF: predicated region fallthrough
CT: control target
= control target key end

     0   :  { %12 = vsyncpa [#allocation3], 0  ;;  %s880_s0 = inlined_call_operand.vmem [shape: bf16[16,32], index: 0, kind: input, shape index: {}]   ;;  %s881_s1 = inlined_call_operand.vmem [shape: f32[1,32], index: 1, kind: input, shape index: {}]   ;;  %s882_s2 = inlined_call_operand.hbm [shape: f32[1,32], index: 2, kind: input, shape index: {}]   ;;  %s883_s3 = inlined_call_operand.vmem [shape: bf16[32,64], index: 3, kind: input, shape index: {}]   ;;  %s884_s4 = inlined_call_operand.hbm [shape: f32[1,64], index: 4, kind: input, shape index: {}]   ;;  %s885_s5 = inlined_call_operand.vmem [shape: bf16[64,32], index: 5, kind: input, shape index: {}]   ;;  %s886_s6 = inlined_call_operand.hbm [shape: f32[1,32], index: 6, kind: input, shape index: {}]   ;;  %s887_s7 = inlined_call_operand.vmem [shape: bf16[16,32], index: 7, kind: output, shape index: {}]  }
   0x1   :  { %13 = vsyncpa [#allocation5], 0  ;;  %s805_s24 = smov 0  }
   0x2 LB: > { %s232_s27 = sshll.u32 %s884_s4, 4  ;;  %s558_s28 = sadd.s32 4294967295, %s759_s24   ;;  %s759_s24 = sphi %s805_s24, %s19_s24   ;;  %s233_s27 = int_to_ptr.hbm [resolvable:$true] %s232_s27 }
   0x3   : > { %p560_p0 = scmp.ge.s32.totalorder %s759_s24, 1  ;;  %p202_p1 = scmp.lt.s32.totalorder %s759_s24, 3 }
   0x4   : > { %p627_p2 = scmp.eq.s32.totalorder %s558_s28, 0  ;;  %s761_s30 = smov [#allocation4]  }
   0x5   : > { %p816_p3 = pnand %p560_p0, %p202_p1  ;;  %s234_s8 = sshll.u32 %s761_s30, 4  ;;  %s235_s8 = int_to_ptr.vmem [resolvable:$true] %s234_s8 }
   0x6   : > { %s217_s11 = sshll.u32 %s882_s2, 4  ;;  %s247_s14 = sshll.u32 %s886_s6, 4  ;;  %s218_s11 = int_to_ptr.hbm [resolvable:$true] %s217_s11  ;;  %s248_s14 = int_to_ptr.hbm [resolvable:$true] %s247_s14 }
   0x7   : > { %p617_p4 = pneg %p816_p3  ;;  %s762_s15 = smov [#allocation2]  }
   0x8   : > { %s219_s16 = sshll.u32 %s762_s15, 4  ;;  %s763_s17 = smov [#allocation6]   ;;  %s220_s16 = int_to_ptr.vmem [resolvable:$true] %s219_s16 }
   0x9   : > { %p618_p5 = pnand %p627_p2, %p617_p4  ;;  %s249_s18 = sshll.u32 %s763_s17, 4  ;;  %s250_s18 = int_to_ptr.vmem [resolvable:$true] %s249_s18 }
   0xa   : > { %269 = sbr.rel (%p816_p3) target bundleno = 580 (0x244), region = 48 }
   0xb   : > { %623 = dma.hbm_to_vmem [thread:$0]  (!%p618_p5), %s233_s27, 16, %s235_s8, [#allocation5]  }
   0xc   : > { %620 = dma.hbm_to_vmem [thread:$0]  (!%p618_p5), %s218_s11, 16, %s220_s16, [#allocation3]  }
   0xd   : > { %626 = dma.hbm_to_vmem [thread:$0]  (!%p618_p5), %s248_s14, 16, %s250_s18, [#allocation5]  }
   0xf   : > { %750 = dma.done.wait (%p627_p2), [#allocation3], 16  }
  0x10   : > { %752 = vsyncadd (%p627_p2), [#allocation3], 4294967280 }
  0x11   : > { %754 = dma.done.wait (%p627_p2), [#allocation5], 32  }
  0x12   : > { %756 = vsyncadd (%p627_p2), [#allocation5], 4294967264  ;;  %p310_p6 = scmp.lt.s32.totalorder %s558_s28, 1  ;;  %vm323_vm0 = vcmask 261120   ;;  %v764_v3 = vmov 32.0   ;;  %v600_v15 = vld [vmem:[%s883_s3 + $0x8] sm:$0xff] }
  0x13   : > { %649 = vrcp.f32 %v764_v3  ;;  %408 = vmatpush.bf16.msra.mxu0 %v600_v15  ;;  %v599_v16 = vld [vmem:[%s883_s3] sm:$0xff]  ;;  %v604_v24 = vld [vmem:[%s885_s5 + $0x18] sm:$0xff]  ;;  %v603_v26 = vld [vmem:[%s885_s5 + $0x10] sm:$0xff]  ;;  %vm453_vm8 = vcmask 523264   ;;  %vm472_vm9 = vcmask 257024  }
  0x14   : > { %s890_s28 = smov (!%p310_p6, %s558_s28), 1  ;;  %461 = vmatpush.bf16.msra.mxu1 %v604_v24  ;;  %v645_v36 = vld [vmem:[%s881_s1] ss:$0 sm:$0xff]  ;;  %v602_v48 = vld [vmem:[%s885_s5 + $0x8] sm:$0xff]  ;;  %v647_v50 = vld [vmem:[#allocation4] ss:$0 sm:$0xff] }
  0x15   : > { %s569_s19 = sshll.u32 %s890_s28, 2  ;;  %v646_v43 = vld [vmem:[#allocation2] ss:$0 sm:$0xff]  ;;  %v648_v56 = vld [vmem:[#allocation6] ss:$0 sm:$0xff] }
  0x16   : > { %s313_s22 = scalar_lea.vmem %s880_s0, %s569_s19  ;;  %v601_v49 = vld [vmem:[%s885_s5] sm:$0xff]  ;;  %s317_s18 = scalar_lea.vmem %s887_s7, %s569_s19 }
  0x17   : > { %v319_v0 = vld [vmem:[%s313_s22] sm:$0xf]  ;;  %409 = vmatpush.bf16.msra.mxu0 %v599_v16 }
  0x18   : > { %v843_v1 = vunpack.c.l.bf16 %v319_v0  ;;  %462 = vmatpush.bf16.msra.mxu1 %v603_v26 }
  0x19   : > { %v650_v4 = vpop.eup %649 }
  0x1a   : > { %v324_v2 = vsel %vm323_vm0, %v843_v1, 0.0  ;;  %v328_v5 = vmul.f32 32.0, %v650_v4  ;;  %vm332_vm1 = vweird.f32 %v650_v4 }
  0x1b   : > { %325 = vadd.xlane.f32.xlu0 %v324_v2 }
  0x1c   : > { %v329_v6 = vsub.f32 1.0, %v328_v5  ;;  %463 = vmatpush.bf16.msra.mxu1 %v602_v48 }
  0x1e   : > { %v330_v7 = vmul.f32 %v650_v4, %v329_v6 }
  0x20   : > { %v331_v8 = vadd.f32 %v650_v4, %v330_v7  ;;  %464 = vmatpush.bf16.msra.mxu1 %v601_v49 }
  0x22   : > { %v333_v9 = vsel %vm332_vm1, %v650_v4, %v331_v8 }
  0x8e   : > { %v326_v10 = vpop.xlane.xlu0 %325 }
  0x8f   : > { %v334_v11 = vmul.f32 %v333_v9, %v326_v10 }
  0x91   : > { %v335_v12 = vsub.f32 %v843_v1, %v334_v11 }
  0x93   : > { %v336_v13 = vmul.f32 %v335_v12, %v335_v12  ;;  %v372_v41 = vmul.f32 %v645_v36, %v335_v12 }
  0x95   : > { %v337_v14 = vsel %vm323_vm0, %v336_v13, 0.0 }
  0x96   : > { %338 = vadd.xlane.f32.xlu0 %v337_v14 }
 0x109   : > { %v339_v17 = vpop.xlane.xlu0 %338 }
 0x10a   : > { %v340_v18 = vmul.f32 0.032258064, %v339_v17 }
 0x10c   : > { %651 = vrsqrt.f32 %v340_v18  ;;  %vm348_vm2 = vcmp.eq.f32.partialorder %v340_v18, inf  ;;  %v351_v28 = vand.u32 2147483648, %v340_v18  ;;  %vm350_vm3 = vcmp.eq.f32.partialorder %v340_v18, 0.0 }
 0x112   : > { %v652_v19 = vpop.eup %651 }
 0x113   : > { %v342_v20 = vmul.f32 %v652_v19, %v340_v18 }
 0x115   : > { %v343_v21 = vmul.f32 %v652_v19, %v342_v20 }
 0x117   : > { %v344_v22 = vmul.f32 0.5, %v343_v21 }
 0x119   : > { %v345_v23 = vsub.f32 1.5, %v344_v22 }
 0x11b   : > { %v346_v25 = vmul.f32 %v652_v19, %v345_v23 }
 0x11d   : > { %v347_v27 = vmul.f32 %v346_v25, %v340_v18 }
 0x11f   : > { %v349_v29 = vsel %vm348_vm2, %v340_v18, %v347_v27 }
 0x120   : > { %v352_v30 = vsel %vm350_vm3, %v351_v28, %v349_v29 }
 0x121   : > { %v353_v31 = vadd.f32 1e-06, %v352_v30 }
 0x123   : > { %653 = vrcp.f32 %v353_v31  ;;  %v365_v35 = vand.u32 2147483648, %v353_v31  ;;  %v363_v38 = vand.u32 2147483647, %v353_v31  ;;  %vm359_vm5 = vweird.f32 %v353_v31 }
 0x125   : > { %v366_v40 = vor.u32 1.1754944e-38, %v365_v35  ;;  %vm364_vm7 = vcmp.eq.f32.partialorder %v363_v38, 8.507059e+37 }
 0x129   : > { %v654_v32 = vpop.eup %653 }
 0x12a   : > { %v355_v33 = vmul.f32 %v654_v32, %v353_v31  ;;  %vm360_vm4 = vweird.f32 %v654_v32 }
 0x12b   : > { %vm361_vm6 = vmor %vm359_vm5, %vm360_vm4 }
 0x12c   : > { %v356_v34 = vsub.f32 1.0, %v355_v33 }
 0x12e   : > { %v357_v37 = vmul.f32 %v654_v32, %v356_v34 }
 0x130   : > { %v358_v39 = vadd.f32 %v654_v32, %v357_v37 }
 0x132   : > { %v362_v42 = vsel %vm361_vm6, %v654_v32, %v358_v39 }
 0x133   : > { %v367_v44 = vsel %vm364_vm7, %v366_v40, %v362_v42 }
 0x134   : > { %v373_v45 = vmul.f32 %v372_v41, %v367_v44 }
 0x136   : > { %v377_v46 = vadd.f32 %v646_v43, %v373_v45 }
 0x138   : > { %v378_v47 = vpack.c.bf16 %v377_v46, %v377_v46 }
 0x13a   : > { %579 = vmatmul.msk.bf16.vlgmr.msra.gmra.mxu0 %vm323_vm0, %v378_v47 }
 0x1b7   : > { %v411_v51 = vpop.f32.mrf.mxu0 }
 0x1b8   : > { %v412_v52 = vadd.f32 %v647_v50, %v411_v51 }
 0x1ba   : > { %v415_v53 = vmax.f32 %v412_v52, 0.0 }
 0x1bc   : > { %v416_v54 = vpack.c.bf16 %v415_v53, %v415_v53 }
 0x1be   : > { %596 = vmatmul.msk.bf16.vlgmr.msra.gmra.mxu1 %vm453_vm8, %v416_v54 }
 0x1bf   : > { %v413_v55 = vpop.f32.mrf.mxu0 }
 0x23b   : > { %v466_v57 = vpop.f32.mrf.mxu1 }
 0x23c   : > { %v467_v58 = vadd.f32 %v648_v56, %v466_v57 }
 0x23e   : > { %v470_v59 = vadd.f32 %v467_v58, %v843_v1 }
 0x240   : > { %v471_v60 = vpack.c.bf16 %v470_v59, %v470_v59 }
 0x242   : > { %473 = vst.msk [vmem:[%s317_s18] sm:$0xf] %vm472_vm9, %v471_v60 }
 0x243   : > { %v468_v61 = vpop.f32.mrf.mxu1 }
 0x244 PF: > { %s19_s24 = sadd.s32 1, %s759_s24  }
 0x245   : > { %p16_p7 = scmp.ge.s32.totalorder %s19_s24, 4  }
 0x247   :  { %18 = sbr.rel (!%p16_p7) target bundleno = 2 (0x2), region = 91 }
 0x24c   :  { %493 = vsyncpa [#allocation3], 1 }
 0x24d   :  { %495 = vsyncpa [#allocation3 + $0x1], 1 }
 0x24e   :  { %496 = vsyncpa [#allocation5], 1 }

// kernel: encoder_decoder_forward.42
= control target key start
LH: loop header
LB: loop body
LE: loop exit
PB: predicated region body
PF: predicated region fallthrough
CT: control target
= control target key end

     0   :  { %s621_s12 = smov 0   ;;  %s686_s0 = inlined_call_operand.vmem [shape: bf16[16,32], index: 0, kind: input, shape index: {}]   ;;  %s687_s1 = inlined_call_operand.vmem [shape: bf16[16,64], index: 1, kind: input, shape index: {}]   ;;  %s688_s2 = inlined_call_operand.vmem [shape: f32[2,1,8], index: 2, kind: input, shape index: {}]   ;;  %s689_s3 = inlined_call_operand.vmem [shape: bf16[16,32], index: 3, kind: output, shape index: {}]  }
   0x1 LB: > { %s529_s13 = sadd.s32 4294967295, %s588_s12   ;;  %p533_p0 = scmp.ge.s32.totalorder %s588_s12, 1  ;;  %s588_s12 = sphi %s621_s12, %s13_s12  }
   0x2   : > { %p153_p1 = scmp.lt.s32.totalorder %s588_s12, 3 }
   0x4   : > { %p154_p2 = pnand %p533_p0, %p153_p1 }
   0x5   : > { %p182_p3 = scmp.lt.s32.totalorder (!%p154_p2), %s529_s13, 1  ;;  %s590_s21 = smov (!%p154_p2), 96  }
   0x6   : > { %157 = sbr.rel (%p154_p2) target bundleno = 1079 (0x437), region = 32  ;;  %s591_s22 = smov (!%p154_p2), 112  }
   0x7   : > { %s592_s23 = smov (!%p154_p2), 104   ;;  %s594_s27 = smov (!%p154_p2), 120  }
   0x8   : > { %s595_s28 = smov (!%p154_p2), 88   ;;  %s596_s29 = smov (!%p154_p2), 80  }
   0x9   : > { %s597_s30 = smov (!%p154_p2), 72   ;;  %s598_s4 = smov (!%p154_p2), 8  }
   0xa   : > { %s599_s5 = smov (!%p154_p2), 24   ;;  %s600_s6 = smov (!%p154_p2), 16  }
   0xb   : > { %s691_s13 = smov (!%p182_p3, %s529_s13), 1  ;;  %vm209_vm0 = vcmask 64512   ;;  %v593_v9 = vmov -1e+09   ;;  %vm249_vm2 = vcmask 1043456   ;;  %vm448_vm3 = vcmask 130048  }
   0xc   : > { %s629_s14 = sshll.u32 %s691_s13, 2  ;;  %s192_s26 = scalar_lea.vmem %s688_s2, %s691_s13  ;;  %vm450_vm4 = vcmask 195584   ;;  %vm453_vm5 = vcmask 257024  }
   0xd   : > { %s185_s17 = scalar_lea.vmem %s686_s0, %s629_s14  ;;  %s189_s20 = scalar_lea.vmem %s687_s1, %s629_s14  ;;  %v203_v8 = vld [vmem:[%s192_s26] sm:$0x1] }
   0xe   : > { %v198_v0 = vld [vmem:[%s185_s17] sm:$0xf]  ;;  %vm204_vm1 = vcmp.gt.f32.partialorder %v203_v8, 0.0  ;;  %s196_s9 = scalar_lea.vmem %s689_s3, %s629_s14 }
   0xf   : > { %v199_v1 = vld [vmem:[%s189_s20] sm:$0xf]  ;;  %v200_v2 = vunpack.c.l.bf16 %v198_v0  ;;  %v205_v10 = vsel %vm204_vm1, 0.0, %v593_v9 }
  0x10   : > { %v214_v3 = vsel %vm209_vm0, %v199_v1, 0  ;;  %v242_v6 = vunpack.c.l.b16 %v199_v1  ;;  %v207_v11 = vperm.slane %v205_v10, 0 }
  0x11   : > { %223 = vmatpush.bf16.xpose.msra.mxu0 %v214_v3  ;;  %v201_v4 = vmul.f32 0.35351563, %v200_v2 }
  0x12   : > { %v641_v7 = vpack.c.b16 %v242_v6, %v242_v6 }
  0x13   : > { %v202_v5 = vpack.c.bf16 %v201_v4, %v201_v4 }
  0x14   : > { %244 = vrot.lane.b32.xlu2 %v641_v7, %s590_s21 }
  0x18   : > { %537 = vmatmul.msk.bf16.vlgmr.msra.gmra.mxu0 %vm209_vm0, %v202_v5 }
  0x1c   : > { %325 = vrot.lane.b32.xlu2 %v641_v7, %s591_s22 }
  0x24   : > { %381 = vrot.lane.b32.xlu2 %v641_v7, %s592_s23 }
  0x2c   : > { %323 = vrot.lane.b32.xlu2 %v202_v5, %s591_s22 }
  0x6e   : > { %v245_v16 = vpop.permute.xlu2 %244 }
  0x6f   : > { %v251_v27 = vsel %vm249_vm2, %v245_v16, 0 }
  0x70   : > { %260 = vmatpush.bf16.msra.mxu1 %v251_v27 }
  0x76   : > { %v326_v17 = vpop.permute.xlu2 %325 }
  0x77   : > { %v331_v28 = vsel %vm209_vm0, %v326_v17, 0 }
  0x78   : > { %340 = vmatpush.bf16.xpose.msrb.mxu1 %v331_v28 }
  0x7e   : > { %v382_v21 = vpop.permute.xlu2 %381 }
  0x7f   : > { %v387_v22 = vsel %vm209_vm0, %v382_v21, 0 }
  0x80   : > { %396 = vmatpush.bf16.xpose.msrb.mxu0 %v387_v22 }
  0x86   : > { %v324_v35 = vpop.permute.xlu2 %323 }
  0x95   : > { %v225_v12 = vpop.f32.mrf.mxu0 }
  0x96   : > { %v226_v13 = vadd.f32 %v225_v12, %v207_v11 }
  0x98   : > { %v229_v14 = vsel %vm209_vm0, %v226_v13, -inf }
  0x99   : > { %230 = vmax.xlane.f32.xlu0 %v229_v14 }
  0x9d   : > { %v227_v15 = vpop.f32.mrf.mxu0 }
  0xad   : > { %269 = vrot.lane.b32.xlu0 %v641_v7, %s594_s27 }
  0xb5   : > { %379 = vrot.lane.b32.xlu0 %v202_v5, %s592_s23 }
 0x10c   : > { %v231_v18 = vpop.xlane.xlu0 %230 }
 0x10d   : > { %v232_v19 = vsub.f32 %v226_v13, %v231_v18 }
 0x10f   : > { %v233_v20 = vmul.f32 1.442695, %v232_v19 }
 0x111   : > { %566 = vpow2.f32 %v233_v20 }
 0x117   : > { %v567_v23 = vpop.eup %566 }
 0x118   : > { %v235_v24 = vsel %vm209_vm0, %v567_v23, 0.0 }
 0x119   : > { %236 = vadd.xlane.f32.xlu1 %v235_v24 }
 0x11f   : > { %v270_v25 = vpop.permute.xlu0 %269 }
 0x120   : > { %v275_v29 = vsel %vm209_vm0, %v270_v25, 0 }
 0x121   : > { %284 = vmatpush.bf16.xpose.msra.mxu2 %v275_v29 }
 0x127   : > { %v380_v26 = vpop.permute.xlu0 %379 }
 0x128   : > { %543 = vmatmul.msk.bf16.vlgmr.msrb.gmra.mxu0 %vm209_vm0, %v380_v26 }
 0x132   : > { %267 = vrot.lane.b32.xlu1 %v202_v5, %s594_s27 }
 0x18c   : > { %v237_v30 = vpop.xlane.xlu1 %236 }
 0x18d   : > { %568 = vrcp.f32 %v237_v30 }
 0x193   : > { %v569_v31 = vpop.eup %568 }
 0x194   : > { %v239_v32 = vmul.f32 %v569_v31, %v567_v23 }
 0x196   : > { %v240_v33 = vpack.c.bf16 %v239_v32, %v239_v32 }
 0x198   : > { %538 = vmatmul.msk.bf16.vlgmr.msra.gmra.mxu1 %vm209_vm0, %v240_v33 }
 0x1a4   : > { %v268_v34 = vpop.permute.xlu1 %267 }
 0x1a5   : > { %539 = vmatmul.msk.bf16.vlgmr.msra.gmra.mxu2 %vm209_vm0, %v268_v34  ;;  %v398_v36 = vpop.f32.mrf.mxu0 }
 0x1a6   : > { %v399_v37 = vadd.f32 %v398_v36, %v207_v11 }
 0x1a8   : > { %541 = vmatmul.msk.bf16.vlgmr.msrb.gmra.mxu1 %vm209_vm0, %v324_v35  ;;  %v402_v38 = vsel %vm209_vm0, %v399_v37, -inf }
 0x1a9   : > { %403 = vmax.xlane.f32.xlu0 %v402_v38 }
 0x1ad   : > { %v400_v39 = vpop.f32.mrf.mxu0 }
 0x215   : > { %v661_v40 = vpop.f32.mrf.mxu1 }
 0x21c   : > { %v404_v52 = vpop.xlane.xlu0 %403 }
 0x21d   : > { %v264_v41 = vpop.f32.mrf.mxu1  ;;  %v405_v56 = vsub.f32 %v399_v37, %v404_v52 }
 0x21f   : > { %v406_v58 = vmul.f32 1.442695, %v405_v56 }
 0x225   : > { %v342_v42 = vpop.f32.mrf.mxu1 }
 0x226   : > { %v343_v43 = vadd.f32 %v342_v42, %v207_v11 }
 0x228   : > { %v286_v44 = vpop.f32.mrf.mxu2  ;;  %v346_v45 = vsel %vm209_vm0, %v343_v43, -inf }
 0x229   : > { %v287_v46 = vadd.f32 %v286_v44, %v207_v11  ;;  %347 = vmax.xlane.f32.xlu1 %v346_v45 }
 0x22b   : > { %v290_v47 = vsel %vm209_vm0, %v287_v46, -inf }
 0x22c   : > { %291 = vmax.xlane.f32.xlu2 %v290_v47 }
 0x22d   : > { %v344_v48 = vpop.f32.mrf.mxu1 }
 0x230   : > { %v288_v49 = vpop.f32.mrf.mxu2 }
 0x242   : > { %302 = vrot.lane.b32.xlu1 %v641_v7, %s595_s28 }
 0x29c   : > { %v348_v50 = vpop.xlane.xlu1 %347 }
 0x29d   : > { %v349_v51 = vsub.f32 %v343_v43, %v348_v50 }
 0x29f   : > { %v350_v53 = vmul.f32 1.442695, %v349_v51  ;;  %v292_v54 = vpop.xlane.xlu2 %291 }
 0x2a0   : > { %v293_v55 = vsub.f32 %v287_v46, %v292_v54 }
 0x2a1   : > { %570 = vpow2.f32 %v350_v53 }
 0x2a2   : > { %v294_v57 = vmul.f32 1.442695, %v293_v55 }
 0x2a4   : > { %572 = vpow2.f32 %v294_v57 }
 0x2a5   : > { %574 = vpow2.f32 %v406_v58 }
 0x2a7   : > { %v571_v59 = vpop.eup %570 }
 0x2a8   : > { %v352_v60 = vsel %vm209_vm0, %v571_v59, 0.0 }
 0x2a9   : > { %353 = vadd.xlane.f32.xlu0 %v352_v60 }
 0x2aa   : > { %v573_v61 = vpop.eup %572 }
 0x2ab   : > { %v296_v62 = vsel %vm209_vm0, %v573_v61, 0.0  ;;  %v575_v63 = vpop.eup %574 }
 0x2ac   : > { %297 = vadd.xlane.f32.xlu2 %v296_v62  ;;  %v408_v0 = vsel %vm209_vm0, %v575_v63, 0.0 }
 0x2b4   : > { %409 = vadd.xlane.f32.xlu2 %v408_v0  ;;  %v303_v1 = vpop.permute.xlu1 %302 }
 0x2b5   : > { %v308_v2 = vsel %vm249_vm2, %v303_v1, 0 }
 0x2b6   : > { %317 = vmatpush.bf16.msra.mxu3 %v308_v2 }
 0x2bd   : > { %358 = vrot.lane.b32.xlu0 %v641_v7, %s596_s29 }
 0x2cc   : > { %414 = vrot.lane.b32.xlu2 %v641_v7, %s597_s30 }
 0x31c   : > { %v354_v5 = vpop.xlane.xlu0 %353 }
 0x31f   : > { %v298_v3 = vpop.xlane.xlu2 %297 }
 0x320   : > { %576 = vrcp.f32 %v298_v3 }
 0x326   : > { %v577_v4 = vpop.eup %576 }
 0x327   : > { %v410_v6 = vpop.xlane.xlu2 %409  ;;  %v300_v8 = vmul.f32 %v577_v4, %v573_v61 }
 0x328   : > { %578 = vrcp.f32 %v410_v6 }
 0x329   : > { %v301_v9 = vpack.c.bf16 %v300_v8, %v300_v8  ;;  %580 = vrcp.f32 %v354_v5 }
 0x32b   : > { %540 = vmatmul.msk.bf16.vlgmr.msra.gmra.mxu3 %vm209_vm0, %v301_v9 }
 0x32e   : > { %v579_v10 = vpop.eup %578 }
 0x32f   : > { %v412_v11 = vmul.f32 %v579_v10, %v575_v63  ;;  %v415_v12 = vpop.permute.xlu2 %414  ;;  %v359_v13 = vpop.permute.xlu0 %358 }
 0x330   : > { %v364_v7 = vsel %vm249_vm2, %v359_v13, 0  ;;  %v420_v14 = vsel %vm249_vm2, %v415_v12, 0  ;;  %v581_v16 = vpop.eup %580 }
 0x331   : > { %373 = vmatpush.bf16.msrb.mxu3 %v364_v7  ;;  %429 = vmatpush.bf16.msrb.mxu2 %v420_v14  ;;  %v413_v15 = vpack.c.bf16 %v412_v11, %v412_v11  ;;  %v356_v17 = vmul.f32 %v581_v16, %v571_v59 }
 0x333   : > { %v357_v18 = vpack.c.bf16 %v356_v17, %v356_v17 }
 0x334   : > { %544 = vmatmul.msk.bf16.vlgmr.msrb.gmra.mxu2 %vm209_vm0, %v413_v15 }
 0x33b   : > { %542 = vmatmul.msk.bf16.vlgmr.msrb.gmra.mxu3 %vm209_vm0, %v357_v18 }
 0x3ae   : > { %v319_v19 = vpop.f32.mrf.mxu3 }
 0x3af   : > { %436 = vrot.lane.b32.xlu1 %v319_v19, %s598_s4 }
 0x3b6   : > { %v321_v20 = vpop.f32.mrf.mxu3 }
 0x3b7   : > { %v431_v21 = vpop.f32.mrf.mxu2 }
 0x3b8   : > { %444 = vrot.lane.b32.xlu1 %v431_v21, %s599_s5 }
 0x3be   : > { %v375_v22 = vpop.f32.mrf.mxu3 }
 0x3bf   : > { %v433_v23 = vpop.f32.mrf.mxu2  ;;  %440 = vrot.lane.b32.xlu0 %v375_v22, %s600_s6 }
 0x3c6   : > { %v377_v24 = vpop.f32.mrf.mxu3 }
 0x421   : > { %v437_v25 = vpop.permute.xlu1 %436 }
 0x422   : > { %v447_v26 = vsel %vm209_vm0, %v661_v40, %v437_v25 }
 0x42a   : > { %v445_v28 = vpop.permute.xlu1 %444 }
 0x431   : > { %v441_v27 = vpop.permute.xlu0 %440 }
 0x432   : > { %v449_v29 = vsel %vm448_vm3, %v447_v26, %v441_v27 }
 0x433   : > { %v451_v30 = vsel %vm450_vm4, %v449_v29, %v445_v28 }
 0x434   : > { %v452_v31 = vpack.c.bf16 %v451_v30, %v451_v30 }
 0x436   : > { %454 = vst.msk [vmem:[%s196_s9] sm:$0xf] %vm453_vm5, %v452_v31 }
 0x437 PF: > { %s13_s12 = sadd.s32 1, %s588_s12  }
 0x438   : > { %p10_p4 = scmp.ge.s32.totalorder %s13_s12, 4  }
 0x43a   :  { %12 = sbr.rel (!%p10_p4) target bundleno = 1 (0x1), region = 68 }

// kernel: encoder_decoder_forward.53
= control target key start
LH: loop header
LB: loop body
LE: loop exit
PB: predicated region body
PF: predicated region fallthrough
CT: control target
= control target key end

     0   :  { %s336_s12 = smov 0   ;;  %s368_s0 = inlined_call_operand.vmem [shape: bf16[16,32], index: 0, kind: input, shape index: {}]   ;;  %s369_s1 = inlined_call_operand.vmem [shape: f32[1,32], index: 1, kind: input, shape index: {}]   ;;  %s370_s2 = inlined_call_operand.vmem [shape: f32[1,32], index: 2, kind: input, shape index: {}]   ;;  %s371_s3 = inlined_call_operand.vmem [shape: bf16[16,32], index: 3, kind: output, shape index: {}]  }
   0x1 LB: > { %s281_s13 = sadd.s32 4294967295, %s313_s12   ;;  %p285_p0 = scmp.ge.s32.totalorder %s313_s12, 1  ;;  %s313_s12 = sphi %s336_s12, %s13_s12  }
   0x2   : > { %p136_p1 = scmp.lt.s32.totalorder %s313_s12, 3 }
   0x4   : > { %p137_p2 = pnand %p285_p0, %p136_p1 }
   0x5   : > { %p158_p3 = scmp.lt.s32.totalorder (!%p137_p2), %s281_s13, 1 }
   0x6   : > { %140 = sbr.rel (%p137_p2) target bundleno = 306 (0x132), region = 32 }
   0xb   : > { %s373_s13 = smov (!%p158_p3, %s281_s13), 1  ;;  %vm170_vm0 = vcmask 261120   ;;  %v315_v3 = vmov 32.0   ;;  %v299_v32 = vld [vmem:[%s369_s1] ss:$0 sm:$0xff]  ;;  %vm226_vm8 = vcmask 257024  }
   0xc   : > { %s286_s14 = sshll.u32 %s373_s13, 2  ;;  %301 = vrcp.f32 %v315_v3  ;;  %v300_v38 = vld [vmem:[%s370_s2] ss:$0 sm:$0xff] }
   0xd   : > { %s161_s17 = scalar_lea.vmem %s368_s0, %s286_s14  ;;  %s165_s24 = scalar_lea.vmem %s371_s3, %s286_s14 }
   0xe   : > { %v166_v0 = vld [vmem:[%s161_s17] sm:$0xf] }
   0xf   : > { %v169_v1 = vunpack.c.l.bf16 %v166_v0 }
  0x11   : > { %v171_v2 = vsel %vm170_vm0, %v169_v1, 0.0 }
  0x12   : > { %172 = vadd.xlane.f32.xlu0 %v171_v2  ;;  %v302_v4 = vpop.eup %301 }
  0x13   : > { %v175_v5 = vmul.f32 32.0, %v302_v4  ;;  %vm179_vm1 = vweird.f32 %v302_v4 }
  0x15   : > { %v176_v6 = vsub.f32 1.0, %v175_v5 }
  0x17   : > { %v177_v7 = vmul.f32 %v302_v4, %v176_v6 }
  0x19   : > { %v178_v8 = vadd.f32 %v302_v4, %v177_v7 }
  0x1b   : > { %v180_v9 = vsel %vm179_vm1, %v302_v4, %v178_v8 }
  0x85   : > { %v173_v10 = vpop.xlane.xlu0 %172 }
  0x86   : > { %v181_v11 = vmul.f32 %v180_v9, %v173_v10 }
  0x88   : > { %v182_v12 = vsub.f32 %v169_v1, %v181_v11 }
  0x8a   : > { %v183_v13 = vmul.f32 %v182_v12, %v182_v12  ;;  %v219_v37 = vmul.f32 %v299_v32, %v182_v12 }
  0x8c   : > { %v184_v14 = vsel %vm170_vm0, %v183_v13, 0.0 }
  0x8d   : > { %185 = vadd.xlane.f32.xlu0 %v184_v14 }
 0x100   : > { %v186_v15 = vpop.xlane.xlu0 %185 }
 0x101   : > { %v187_v16 = vmul.f32 0.032258064, %v186_v15 }
 0x103   : > { %303 = vrsqrt.f32 %v187_v16  ;;  %vm195_vm2 = vcmp.eq.f32.partialorder %v187_v16, inf  ;;  %v198_v24 = vand.u32 2147483648, %v187_v16  ;;  %vm197_vm3 = vcmp.eq.f32.partialorder %v187_v16, 0.0 }
 0x109   : > { %v304_v17 = vpop.eup %303 }
 0x10a   : > { %v189_v18 = vmul.f32 %v304_v17, %v187_v16 }
 0x10c   : > { %v190_v19 = vmul.f32 %v304_v17, %v189_v18 }
 0x10e   : > { %v191_v20 = vmul.f32 0.5, %v190_v19 }
 0x110   : > { %v192_v21 = vsub.f32 1.5, %v191_v20 }
 0x112   : > { %v193_v22 = vmul.f32 %v304_v17, %v192_v21 }
 0x114   : > { %v194_v23 = vmul.f32 %v193_v22, %v187_v16 }
 0x116   : > { %v196_v25 = vsel %vm195_vm2, %v187_v16, %v194_v23 }
 0x117   : > { %v199_v26 = vsel %vm197_vm3, %v198_v24, %v196_v25 }
 0x118   : > { %v200_v27 = vadd.f32 1e-06, %v199_v26 }
 0x11a   : > { %305 = vrcp.f32 %v200_v27  ;;  %v212_v31 = vand.u32 2147483648, %v200_v27  ;;  %v210_v34 = vand.u32 2147483647, %v200_v27  ;;  %vm206_vm5 = vweird.f32 %v200_v27 }
 0x11c   : > { %v213_v36 = vor.u32 1.1754944e-38, %v212_v31  ;;  %vm211_vm7 = vcmp.eq.f32.partialorder %v210_v34, 8.507059e+37 }
 0x120   : > { %v306_v28 = vpop.eup %305 }
 0x121   : > { %v202_v29 = vmul.f32 %v306_v28, %v200_v27  ;;  %vm207_vm4 = vweird.f32 %v306_v28 }
 0x122   : > { %vm208_vm6 = vmor %vm206_vm5, %vm207_vm4 }
 0x123   : > { %v203_v30 = vsub.f32 1.0, %v202_v29 }
 0x125   : > { %v204_v33 = vmul.f32 %v306_v28, %v203_v30 }
 0x127   : > { %v205_v35 = vadd.f32 %v306_v28, %v204_v33 }
 0x129   : > { %v209_v39 = vsel %vm208_vm6, %v306_v28, %v205_v35 }
 0x12a   : > { %v214_v40 = vsel %vm211_vm7, %v213_v36, %v209_v39 }
 0x12b   : > { %v220_v41 = vmul.f32 %v219_v37, %v214_v40 }
 0x12d   : > { %v224_v42 = vadd.f32 %v300_v38, %v220_v41 }
 0x12f   : > { %v225_v43 = vpack.c.bf16 %v224_v42, %v224_v42 }
 0x131   : > { %227 = vst.msk [vmem:[%s165_s24] sm:$0xf] %vm226_vm8, %v225_v43 }
 0x132 PF: > { %s13_s12 = sadd.s32 1, %s313_s12  }
 0x133   : > { %p10_p4 = scmp.ge.s32.totalorder %s13_s12, 4  }
 0x135   :  { %12 = sbr.rel (!%p10_p4) target bundleno = 1 (0x1), region = 62 }

// kernel: encoder_decoder_forward.45
= control target key start
LH: loop header
LB: loop body
LE: loop exit
PB: predicated region body
PF: predicated region fallthrough
CT: control target
= control target key end

     0   :  { %10 = vsyncpa [#allocation3], 0  ;;  %s718_s0 = inlined_call_operand.vmem [shape: bf16[16,32], index: 0, kind: input, shape index: {}]   ;;  %s719_s1 = inlined_call_operand.hbm [shape: f32[1,32], index: 1, kind: input, shape index: {}]   ;;  %s720_s2 = inlined_call_operand.hbm [shape: f32[1,32], index: 2, kind: input, shape index: {}]   ;;  %s721_s3 = inlined_call_operand.vmem [shape: bf16[32,96], index: 3, kind: input, shape index: {}]   ;;  %s722_s4 = inlined_call_operand.hbm [shape: f32[1,96], index: 4, kind: input, shape index: {}]   ;;  %s723_s5 = inlined_call_operand.vmem [shape: bf16[16,96], index: 5, kind: output, shape index: {}]  }
   0x1   :  { %11 = vsyncpa [#allocation5], 0  ;;  %s663_s18 = smov 0  }
   0x2 LB: > { %s182_s21 = sshll.u32 %s720_s2, 4  ;;  %s448_s22 = sadd.s32 4294967295, %s627_s18   ;;  %s627_s18 = sphi %s663_s18, %s17_s18   ;;  %s183_s21 = int_to_ptr.hbm [resolvable:$true] %s182_s21 }
   0x3   : > { %p450_p0 = scmp.ge.s32.totalorder %s627_s18, 1  ;;  %p158_p1 = scmp.lt.s32.totalorder %s627_s18, 3 }
   0x4   : > { %p496_p2 = scmp.eq.s32.totalorder %s448_s22, 0  ;;  %s629_s24 = smov [#allocation4]  }
   0x5   : > { %p674_p3 = pnand %p450_p0, %p158_p1  ;;  %s184_s25 = sshll.u32 %s629_s24, 4  ;;  %s185_s25 = int_to_ptr.vmem [resolvable:$true] %s184_s25 }
   0x6   : > { %s170_s28 = sshll.u32 %s719_s1, 4  ;;  %s197_s6 = sshll.u32 %s722_s4, 4  ;;  %s171_s28 = int_to_ptr.hbm [resolvable:$true] %s170_s28  ;;  %s198_s6 = int_to_ptr.hbm [resolvable:$true] %s197_s6 }
   0x7   : > { %p486_p4 = pneg %p674_p3  ;;  %s630_s7 = smov [#allocation2]  }
   0x8   : > { %s172_s8 = sshll.u32 %s630_s7, 4  ;;  %s631_s9 = smov [#allocation6]   ;;  %s173_s8 = int_to_ptr.vmem [resolvable:$true] %s172_s8 }
   0x9   : > { %p487_p5 = pnand %p496_p2, %p486_p4  ;;  %s199_s10 = sshll.u32 %s631_s9, 4  ;;  %s200_s10 = int_to_ptr.vmem [resolvable:$true] %s199_s10 }
   0xa   : > { %219 = sbr.rel (%p674_p3) target bundleno = 448 (0x1c0), region = 40 }
   0xb   : > { %492 = dma.hbm_to_vmem [thread:$0]  (!%p487_p5), %s183_s21, 16, %s185_s25, [#allocation5]  }
   0xc   : > { %489 = dma.hbm_to_vmem [thread:$0]  (!%p487_p5), %s171_s28, 16, %s173_s8, [#allocation3]  }
   0xd   : > { %495 = dma.hbm_to_vmem [thread:$0]  (!%p487_p5), %s198_s6, 16, %s200_s10, [#allocation5]  }
   0xf   : > { %618 = dma.done.wait (%p496_p2), [#allocation3], 16  }
  0x10   : > { %620 = vsyncadd (%p496_p2), [#allocation3], 4294967280 }
  0x11   : > { %622 = dma.done.wait (%p496_p2), [#allocation5], 32  }
  0x12   : > { %624 = vsyncadd (%p496_p2), [#allocation5], 4294967264  ;;  %p256_p6 = scmp.lt.s32.totalorder %s448_s22, 1  ;;  %vm269_vm0 = vcmask 261120   ;;  %v632_v3 = vmov 32.0   ;;  %v473_v15 = vld [vmem:[%s721_s3 + $0x8] sm:$0xff] }
  0x13   : > { %517 = vrcp.f32 %v632_v3  ;;  %354 = vmatpush.bf16.msra.mxu0 %v473_v15  ;;  %v472_v16 = vld [vmem:[%s721_s3] sm:$0xff]  ;;  %vm362_vm8 = vcmask 781312  }
  0x14   : > { %s726_s22 = smov (!%p256_p6, %s448_s22), 1  ;;  %v514_v34 = vld [vmem:[#allocation2] ss:$0 sm:$0xff]  ;;  %v515_v41 = vld [vmem:[#allocation4] ss:$0 sm:$0xff] }
  0x15   : > { %s459_s11 = sshll.u32 %s726_s22, 2  ;;  %v516_v46 = vld [vmem:[#allocation6] ss:$0 sm:$0xff] }
  0x16   : > { %s259_s14 = scalar_lea.vmem %s718_s0, %s459_s11  ;;  %s263_s23 = scalar_lea.vmem %s723_s5, %s459_s11 }
  0x17   : > { %v265_v0 = vld [vmem:[%s259_s14] sm:$0xf]  ;;  %355 = vmatpush.bf16.msra.mxu0 %v472_v16 }
  0x18   : > { %v268_v1 = vunpack.c.l.bf16 %v265_v0 }
  0x19   : > { %v518_v4 = vpop.eup %517 }
  0x1a   : > { %v270_v2 = vsel %vm269_vm0, %v268_v1, 0.0  ;;  %v274_v5 = vmul.f32 32.0, %v518_v4  ;;  %vm278_vm1 = vweird.f32 %v518_v4 }
  0x1b   : > { %271 = vadd.xlane.f32.xlu0 %v270_v2 }
  0x1c   : > { %v275_v6 = vsub.f32 1.0, %v274_v5 }
  0x1e   : > { %v276_v7 = vmul.f32 %v518_v4, %v275_v6 }
  0x20   : > { %v277_v8 = vadd.f32 %v518_v4, %v276_v7 }
  0x22   : > { %v279_v9 = vsel %vm278_vm1, %v518_v4, %v277_v8 }
  0x8e   : > { %v272_v10 = vpop.xlane.xlu0 %271 }
  0x8f   : > { %v280_v11 = vmul.f32 %v279_v9, %v272_v10 }
  0x91   : > { %v281_v12 = vsub.f32 %v268_v1, %v280_v11 }
  0x93   : > { %v282_v13 = vmul.f32 %v281_v12, %v281_v12  ;;  %v318_v39 = vmul.f32 %v514_v34, %v281_v12 }
  0x95   : > { %v283_v14 = vsel %vm269_vm0, %v282_v13, 0.0 }
  0x96   : > { %284 = vadd.xlane.f32.xlu0 %v283_v14 }
 0x109   : > { %v285_v17 = vpop.xlane.xlu0 %284 }
 0x10a   : > { %v286_v18 = vmul.f32 0.032258064, %v285_v17 }
 0x10c   : > { %519 = vrsqrt.f32 %v286_v18  ;;  %vm294_vm2 = vcmp.eq.f32.partialorder %v286_v18, inf  ;;  %v297_v26 = vand.u32 2147483648, %v286_v18  ;;  %vm296_vm3 = vcmp.eq.f32.partialorder %v286_v18, 0.0 }
 0x112   : > { %v520_v19 = vpop.eup %519 }
 0x113   : > { %v288_v20 = vmul.f32 %v520_v19, %v286_v18 }
 0x115   : > { %v289_v21 = vmul.f32 %v520_v19, %v288_v20 }
 0x117   : > { %v290_v22 = vmul.f32 0.5, %v289_v21 }
 0x119   : > { %v291_v23 = vsub.f32 1.5, %v290_v22 }
 0x11b   : > { %v292_v24 = vmul.f32 %v520_v19, %v291_v23 }
 0x11d   : > { %v293_v25 = vmul.f32 %v292_v24, %v286_v18 }
 0x11f   : > { %v295_v27 = vsel %vm294_vm2, %v286_v18, %v293_v25 }
 0x120   : > { %v298_v28 = vsel %vm296_vm3, %v297_v26, %v295_v27 }
 0x121   : > { %v299_v29 = vadd.f32 1e-06, %v298_v28 }
 0x123   : > { %521 = vrcp.f32 %v299_v29  ;;  %v311_v33 = vand.u32 2147483648, %v299_v29  ;;  %v309_v36 = vand.u32 2147483647, %v299_v29  ;;  %vm305_vm5 = vweird.f32 %v299_v29 }
 0x125   : > { %v312_v38 = vor.u32 1.1754944e-38, %v311_v33  ;;  %vm310_vm7 = vcmp.eq.f32.partialorder %v309_v36, 8.507059e+37 }
 0x129   : > { %v522_v30 = vpop.eup %521 }
 0x12a   : > { %v301_v31 = vmul.f32 %v522_v30, %v299_v29  ;;  %vm306_vm4 = vweird.f32 %v522_v30 }
 0x12b   : > { %vm307_vm6 = vmor %vm305_vm5, %vm306_vm4 }
 0x12c   : > { %v302_v32 = vsub.f32 1.0, %v301_v31 }
 0x12e   : > { %v303_v35 = vmul.f32 %v522_v30, %v302_v32 }
 0x130   : > { %v304_v37 = vadd.f32 %v522_v30, %v303_v35 }
 0x132   : > { %v308_v40 = vsel %vm307_vm6, %v522_v30, %v304_v37 }
 0x133   : > { %v313_v42 = vsel %vm310_vm7, %v312_v38, %v308_v40 }
 0x134   : > { %v319_v43 = vmul.f32 %v318_v39, %v313_v42 }
 0x136   : > { %v323_v44 = vadd.f32 %v515_v41, %v319_v43 }
 0x138   : > { %v324_v45 = vpack.c.bf16 %v323_v44, %v323_v44 }
 0x13a   : > { %469 = vmatmul.msk.bf16.vlgmr.msra.gmra.mxu0 %vm269_vm0, %v324_v45 }
 0x1b7   : > { %v357_v47 = vpop.f32.mrf.mxu0 }
 0x1b8   : > { %v358_v48 = vadd.f32 %v516_v46, %v357_v47 }
 0x1ba   : > { %v361_v49 = vpack.c.bf16 %v358_v48, %v358_v48 }
 0x1bc   : > { %363 = vst.msk [vmem:[%s263_s23] sm:$0xf] %vm362_vm8, %v361_v49 }
 0x1bf   : > { %v359_v50 = vpop.f32.mrf.mxu0 }
 0x1c0 PF: > { %s17_s18 = sadd.s32 1, %s627_s18  }
 0x1c1   : > { %p14_p7 = scmp.ge.s32.totalorder %s17_s18, 4  }
 0x1c3   :  { %16 = sbr.rel (!%p14_p7) target bundleno = 2 (0x2), region = 83 }
 0x1c8   :  { %383 = vsyncpa [#allocation3], 1 }
 0x1c9   :  { %385 = vsyncpa [#allocation3 + $0x1], 1 }
 0x1ca   :  { %386 = vsyncpa [#allocation5], 1 }

// kernel: encoder_decoder_forward.54
= control target key start
LH: loop header
LB: loop body
LE: loop exit
PB: predicated region body
PF: predicated region fallthrough
CT: control target
= control target key end

     0   :  { %s483_s12 = smov 0   ;;  %s485_s13 = smov 0   ;;  %s536_s0 = inlined_call_operand.vmem [shape: bf16[16,32], index: 0, kind: input, shape index: {}]   ;;  %s537_s1 = inlined_call_operand.vmem [shape: bf16[32,16], index: 1, kind: input, shape index: {}]   ;;  %s538_s2 = inlined_call_operand.vmem [shape: f32[1,16], index: 2, kind: input, shape index: {}]   ;;  %s539_s3 = inlined_call_operand.vmem [shape: f32[16,1], index: 3, kind: output, shape index: {}]  }
   0x1   :  { %s487_s14 = smov 0  }
   0x2 LB: > { %s25_s15 = sadd.s32 1, %s454_s13  ;;  %p385_p0 = scmp.ge.s32.totalorder %s458_s14, 1  ;;  %s458_s14 = sphi %s487_s14, %s13_s14   ;;  %s454_s13 = sphi %s485_s13, %s541_s13   ;;  %s450_s12 = sphi %s483_s12, %s540_s12  }
   0x3   : > { %p27_p1 = scmp.ge.s32.totalorder %s25_s15, 2  ;;  %p165_p2 = scmp.lt.s32.totalorder %s458_s14, 3 }
   0x5   : > { %s543_s15 = smov (%p27_p1, %s25_s15), 0  ;;  %p166_p3 = pnand %p385_p0, %p165_p2 }
   0x6   : > { %p194_p4 = scmp.lt.s32.totalorder (!%p166_p3), %s450_s12, 1 }
   0x7   : > { %169 = sbr.rel (%p166_p3) target bundleno = 532 (0x214), region = 32 }
   0xc   : > { %v400_v0 = vld [vmem:[%s537_s1 + $0x8] sm:$0xff]  ;;  %v399_v1 = vld [vmem:[%s537_s1] sm:$0xff]  ;;  %s545_s12 = smov (!%p194_p4, %s450_s12), 1  ;;  %vm238_vm0 = vcmask 261120   ;;  %vm214_vm1 = vcmask 7168   ;;  %v460_v3 = vmov -inf  }
   0xd   : > { %248 = vmatpush.bf16.msra.mxu0 %v400_v0  ;;  %s386_s20 = sshll.u32 %s545_s12, 2  ;;  %215 = vst.msk [vmem:[#allocation2] sm:$0xff] %vm214_vm1, %v460_v3  ;;  %v429_v4 = vld [vmem:[%s538_s2] ss:$0 sm:$0xff]  ;;  %vm256_vm2 = vcmask 130048   ;;  %v461_v9 = vmov 0  }
   0xe   : > { %s197_s23 = scalar_lea.vmem %s536_s0, %s386_s20  ;;  %428 = vset.pattern.permute.xlu0 %v461_v9  ;;  %v462_v10 = vmov 0.0   ;;  %s387_s26 = sshll.u32 %s545_s12, 3 }
   0xf   : > { %v217_v2 = vld [vmem:[%s197_s23] sm:$0xf]  ;;  %216 = vst.msk [vmem:[#allocation3] sm:$0xff] %vm214_vm1, %v462_v10  ;;  %s208_s29 = scalar_lea.vmem %s539_s3, %s387_s26 }
  0x11   : > { %249 = vmatpush.bf16.msra.mxu0 %v399_v1 }
  0x14   : > { %396 = vmatmul.msk.bf16.vlgmr.msra.gmra.mxu0 %vm238_vm0, %v217_v2  ;;  %v255_v11 = vld [vmem:[#allocation2] sm:$0xff] }
  0x16   : > { %v261_v22 = vld [vmem:[#allocation3] sm:$0xff] }
  0x91   : > { %v251_v5 = vpop.f32.mrf.mxu0 }
  0x92   : > { %v252_v6 = vadd.f32 %v429_v4, %v251_v5 }
  0x94   : > { %v257_v7 = vsel %vm256_vm2, %v252_v6, -inf }
  0x95   : > { %258 = vmax.xlane.f32.xlu0 %v257_v7 }
  0x99   : > { %v253_v8 = vpop.f32.mrf.mxu0 }
 0x108   : > { %v259_v12 = vpop.xlane.xlu0 %258 }
 0x109   : > { %v260_v13 = vmax.f32 %v255_v11, %v259_v12 }
 0x10b   : > { %v262_v14 = vsub.f32 %v255_v11, %v260_v13  ;;  %280 = vst.msk [vmem:[#allocation2] sm:$0xff] %vm214_vm1, %v260_v13  ;;  %268 = vperm.xlu0 %428, %v260_v13  }
 0x10d   : > { %v263_v20 = vmul.f32 1.442695, %v262_v14 }
 0x112   : > { %v284_v29 = vld [vmem:[#allocation2] sm:$0xff] }
 0x17d   : > { %v269_v15 = vpop.permute.xlu0 %268 }
 0x17e   : > { %v271_v16 = vsub.f32 %v252_v6, %v269_v15 }
 0x180   : > { %v272_v17 = vmul.f32 1.442695, %v271_v16 }
 0x182   : > { %430 = vpow2.f32 %v272_v17 }
 0x183   : > { %432 = vpow2.f32 %v263_v20 }
 0x188   : > { %v431_v18 = vpop.eup %430 }
 0x189   : > { %v274_v19 = vsel %vm256_vm2, %v431_v18, 0.0  ;;  %v433_v21 = vpop.eup %432 }
 0x18a   : > { %275 = vadd.xlane.f32.xlu1 %v274_v19  ;;  %v265_v23 = vmul.f32 %v433_v21, %v261_v22 }
 0x1fd   : > { %v276_v24 = vpop.xlane.xlu1 %275 }
 0x1fe   : > { %v277_v25 = vadd.f32 %v276_v24, %v265_v23 }
 0x200   : > { %279 = vst.msk [vmem:[#allocation3] sm:$0xff] %vm214_vm1, %v277_v25 }
 0x207   : > { %v285_v26 = vld [vmem:[#allocation3] sm:$0xff] }
 0x208   : > { %434 = vlog2.f32 %v285_v26 }
 0x20e   : > { %v435_v27 = vpop.eup %434 }
 0x20f   : > { %v287_v28 = vmul.f32 0.6931472, %v435_v27 }
 0x211   : > { %v288_v30 = vadd.f32 %v287_v28, %v284_v29 }
 0x213   : > { %289 = vst.msk [vmem:[%s208_s29] sm:$0xff] %vm214_vm1, %v288_v30 }
 0x214 PF: > { %s13_s14 = sadd.s32 1, %s458_s14   ;;  %s540_s12 = smov %s454_s13 }
 0x215   : > { %p10_p5 = scmp.ge.s32.totalorder %s13_s14, 4   ;;  %s541_s13 = smov %s543_s15 }
 0x217   :  { %12 = sbr.rel (!%p10_p5) target bundleno = 2 (0x2), region = 76 }

// kernel: encoder_decoder_forward.55
= control target key start
LH: loop header
LB: loop body
LE: loop exit
PB: predicated region body
PF: predicated region fallthrough
CT: control target
= control target key end

     0   :  { %9 = vsyncpa [#allocation3], 0  ;;  %s725_s0 = inlined_call_operand.vmem [shape: bf16[16,32], index: 0, kind: input, shape index: {}]   ;;  %s726_s1 = inlined_call_operand.vmem [shape: f32[16,1], index: 1, kind: input, shape index: {}]   ;;  %s727_s2 = inlined_call_operand.vmem [shape: bf16[32,16], index: 2, kind: input, shape index: {}]   ;;  %s728_s3 = inlined_call_operand.vmem [shape: f32[1,16], index: 3, kind: input, shape index: {}]   ;;  %s729_s4 = inlined_call_operand.hbm [shape: f32[16,16], index: 4, kind: output, shape index: {}]  }
   0x1   :  { %11 = vsyncpa [#allocation3 + $0x1], 0  ;;  %s616_s15 = smov 0   ;;  %s618_s16 = smov 0  }
   0x2   :  { %s620_s17 = smov 0   ;;  %s622_s18 = smov 0  }
   0x3   :  { %s624_s19 = smov 0   ;;  %s626_s20 = smov 0  }
   0x4 LB: > { %s427_s21 = sadd.s32 4294967295, %s588_s20   ;;  %s428_s22 = sadd.s32 4294967294, %s588_s20   ;;  %s588_s20 = sphi %s626_s20, %s17_s20   ;;  %s584_s19 = sphi %s624_s19, %s736_s19   ;;  %s580_s18 = sphi %s622_s18, %s735_s18   ;;  %s576_s17 = sphi %s620_s17, %s734_s17   ;;  %s572_s16 = sphi %s618_s16, %s733_s16   ;;  %s568_s15 = sphi %s616_s15, %s732_s15  }
   0x5   : > { %s29_s23 = sadd.s32 1, %s584_s19  ;;  %s142_s24 = sadd.s32 1, %s576_s17 }
   0x6   : > { %p31_p0 = scmp.ge.s32.totalorder %s29_s23, 2  ;;  %p152_p1 = scmp.ne.s32.totalorder %s576_s17, %s572_s16 }
   0x7   : > { %p153_p2 = scmp.eq.s32.totalorder %s427_s21, 1  ;;  %p158_p3 = scmp.ne.s32.totalorder %s572_s16, %s568_s15 }
   0x8   : > { %s738_s23 = smov (%p31_p0, %s29_s23), 0  ;;  %p159_p5 = scmp.eq.s32.totalorder %s428_s22, 1 }
   0x9   : > { %p656_p4 = por %p153_p2, %p152_p1  ;;  %s137_s26 = ssub.s32 %s584_s19, %s738_s23 }
   0xa   : > { %p433_p6 = scmp.ge.s32.totalorder %s588_s20, 1  ;;  %p140_p7 = scmp.eq.s32.totalorder %s137_s26, 0 }
   0xb   : > { %p663_p8 = por %p159_p5, %p158_p3  ;;  %p204_p9 = scmp.lt.s32.totalorder %s588_s20, 3 }
   0xc   : > { %s669_s28 = scalar_select %p140_p7, %s576_s17, %s142_s24  }
   0xd   : > { %p205_p10 = pnand %p433_p6, %p204_p9 }
   0xe   : > { %p240_p11 = scmp.lt.s32.totalorder (!%p205_p10), %s580_s18, 1  ;;  %s237_s22 = sand.u32 (!%p205_p10), 1, %s572_s16  }
   0xf   : > { %208 = sbr.rel (%p205_p10) target bundleno = 162 (0xa2), region = 36  ;;  %s434_s24 = sshll.u32 (!%p205_p10), %s237_s22, 3 }
  0x10   : > { %s447_s26 = sshll.u32 (!%p205_p10), %s580_s18, 3 }
  0x14   : > { %v451_v0 = vld [vmem:[%s727_s2 + $0x8] sm:$0xff]  ;;  %v590_v1 = vmov 0   ;;  %v450_v2 = vld [vmem:[%s727_s2] sm:$0xff]  ;;  %s241_s7 = scalar_select %p240_p11, %s580_s18, 1  ;;  %vm277_vm0 = vcmask 261120   ;;  %vm301_vm1 = vcmask 130048  }
  0x15   : > { %508 = vset.pattern.permute.xlu0 %v590_v1  ;;  %287 = vmatpush.bf16.msra.mxu0 %v451_v0  ;;  %v509_v5 = vld [vmem:[%s728_s3] ss:$0 sm:$0xff]  ;;  %s304_s18 = scalar_lea.sflag [#allocation3], %s237_s22 }
  0x16   : > { %s435_s8 = sshll.u32 %s241_s7, 2  ;;  %s436_s9 = sshll.u32 %s241_s7, 3 }
  0x17   : > { %s243_s12 = scalar_lea.vmem %s725_s0, %s435_s8  ;;  %s247_s21 = scalar_lea.vmem %s726_s1, %s436_s9 }
  0x18   : > { %v256_v3 = vld [vmem:[%s243_s12] sm:$0xf]  ;;  %s315_s7 = scalar_lea.hbm %s729_s4, %s447_s26  ;;  %s239_s8 = scalar_lea.vmem [#allocation2], %s434_s24 }
  0x19   : > { %288 = vmatpush.bf16.msra.mxu0 %v450_v2  ;;  %v294_v4 = vld [vmem:[%s247_s21] sm:$0xff]  ;;  %s317_s9 = sshll.u32 %s239_s8, 4  ;;  %s319_s10 = sshll.u32 %s315_s7, 4  ;;  %s318_s9 = int_to_ptr.vmem [resolvable:$true] %s317_s9  ;;  %s320_s10 = int_to_ptr.hbm [resolvable:$true] %s319_s10 }
  0x1a   : > { %297 = vperm.xlu0 %508, %v294_v4   ;;  %s524_s11 = sshra.s32 %s320_s10, 4  ;;  %s530_s21 = scalar_lea.hbm %s729_s4, 16  ;;  %s525_s11 = int_to_ptr.hbm [resolvable:$true] %s524_s11 }
  0x1b   : > { %s526_s12 = scalar_lea.hbm %s525_s11, 8  ;;  %p531_p1 = scmp.lt.s32.totalorder %s525_s11, %s729_s4 }
  0x1c   : > { %445 = vmatmul.msk.bf16.vlgmr.msra.gmra.mxu0 %vm277_vm0, %v256_v3  ;;  %p527_p12 = scmp.ne.s32.totalorder %s525_s11, %s526_s12  ;;  %p532_p2 = scmp.lt.s32.totalorder %s530_s21, %s526_s12 }
  0x1e   : > { %p528_p13 = pnand %p527_p12, %p656_p4  ;;  %p533_p3 = por %p532_p2, %p531_p1 }
  0x20   : > { %p529_p0 = pneg %p528_p13 }
  0x22   : > { %p534_p5 = pnand %p533_p3, %p529_p0 }
  0x8c   : > { %v298_v7 = vpop.permute.xlu0 %297 }
  0x99   : > { %v290_v6 = vpop.f32.mrf.mxu0 }
  0x9a   : > { %v291_v8 = vadd.f32 %v509_v5, %v290_v6 }
  0x9c   : > { %v300_v9 = vsub.f32 %v291_v8, %v298_v7 }
  0x9e   : > { %302 = vst.msk [vmem:[%s239_s8] sm:$0xff] %vm301_vm1, %v300_v9 }
  0x9f   : > { %537 = shalt.err (!%p534_p5)
}
  0xa0   : > { %452 = dma.vmem_to_hbm [thread:$0]  (%p656_p4), %s318_s9, 128, %s320_s10, %s304_s18  }
  0xa1   : > { %v292_v10 = vpop.f32.mrf.mxu0 }
  0xa2 PF: > { %p458_p6 = scmp.ge.s32.totalorder %s588_s20, 2  ;;  %s331_s22 = sand.u32 1, %s568_s15  }
  0xa3   : > { %s332_s29 = scalar_lea.sflag [#allocation3], %s331_s22 }
  0xa4   : > { %p455_p7 = pnand %p458_p6, %p663_p8 }
  0xa6   : > { %p456_p9 = pneg %p455_p7 }
  0xa8   : > { %563 = dma.done.wait (%p456_p9), %s332_s29, 128  }
  0xa9   : > { %565 = vsyncadd (%p456_p9), %s332_s29, 4294967168  ;;  %s17_s20 = sadd.s32 1, %s588_s20   ;;  %s732_s15 = smov %s572_s16 }
  0xaa   : > { %p14_p10 = scmp.ge.s32.totalorder %s17_s20, 4   ;;  %s733_s16 = smov %s576_s17 }
  0xab   : > { %s734_s17 = smov %s669_s28  ;;  %s735_s18 = smov %s584_s19 }
  0xac   : > { %s736_s19 = smov %s738_s23  ;;  %16 = sbr.rel (!%p14_p10) target bundleno = 4 (0x4), region = 80 }
  0xb1   :  { %338 = vsyncpa [#allocation3], 1 }
  0xb2   :  { %340 = vsyncpa [#allocation3 + $0x1], 1 }

</bundles_post_ra>
